<compile_context>
chip_gen: v5e
topology: v5e:2x2
jax: 0.10.0
libtpu: 0.0.40
codegen_flags: <defaults>
</compile_context>

<pallas_src>
import math
import jax
import jax.numpy as jnp
from jax.experimental import pallas as pl
from jax.experimental.pallas import tpu as pltpu


DIM = 512        # hidden width of the MLP
OUT_PAD = 128    # lane-dense padded width of the final (dim -> 1) layer weights


def _round_up(x, m):
    return ((x + m - 1) // m) * m


def _leaky_relu(v, slope=0.2):
    # max(v, slope*v) == leaky_relu(v) for 0 < slope < 1; saves a compare vs jnp.where.
    return jnp.maximum(v, slope * v)


def _disc_mlp_kernel(xc_ref, xi_ref,
                     w1a_ref, w1b_ref, b1_ref,
                     w2_ref, b2_ref,
                     w3_ref, b3_ref,
                     w4_ref, b4_ref,
                     o_ref):
    """Fused 4-layer MLP on one (TM, *) batch tile.

    All matmuls run bf16 on the MXU with f32 accumulation; bias adds and the
    LeakyReLU epilogues stay f32 on the VPU.  The first Linear is split into
    ctx/image halves so no concatenated input is ever materialized in HBM.
    """
    # ---- Layer 1: x_ctx @ W1a + x_img @ W1b + b1 ---- (inputs arrive bf16)
    h = (jnp.dot(xc_ref[...], w1a_ref[...], preferred_element_type=jnp.float32)
         + jnp.dot(xi_ref[...], w1b_ref[...], preferred_element_type=jnp.float32)
         + b1_ref[...])
    h = _leaky_relu(h).astype(jnp.bfloat16)

    # ---- Layer 2 (Dropout(0.4) -> identity, eval mode) ----
    h = jnp.dot(h, w2_ref[...], preferred_element_type=jnp.float32) + b2_ref[...]
    h = _leaky_relu(h).astype(jnp.bfloat16)

    # ---- Layer 3 (Dropout(0.4) -> identity, eval mode) ----
    h = jnp.dot(h, w3_ref[...], preferred_element_type=jnp.float32) + b3_ref[...]
    h = _leaky_relu(h).astype(jnp.bfloat16)

    # ---- Layer 4: W4 is zero-padded to 128 columns for one clean MXU pass; only
    #      column 0 is the real logit and only that column is written back. ----
    out = jnp.dot(h, w4_ref[...], preferred_element_type=jnp.float32) + b4_ref[...]
    o_ref[...] = out[:, 0:1]


def discriminator_forward(ctx_prompt, image, params, *, tm=512):
    """ctx_prompt: (B, n_ctx, 512), image: (B, FEAT_DIM) -> validity (B, 1) f32."""
    B = ctx_prompt.shape[0]
    # bf16 activations: halves the only per-step HBM read (weights are resident).
    ctx_flat = ctx_prompt.reshape(B, -1).astype(jnp.bfloat16)
    img_flat = image.reshape(B, -1).astype(jnp.bfloat16)
    d_ctx = ctx_flat.shape[1]
    d_img = img_flat.shape[1]

    (w1a, w1b, b1), (w2, b2), (w3, b3), (w4, b4) = params

    # Batch tile: bf16 packs (16,128), so TM is a multiple of 16.  For B >= 2*tm use
    # tm directly (default 512 amortizes per-step overhead and is 128-aligned for the
    # v5e MXU); otherwise split the batch roughly in half so there are at least two
    # grid steps and the "parallel" axis can be sharded over both v7x TensorCores.
    if B >= 2 * tm:
        TM = tm
    else:
        TM = min(tm, _round_up(max(pl.cdiv(B, 2), 8), 16))
    n_tiles = max(2, pl.cdiv(B, TM))
    B_pad = n_tiles * TM
    if B_pad != B:
        pad = B_pad - B
        ctx_flat = jnp.pad(ctx_flat, ((0, pad), (0, 0)))
        img_flat = jnp.pad(img_flat, ((0, pad), (0, 0)))

    grid = (n_tiles,)
    batch_tile = lambda i: (i, 0)   # x / out tiles march over the batch
    resident = lambda i: (0, 0)     # weights & biases stay resident across the grid

    weight_bytes = sum(int(w.size) * w.dtype.itemsize for w in (w1a, w1b, w2, w3, w4))
    bias_bytes = sum(int(b.size) * b.dtype.itemsize for b in (b1, b2, b3, b4))
    act_in_bytes = (int(ctx_flat.size) + int(img_flat.size)) * 2          # bf16
    out_hbm_bytes = B_pad * 1 * 4                                          # f32 logits

    cost = pl.CostEstimate(
        flops=2 * B_pad * (d_ctx * DIM + d_img * DIM + 2 * DIM * DIM + DIM * OUT_PAD),
        transcendentals=0,
        bytes_accessed=act_in_bytes + weight_bytes + bias_bytes + out_hbm_bytes,
    )

    # VMEM budget: double-buffered bf16 x tiles + (conservatively double-buffered)
    # resident weights/biases + double-buffered narrow output tile, plus headroom
    # for f32 intermediates.  Clamp into a range valid on all of v5e/v6e/v7x.
    vmem_budget = (2 * TM * (d_ctx + d_img) * 2          # ctx/img tiles, bf16, x2 buffers
                   + 2 * (weight_bytes + bias_bytes)     # resident params (x2 to be safe)
                   + 2 * TM * 1 * 4                      # output tile, f32, x2 buffers
                   + 4 * TM * DIM * 4)                   # f32 hidden intermediates headroom
    vmem_limit = int(min(120 << 20, max(32 << 20, vmem_budget + (8 << 20))))

    out = pl.pallas_call(
        _disc_mlp_kernel,
        out_shape=jax.ShapeDtypeStruct((B_pad, 1), jnp.float32),
        grid=grid,
        in_specs=[
            pl.BlockSpec((TM, d_ctx), batch_tile),      # ctx activations (bf16)
            pl.BlockSpec((TM, d_img), batch_tile),      # image activations (bf16)
            pl.BlockSpec((d_ctx, DIM), resident),       # W1a (bf16)
            pl.BlockSpec((d_img, DIM), resident),       # W1b (bf16)
            pl.BlockSpec((1, DIM), resident),           # b1 (f32)
            pl.BlockSpec((DIM, DIM), resident),         # W2 (bf16)
            pl.BlockSpec((1, DIM), resident),           # b2
            pl.BlockSpec((DIM, DIM), resident),         # W3 (bf16)
            pl.BlockSpec((1, DIM), resident),           # b3
            pl.BlockSpec((DIM, OUT_PAD), resident),     # W4 padded (bf16)
            pl.BlockSpec((1, OUT_PAD), resident),       # b4 padded (f32)
        ],
        out_specs=pl.BlockSpec((TM, 1), batch_tile),
        compiler_params=pltpu.CompilerParams(
            dimension_semantics=("parallel",),          # shard batch tiles over both TCs
            vmem_limit_bytes=vmem_limit,
        ),
        cost_estimate=cost,
    )(ctx_flat, img_flat, w1a, w1b, b1, w2, b2, w3, b3, w4, b4)

    # Drop batch padding; output is already the single f32 logit column.
    return out[:B]


def _kaiming_uniform(key, fan_in, fan_out, a=0.0):
    """PyTorch kaiming_uniform_(mode='fan_in', nonlinearity='leaky_relu') (default a=0).

    Returns weight already transposed to (fan_in, fan_out) for x @ W."""
    gain = math.sqrt(2.0 / (1.0 + a * a))
    bound = gain * math.sqrt(3.0 / fan_in)
    return jax.random.uniform(key, (fan_in, fan_out), jnp.float32, -bound, bound)


def _linear_bias(key, fan_in, fan_out):
    bound = 1.0 / math.sqrt(fan_in)
    return jax.random.uniform(key, (1, fan_out), jnp.float32, -bound, bound)


def init_discriminator_params(key, n_ctx, feat_dim, dim=512):
    d_ctx = n_ctx * 512
    d_in = d_ctx + feat_dim

    key, k1w, k1b, k2w, k2b, k3w, k3b, k4w, k4b = jax.random.split(key, 9)

    w1 = _kaiming_uniform(k1w, d_in, dim)
    b1 = _linear_bias(k1b, d_in, dim)
    w2 = _kaiming_uniform(k2w, dim, dim)
    b2 = _linear_bias(k2b, dim, dim)
    w3 = _kaiming_uniform(k3w, dim, dim)
    b3 = _linear_bias(k3b, dim, dim)
    w4 = _kaiming_uniform(k4w, dim, 1)
    b4 = _linear_bias(k4b, dim, 1)

    # Split W1 so the kernel consumes ctx / image without a wrapper-side concat.
    w1a, w1b = w1[:d_ctx], w1[d_ctx:]

    # Pad the final layer to a lane-dense 128-wide weight; true logit is column 0.
    w4p = jnp.zeros((dim, OUT_PAD), jnp.float32).at[:, :1].set(w4)
    b4p = jnp.zeros((1, OUT_PAD), jnp.float32).at[:, :1].set(b4)

    # bf16 weight storage halves HBM weight traffic; matmul accumulation stays f32.
    return (
        (w1a.astype(jnp.bfloat16), w1b.astype(jnp.bfloat16), b1),
        (w2.astype(jnp.bfloat16), b2),
        (w3.astype(jnp.bfloat16), b3),
        (w4p.astype(jnp.bfloat16), b4p),
    )


if __name__ == "__main__":
    # Small, module-consistent shapes: n_ctx=2 -> ctx flat = 1024, FEAT_DIM=256, dim=512
    B, N_CTX, FEAT_DIM = 2, 2, 256

    key = jax.random.PRNGKey(0)
    k_ctx, k_img, k_par = jax.random.split(key, 3)

    ctx_prompt = jax.random.normal(k_ctx, (B, N_CTX, 512), jnp.float32)
    image = jax.random.normal(k_img, (B, FEAT_DIM), jnp.float32)
    params = init_discriminator_params(k_par, N_CTX, FEAT_DIM, DIM)

    validity = discriminator_forward(ctx_prompt, image, params)
    validity = jax.block_until_ready(validity)

    assert validity.shape == (B, 1) and validity.dtype == jnp.float32
    print("KERNEL_OK")
</pallas_src>

<mosaic_0001>
module attributes {stable_mosaic.version = 11 : i64} {
  func.func @_disc_mlp_kernel(%arg0: i32, %arg1: memref<16x1024xbf16, #tpu.memory_space<vmem>>, %arg2: memref<16x256xbf16, #tpu.memory_space<vmem>>, %arg3: memref<1024x512xbf16, #tpu.memory_space<vmem>>, %arg4: memref<256x512xbf16, #tpu.memory_space<vmem>>, %arg5: memref<1x512xf32, #tpu.memory_space<vmem>>, %arg6: memref<512x512xbf16, #tpu.memory_space<vmem>>, %arg7: memref<1x512xf32, #tpu.memory_space<vmem>>, %arg8: memref<512x512xbf16, #tpu.memory_space<vmem>>, %arg9: memref<1x512xf32, #tpu.memory_space<vmem>>, %arg10: memref<512x128xbf16, #tpu.memory_space<vmem>>, %arg11: memref<1x128xf32, #tpu.memory_space<vmem>>, %arg12: memref<16x1xf32, #tpu.memory_space<vmem>>) attributes {dimension_semantics = [#tpu.dimension_semantics<parallel>], iteration_bounds = array<i64: 2>, scalar_prefetch = 0 : i64, scratch_operands = 0 : i64, tpu.core_type = #tpu.core_type<tc>, window_params = [{transform_indices = @transform_0, window_bounds = array<i64: 16, 1024>}, {transform_indices = @transform_1, window_bounds = array<i64: 16, 256>}, {pipeline_mode = #tpu.pipeline_mode<synchronous>, transform_indices = @transform_2, window_bounds = array<i64: 1024, 512>}, {pipeline_mode = #tpu.pipeline_mode<synchronous>, transform_indices = @transform_3, window_bounds = array<i64: 256, 512>}, {pipeline_mode = #tpu.pipeline_mode<synchronous>, transform_indices = @transform_4, window_bounds = array<i64: 1, 512>}, {pipeline_mode = #tpu.pipeline_mode<synchronous>, transform_indices = @transform_5, window_bounds = array<i64: 512, 512>}, {pipeline_mode = #tpu.pipeline_mode<synchronous>, transform_indices = @transform_6, window_bounds = array<i64: 1, 512>}, {pipeline_mode = #tpu.pipeline_mode<synchronous>, transform_indices = @transform_7, window_bounds = array<i64: 512, 512>}, {pipeline_mode = #tpu.pipeline_mode<synchronous>, transform_indices = @transform_8, window_bounds = array<i64: 1, 512>}, {pipeline_mode = #tpu.pipeline_mode<synchronous>, transform_indices = @transform_9, window_bounds = array<i64: 512, 128>}, {pipeline_mode = #tpu.pipeline_mode<synchronous>, transform_indices = @transform_10, window_bounds = array<i64: 1, 128>}, {transform_indices = @transform_11, window_bounds = array<i64: 16, 1>}]} {
    %c0 = arith.constant 0 : index
    %c0_0 = arith.constant 0 : index
    %0 = vector.load %arg1[%c0, %c0_0] : memref<16x1024xbf16, #tpu.memory_space<vmem>>, vector<16x1024xbf16>
    %c0_1 = arith.constant 0 : index
    %c0_2 = arith.constant 0 : index
    %1 = vector.load %arg3[%c0_1, %c0_2] : memref<1024x512xbf16, #tpu.memory_space<vmem>>, vector<1024x512xbf16>
    %cst = arith.constant dense<0.000000e+00> : vector<16x512xf32>
    %2 = tpu.matmul %0, %1, %cst {dimension_numbers = #tpu.dot_dimension_numbers<[1], [0], [0], [1], [0, 0, 1, 1], [], []>} : vector<16x1024xbf16>, vector<1024x512xbf16>, vector<16x512xf32> -> vector<16x512xf32>
    %c0_3 = arith.constant 0 : index
    %c0_4 = arith.constant 0 : index
    %3 = vector.load %arg2[%c0_3, %c0_4] : memref<16x256xbf16, #tpu.memory_space<vmem>>, vector<16x256xbf16>
    %c0_5 = arith.constant 0 : index
    %c0_6 = arith.constant 0 : index
    %4 = vector.load %arg4[%c0_5, %c0_6] : memref<256x512xbf16, #tpu.memory_space<vmem>>, vector<256x512xbf16>
    %cst_7 = arith.constant dense<0.000000e+00> : vector<16x512xf32>
    %5 = tpu.matmul %3, %4, %cst_7 {dimension_numbers = #tpu.dot_dimension_numbers<[1], [0], [0], [1], [0, 0, 1, 1], [], []>} : vector<16x256xbf16>, vector<256x512xbf16>, vector<16x512xf32> -> vector<16x512xf32>
    %6 = arith.addf %2, %5 : vector<16x512xf32>
    %c0_8 = arith.constant 0 : index
    %c0_9 = arith.constant 0 : index
    %7 = vector.load %arg5[%c0_8, %c0_9] : memref<1x512xf32, #tpu.memory_space<vmem>>, vector<1x512xf32>
    %8 = vector.broadcast %7 : vector<1x512xf32> to vector<16x512xf32>
    %9 = arith.addf %6, %8 : vector<16x512xf32>
    %cst_10 = arith.constant 2.000000e-01 : f32
    %10 = vector.broadcast %cst_10 : f32 to vector<16x512xf32>
    %11 = arith.mulf %10, %9 : vector<16x512xf32>
    %12 = arith.maximumf %9, %11 : vector<16x512xf32>
    %13 = arith.truncf %12 : vector<16x512xf32> to vector<16x512xbf16>
    %c0_11 = arith.constant 0 : index
    %c0_12 = arith.constant 0 : index
    %14 = vector.load %arg6[%c0_11, %c0_12] : memref<512x512xbf16, #tpu.memory_space<vmem>>, vector<512x512xbf16>
    %cst_13 = arith.constant dense<0.000000e+00> : vector<16x512xf32>
    %15 = tpu.matmul %13, %14, %cst_13 {dimension_numbers = #tpu.dot_dimension_numbers<[1], [0], [0], [1], [0, 0, 1, 1], [], []>} : vector<16x512xbf16>, vector<512x512xbf16>, vector<16x512xf32> -> vector<16x512xf32>
    %c0_14 = arith.constant 0 : index
    %c0_15 = arith.constant 0 : index
    %16 = vector.load %arg7[%c0_14, %c0_15] : memref<1x512xf32, #tpu.memory_space<vmem>>, vector<1x512xf32>
    %17 = vector.broadcast %16 : vector<1x512xf32> to vector<16x512xf32>
    %18 = arith.addf %15, %17 : vector<16x512xf32>
    %cst_16 = arith.constant 2.000000e-01 : f32
    %19 = vector.broadcast %cst_16 : f32 to vector<16x512xf32>
    %20 = arith.mulf %19, %18 : vector<16x512xf32>
    %21 = arith.maximumf %18, %20 : vector<16x512xf32>
    %22 = arith.truncf %21 : vector<16x512xf32> to vector<16x512xbf16>
    %c0_17 = arith.constant 0 : index
    %c0_18 = arith.constant 0 : index
    %23 = vector.load %arg8[%c0_17, %c0_18] : memref<512x512xbf16, #tpu.memory_space<vmem>>, vector<512x512xbf16>
    %cst_19 = arith.constant dense<0.000000e+00> : vector<16x512xf32>
    %24 = tpu.matmul %22, %23, %cst_19 {dimension_numbers = #tpu.dot_dimension_numbers<[1], [0], [0], [1], [0, 0, 1, 1], [], []>} : vector<16x512xbf16>, vector<512x512xbf16>, vector<16x512xf32> -> vector<16x512xf32>
    %c0_20 = arith.constant 0 : index
    %c0_21 = arith.constant 0 : index
    %25 = vector.load %arg9[%c0_20, %c0_21] : memref<1x512xf32, #tpu.memory_space<vmem>>, vector<1x512xf32>
    %26 = vector.broadcast %25 : vector<1x512xf32> to vector<16x512xf32>
    %27 = arith.addf %24, %26 : vector<16x512xf32>
    %cst_22 = arith.constant 2.000000e-01 : f32
    %28 = vector.broadcast %cst_22 : f32 to vector<16x512xf32>
    %29 = arith.mulf %28, %27 : vector<16x512xf32>
    %30 = arith.maximumf %27, %29 : vector<16x512xf32>
    %31 = arith.truncf %30 : vector<16x512xf32> to vector<16x512xbf16>
    %c0_23 = arith.constant 0 : index
    %c0_24 = arith.constant 0 : index
    %32 = vector.load %arg10[%c0_23, %c0_24] : memref<512x128xbf16, #tpu.memory_space<vmem>>, vector<512x128xbf16>
    %cst_25 = arith.constant dense<0.000000e+00> : vector<16x128xf32>
    %33 = tpu.matmul %31, %32, %cst_25 {dimension_numbers = #tpu.dot_dimension_numbers<[1], [0], [0], [1], [0, 0, 1, 1], [], []>} : vector<16x512xbf16>, vector<512x128xbf16>, vector<16x128xf32> -> vector<16x128xf32>
    %c0_26 = arith.constant 0 : index
    %c0_27 = arith.constant 0 : index
    %34 = vector.load %arg11[%c0_26, %c0_27] : memref<1x128xf32, #tpu.memory_space<vmem>>, vector<1x128xf32>
    %35 = vector.broadcast %34 : vector<1x128xf32> to vector<16x128xf32>
    %36 = arith.addf %33, %35 : vector<16x128xf32>
    %37 = vector.extract_strided_slice %36 {offsets = [0, 0], sizes = [16, 1], strides = [1, 1]} : vector<16x128xf32> to vector<16x1xf32>
    %c0_28 = arith.constant 0 : index
    %c0_29 = arith.constant 0 : index
    %38 = vector.load %arg12[%c0_28, %c0_29] : memref<16x1xf32, #tpu.memory_space<vmem>>, vector<16x1xf32>
    tpu.vector_store %arg12[%c0_28, %c0_29], %37 {strides = array<i32>} : memref<16x1xf32, #tpu.memory_space<vmem>>, vector<16x1xf32>,
    return
  }
  func.func @transform_0(%arg0: i32) -> (i32, i32) {
    %c0_i32 = arith.constant 0 : i32
    %c0_i32_0 = arith.constant 0 : i32
    return %arg0, %c0_i32 : i32, i32
  }
  func.func @transform_1(%arg0: i32) -> (i32, i32) {
    %c0_i32 = arith.constant 0 : i32
    %c0_i32_0 = arith.constant 0 : i32
    return %arg0, %c0_i32 : i32, i32
  }
  func.func @transform_2(%arg0: i32) -> (i32, i32) {
    %c0_i32 = arith.constant 0 : i32
    %c0_i32_0 = arith.constant 0 : i32
    %c0_i32_1 = arith.constant 0 : i32
    return %c0_i32, %c0_i32_0 : i32, i32
  }
  func.func @transform_3(%arg0: i32) -> (i32, i32) {
    %c0_i32 = arith.constant 0 : i32
    %c0_i32_0 = arith.constant 0 : i32
    %c0_i32_1 = arith.constant 0 : i32
    return %c0_i32, %c0_i32_0 : i32, i32
  }
  func.func @transform_4(%arg0: i32) -> (i32, i32) {
    %c0_i32 = arith.constant 0 : i32
    %c0_i32_0 = arith.constant 0 : i32
    %c0_i32_1 = arith.constant 0 : i32
    return %c0_i32, %c0_i32_0 : i32, i32
  }
  func.func @transform_5(%arg0: i32) -> (i32, i32) {
    %c0_i32 = arith.constant 0 : i32
    %c0_i32_0 = arith.constant 0 : i32
    %c0_i32_1 = arith.constant 0 : i32
    return %c0_i32, %c0_i32_0 : i32, i32
  }
  func.func @transform_6(%arg0: i32) -> (i32, i32) {
    %c0_i32 = arith.constant 0 : i32
    %c0_i32_0 = arith.constant 0 : i32
    %c0_i32_1 = arith.constant 0 : i32
    return %c0_i32, %c0_i32_0 : i32, i32
  }
  func.func @transform_7(%arg0: i32) -> (i32, i32) {
    %c0_i32 = arith.constant 0 : i32
    %c0_i32_0 = arith.constant 0 : i32
    %c0_i32_1 = arith.constant 0 : i32
    return %c0_i32, %c0_i32_0 : i32, i32
  }
  func.func @transform_8(%arg0: i32) -> (i32, i32) {
    %c0_i32 = arith.constant 0 : i32
    %c0_i32_0 = arith.constant 0 : i32
    %c0_i32_1 = arith.constant 0 : i32
    return %c0_i32, %c0_i32_0 : i32, i32
  }
  func.func @transform_9(%arg0: i32) -> (i32, i32) {
    %c0_i32 = arith.constant 0 : i32
    %c0_i32_0 = arith.constant 0 : i32
    %c0_i32_1 = arith.constant 0 : i32
    return %c0_i32, %c0_i32_0 : i32, i32
  }
  func.func @transform_10(%arg0: i32) -> (i32, i32) {
    %c0_i32 = arith.constant 0 : i32
    %c0_i32_0 = arith.constant 0 : i32
    %c0_i32_1 = arith.constant 0 : i32
    return %c0_i32, %c0_i32_0 : i32, i32
  }
  func.func @transform_11(%arg0: i32) -> (i32, i32) {
    %c0_i32 = arith.constant 0 : i32
    %c0_i32_0 = arith.constant 0 : i32
    return %arg0, %c0_i32 : i32, i32
  }
}

</mosaic_0001>

<bundles_post_ra>
// kernel: tpu_custom_call.1
= control target key start
LH: loop header
LB: loop body
LE: loop exit
PB: predicated region body
PF: predicated region fallthrough
CT: control target
= control target key end

     0   :  { %s9757_s0 = inlined_call_operand.hbm [shape: bf16[32,1024], index: 0, kind: input, shape index: {}]   ;;  %s9758_s1 = inlined_call_operand.hbm [shape: bf16[32,256], index: 1, kind: input, shape index: {}]   ;;  %s9759_s2 = inlined_call_operand.hbm [shape: bf16[1024,512], index: 2, kind: input, shape index: {}]   ;;  %s9760_s3 = inlined_call_operand.hbm [shape: bf16[256,512], index: 3, kind: input, shape index: {}]   ;;  %s9761_s4 = inlined_call_operand.hbm [shape: f32[1,512], index: 4, kind: input, shape index: {}]   ;;  %s9762_s5 = inlined_call_operand.hbm [shape: bf16[512,512], index: 5, kind: input, shape index: {}]   ;;  %s9763_s6 = inlined_call_operand.vmem [shape: f32[1,512], index: 6, kind: input, shape index: {}]   ;;  %s9764_s7 = inlined_call_operand.hbm [shape: bf16[512,512], index: 7, kind: input, shape index: {}]   ;;  %s9765_s8 = inlined_call_operand.hbm [shape: f32[1,512], index: 8, kind: input, shape index: {}]   ;;  %s9766_s9 = inlined_call_operand.hbm [shape: bf16[512,128], index: 9, kind: input, shape index: {}]   ;;  %s9767_s10 = inlined_call_operand.vmem [shape: f32[1,128], index: 10, kind: input, shape index: {}]   ;;  %s9768_s11 = inlined_call_operand.vmem [shape: f32[32,1], index: 11, kind: output, shape index: {}]  }
   0x1   :  { %9769 = sst [smem:[#allocation22_spill]] %s9757_s0 }
   0x2   :  { %9770 = sst [smem:[#allocation23_spill]] %s9759_s2 }
   0x3   :  { %9771 = sst [smem:[#allocation24_spill]] %s9760_s3 }
   0x4   :  { %9772 = sst [smem:[#allocation25_spill]] %s9761_s4 }
   0x5   :  { %9773 = sst [smem:[#allocation26_spill]] %s9762_s5 }
   0x6   :  { %9774 = sst [smem:[#allocation27_spill]] %s9764_s7 }
   0x7   :  { %9775 = sst [smem:[#allocation28_spill]] %s9765_s8 }
   0x8   :  { %9776 = sst [smem:[#allocation29_spill]] %s9766_s9 }
   0x9   :  { %16 = vsyncpa [#allocation3], 0 }
   0xa   :  { %18 = vsyncpa [#allocation3 + $0x1], 0 }
   0xb   :  { %19 = vsyncpa [#allocation5], 0 }
   0xc   :  { %21 = vsyncpa [#allocation5 + $0x1], 0 }
   0xd   :  { %22 = vsyncpa [#allocation8], 0 }
   0xe   :  { %23 = vsyncpa [#allocation11], 0 }
   0xf   :  { %24 = vsyncpa [#allocation14], 0  ;;  %s9316_s17 = smov 0   ;;  %s9318_s18 = smov 0  }
  0x10   :  { %s9320_s19 = smov 0   ;;  %s9322_s20 = smov 0  }
  0x11 LB: > { %s9777_s2 = sld [smem:[#allocation23_spill]]  ;;  %s9340_s24 = sadd.s32 4294967295, %s9239_s20   ;;  %s9239_s20 = sphi %s9322_s20, %s9792_s20   ;;  %s9235_s19 = sphi %s9320_s19, %s9791_s19   ;;  %s9231_s18 = sphi %s9318_s18, %s9790_s18   ;;  %s9227_s17 = sphi %s9316_s17, %s9789_s17  }
  0x12   : > { %p5666_p0 = scmp.ge.s32.totalorder %s9239_s20, 1  ;;  %p51_p1 = scmp.eq.s32.totalorder %s9340_s24, 0 }
  0x13   : > { %p302_p2 = scmp.lt.s32.totalorder %s9239_s20, 3  ;;  %s9241_s26 = smov [#allocation6]  }
  0x14   : > { %s315_s27 = sshll.u32 %s9241_s26, 4  ;;  %s9779_s3 = sld [smem:[#allocation24_spill]]  ;;  %s316_s27 = int_to_ptr.vmem [resolvable:$true] %s315_s27 }
  0x15   : > { %p9345_p3 = pnand %p5666_p0, %p302_p2  ;;  %s9781_s5 = sld [smem:[#allocation26_spill]] }
  0x16   : > { %s9242_s16 = smov [#allocation7]   ;;  %s9243_s22 = smov 256  }
  0x17   : > { %s313_s23 = sshll.u32 %s9777_s2, 4  ;;  %p8823_p4 = pneg %p9345_p3  ;;  %s314_s23 = int_to_ptr.hbm [resolvable:$true] %s313_s23 }
  0x18   : > { %s329_s21 = sshll.u32 %s9242_s16, 4  ;;  %s9244_s26 = smov 16   ;;  %s330_s21 = int_to_ptr.vmem [resolvable:$true] %s329_s21 }
  0x19   : > { %p9356_p5 = pnand %p8823_p4, %p51_p1  ;;  %s9782_s8 = sld [smem:[#allocation28_spill]] }
  0x1a   : > { %s327_s30 = sshll.u32 %s9779_s3, 4  ;;  %s9245_s14 = smov [#allocation10]   ;;  %s328_s30 = int_to_ptr.hbm [resolvable:$true] %s327_s30 }
  0x1b   : > { %s353_s15 = sshll.u32 %s9781_s5, 4  ;;  %s355_s16 = sshll.u32 %s9245_s14, 4  ;;  %s354_s15 = int_to_ptr.hbm [resolvable:$true] %s353_s15  ;;  %s356_s16 = int_to_ptr.vmem [resolvable:$true] %s355_s16 }
  0x1c   : > { %8826 = dma.hbm_to_vmem [thread:$0]  (!%p9356_p5), %s314_s23, 32768, %s316_s27, [#allocation5], %s9243_s22, %s9243_s22, %s9244_s26  }
  0x1d   : > { %8829 = dma.hbm_to_vmem [thread:$0]  (!%p9356_p5), %s328_s30, 8192, %s330_s21, [#allocation8], %s9243_s22, %s9243_s22, %s9244_s26  }
  0x1e   : > { %8835 = dma.hbm_to_vmem [thread:$0]  (!%p9356_p5), %s354_s15, 16384, %s356_s16, [#allocation11], %s9243_s22, %s9243_s22, %s9244_s26  }
  0x1f   : > { %s385_s13 = sshll.u32 %s9782_s8, 4  ;;  %s9246_s23 = smov [#allocation13]   ;;  %s386_s13 = int_to_ptr.hbm [resolvable:$true] %s385_s13 }
  0x20   : > { %s387_s27 = sshll.u32 %s9246_s23, 4  ;;  %s9783_s4 = sld [smem:[#allocation25_spill]]  ;;  %s388_s27 = int_to_ptr.vmem [resolvable:$true] %s387_s27 }
  0x21   : > { %8841 = dma.hbm_to_vmem [thread:$0]  (!%p9356_p5), %s386_s13, 64, %s388_s27, [#allocation14]  }
  0x22   : > { %s9784_s7 = sld [smem:[#allocation27_spill]]  ;;  %s9247_s14 = smov [#allocation9]  }
  0x23   : > { %s344_s5 = sshll.u32 %s9247_s14, 4  ;;  %s9248_s2 = smov [#allocation12]   ;;  %s345_s5 = int_to_ptr.vmem [resolvable:$true] %s344_s5 }
  0x24   : > { %s372_s3 = sshll.u32 %s9248_s2, 4  ;;  %s9785_s9 = sld [smem:[#allocation29_spill]]  ;;  %s373_s3 = int_to_ptr.vmem [resolvable:$true] %s372_s3 }
  0x25   : > { %s9250_s27 = smov 64   ;;  %s9402_s21 = sadd.s32 1, %s9239_s20  }
  0x26   : > { %s342_s30 = sshll.u32 %s9783_s4, 4  ;;  %s34_s28 = ssub.s32 %s9239_s20, %s9402_s21  ;;  %s343_s30 = int_to_ptr.hbm [resolvable:$true] %s342_s30 }
  0x27   : > { %8832 = dma.hbm_to_vmem [thread:$0]  (!%p9356_p5), %s343_s30, 64, %s345_s5, [#allocation8]  }
  0x28   : > { %s370_s29 = sshll.u32 %s9784_s7, 4  ;;  %s9249_s5 = smov [#allocation15]   ;;  %s371_s29 = int_to_ptr.hbm [resolvable:$true] %s370_s29 }
  0x29   : > { %8838 = dma.hbm_to_vmem [thread:$0]  (!%p9356_p5), %s371_s29, 16384, %s373_s3, [#allocation11], %s9243_s22, %s9243_s22, %s9244_s26  }
  0x2a   : > { %s396_s16 = sshll.u32 %s9785_s9, 4  ;;  %s398_s23 = sshll.u32 %s9249_s5, 4  ;;  %s397_s16 = int_to_ptr.hbm [resolvable:$true] %s396_s16  ;;  %s399_s23 = int_to_ptr.vmem [resolvable:$true] %s398_s23 }
  0x2b   : > { %s9251_s30 = smov 4   ;;  %s37_s14 = sadd.s32 1, %s9235_s19 }
  0x2c   : > { %8844 = dma.hbm_to_vmem [thread:$0]  (!%p9356_p5), %s397_s16, 4096, %s399_s23, [#allocation14], %s9250_s27, %s9250_s27, %s9251_s30  }
  0x2d   : > { %p35_p6 = scmp.eq.s32.totalorder %s34_s28, 0  ;;  %p44_p7 = scmp.ne.s32.totalorder %s9235_s19, %s9231_s18 }
  0x2e   : > { %p45_p8 = scmp.eq.s32.totalorder %s9239_s20, 0  ;;  %p50_p9 = scmp.ne.s32.totalorder %s9231_s18, %s9227_s17 }
  0x2f   : > { %s9413_s22 = scalar_select %p35_p6, %s9235_s19, %s37_s14  }
  0x30   : > { %p46_p10 = por %p45_p8, %p44_p7  ;;  %p9417_p11 = por %p51_p1, %p50_p9 }
  0x31   : > { %p8859_p12 = scmp.lt.s32.totalorder %s9239_s20, 2  ;;  %s9423_s12 = sand.u32 1, %s9235_s19  }
  0x32   : > { %s5675_s29 = sshll.u32 %s9423_s12, 6  ;;  %s8170_s2 = sshll.u32 %s9239_s20, 6 }
  0x33   : > { %s9787_s0 = sld [smem:[#allocation22_spill]]  ;;  %s419_s17 = scalar_lea.vmem [#allocation2], %s5675_s29 }
  0x34   : > { %s428_s16 = sshll.u32 %s419_s17, 4  ;;  %p9430_p13 = pnand %p8859_p12, %p46_p10  ;;  %s429_s16 = int_to_ptr.vmem [resolvable:$true] %s428_s16 }
  0x35   : > { %s438_s27 = sand.u32 1, %s9239_s20   ;;  %s416_s30 = scalar_lea.sflag [#allocation3], %s9423_s12 }
  0x36   : > { %p9129_p2 = pneg %p9430_p13 }
  0x39   : > { %s425_s13 = scalar_lea.hbm %s9787_s0, %s8170_s2  ;;  %s9132_s3 = scalar_lea.hbm %s9787_s0, 128 }
  0x3a   : > { %s426_s5 = sshll.u32 %s425_s13, 4  ;;  %s427_s5 = int_to_ptr.hbm [resolvable:$true] %s426_s5 }
  0x3b   : > { %s9125_s28 = sshra.s32 %s427_s5, 4  ;;  %s9126_s28 = int_to_ptr.hbm [resolvable:$true] %s9125_s28 }
  0x3c   : > { %s9127_s14 = scalar_lea.hbm %s9126_s28, 64  ;;  %p9133_p6 = scmp.lt.s32.totalorder %s9126_s28, %s9787_s0 }
  0x3d   : > { %p9128_p0 = scmp.ne.s32.totalorder %s9126_s28, %s9127_s14  ;;  %p9134_p7 = scmp.lt.s32.totalorder %s9132_s3, %s9127_s14 }
  0x3f   : > { %p9130_p4 = pnand %p9129_p2, %p9128_p0  ;;  %p9135_p8 = por %p9134_p7, %p9133_p6 }
  0x41   : > { %p9131_p5 = pneg %p9130_p4 }
  0x43   : > { %p9136_p9 = pnand %p9135_p8, %p9131_p5 }
  0x45   : > { %9139 = shalt.err (!%p9136_p9)
}
  0x46   : > { %s9252_s17 = smov 512   ;;  %s9253_s4 = smov 32  }
  0x47   : > { %8848 = dma.hbm_to_vmem [thread:$0]  (!%p9430_p13), %s427_s5, 1024, %s429_s16, %s416_s30, %s9252_s17, %s9252_s17, %s9253_s4  }
  0x48   : > { %s5679_s7 = sshll.u32 %s9423_s12, 4  ;;  %s8172_s8 = sshll.u32 %s9239_s20, 4 }
  0x49   : > { %s448_s9 = scalar_lea.hbm %s9758_s1, %s8172_s8  ;;  %s442_s15 = scalar_lea.vmem [#allocation4], %s5679_s7 }
  0x4a   : > { %s451_s28 = sshll.u32 %s442_s15, 4  ;;  %s449_s14 = sshll.u32 %s448_s9, 4  ;;  %s452_s28 = int_to_ptr.vmem [resolvable:$true] %s451_s28  ;;  %s450_s14 = int_to_ptr.hbm [resolvable:$true] %s449_s14 }
  0x4b   : > { %s439_s3 = scalar_lea.sflag [#allocation5], %s438_s27  ;;  %s9155_s13 = sshra.s32 %s450_s14, 4  ;;  %s9156_s13 = int_to_ptr.hbm [resolvable:$true] %s9155_s13 }
  0x4c   : > { %s9157_s0 = scalar_lea.hbm %s9156_s13, 16  ;;  %s9162_s12 = scalar_lea.hbm %s9758_s1, 32 }
  0x4d   : > { %p9158_p10 = scmp.ne.s32.totalorder %s9156_s13, %s9157_s0  ;;  %p9163_p4 = scmp.lt.s32.totalorder %s9156_s13, %s9758_s1 }
  0x4e   : > { %p9164_p5 = scmp.lt.s32.totalorder %s9162_s12, %s9157_s0 }
  0x4f   : > { %p9160_p12 = pnand %p9158_p10, %p9129_p2 }
  0x50   : > { %p9165_p6 = por %p9164_p5, %p9163_p4 }
  0x51   : > { %p9161_p0 = pneg %p9160_p12 }
  0x53   : > { %p9166_p7 = pnand %p9165_p6, %p9161_p0 }
  0x55   : > { %9169 = shalt.err (!%p9166_p7)
}
  0x56   : > { %s9254_s7 = smov 128   ;;  %s9255_s9 = smov 8  }
  0x57   : > { %8851 = dma.hbm_to_vmem [thread:$0]  (!%p9430_p13), %s450_s14, 256, %s452_s28, %s439_s3, %s9254_s7, %s9254_s7, %s9255_s9  }
  0x58   : > { %463 = sbr.rel (%p9345_p3) target bundleno = 1148 (0x47c), region = 64  ;;  %s465_s5 = sand.u32 (!%p9345_p3), 1, %s9231_s18  }
  0x59   : > { %s5684_s27 = sshll.u32 (!%p9345_p3), %s465_s5, 6  ;;  %s466_s30 = scalar_lea.sflag (!%p9345_p3), [#allocation3], %s465_s5 }
  0x5a   : > { %s9468_s17 = scalar_lea.vmem (!%p9345_p3), [#allocation2], %s5684_s27 }
  0x5d   : > { %9202 = dma.done.wait (%p9417_p11), %s466_s30, 1024  }
  0x5e   : > { %9204 = vsyncadd (%p9417_p11), %s466_s30, 4294966272  ;;  %s475_s0 = sand.u32 1, %s9340_s24   ;;  %s5685_s23 = sshll.u32 %s465_s5, 4 }
  0x5f   : > { %s476_s29 = scalar_lea.sflag [#allocation5], %s475_s0  ;;  %s9475_s2 = scalar_lea.vmem [#allocation4], %s5685_s23 }
  0x60   : > { %9206 = dma.done.wait (%p9417_p11), %s476_s29, 256  }
  0x61   : > { %9208 = vsyncadd (%p9417_p11), %s476_s29, 4294967040 }
  0x62   : > { %9210 = dma.done.wait (%p51_p1), [#allocation5], 32768  }
  0x63   : > { %9212 = vsyncadd (%p51_p1), [#allocation5], 4294934528 }
  0x64   : > { %9214 = dma.done.wait (%p51_p1), [#allocation8], 8256  }
  0x65   : > { %9216 = vsyncadd (%p51_p1), [#allocation8], 4294959040 }
  0x66   : > { %9218 = dma.done.wait (%p51_p1), [#allocation11], 32768  }
  0x67   : > { %9220 = vsyncadd (%p51_p1), [#allocation11], 4294934528 }
  0x68   : > { %9222 = dma.done.wait (%p51_p1), [#allocation14], 4160  }
  0x69   : > { %9224 = vsyncadd (%p51_p1), [#allocation14], 4294963136  ;;  %v5817_v0 = vld [vmem:[#allocation7 + $0xe0] sm:$0xf]  ;;  %v8469_v1 = vld [vmem:[#allocation7 + $0xec] sm:$0xf0] }
  0x6a   : > { %v5945_v2 = vld [vmem:[#allocation7 + $0x1e0] sm:$0xf]  ;;  %v5818_v3 = vor.u32 %v8469_v1, %v5817_v0  ;;  %v8501_v4 = vld [vmem:[#allocation7 + $0x1ec] sm:$0xf0]  ;;  %v8467_v5 = vld [vmem:[#allocation7 + $0xe4] sm:$0xf] }
  0x6b   : > { %v5819_v6 = vld [vmem:[#allocation7 + $0xf0] sm:$0xf0]  ;;  %v5946_v7 = vor.u32 %v8501_v4, %v5945_v2  ;;  %v8499_v9 = vld [vmem:[#allocation7 + $0x1e4] sm:$0xf]  ;;  %v5801_v11 = vld [vmem:[#allocation7 + $0xc0] sm:$0xf] }
  0x6c   : > { %v5822_v8 = vor.u32 %v8467_v5, %v5819_v6  ;;  %v5947_v10 = vld [vmem:[#allocation7 + $0x1f0] sm:$0xf0]  ;;  %1227 = vmatpush.bf16.msra.mxu0 %v5818_v3  ;;  %v8465_v13 = vld [vmem:[#allocation7 + $0xcc] sm:$0xf0]  ;;  %v5929_v14 = vld [vmem:[#allocation7 + $0x1c0] sm:$0xf] }
  0x6d   : > { %v5950_v12 = vor.u32 %v8499_v9, %v5947_v10  ;;  %v8497_v15 = vld [vmem:[#allocation7 + $0x1cc] sm:$0xf0]  ;;  %1241 = vmatpush.bf16.msra.mxu1 %v5946_v7  ;;  %v5802_v16 = vor.u32 %v8465_v13, %v5801_v11  ;;  %v8463_v18 = vld [vmem:[#allocation7 + $0xc4] sm:$0xf]  ;;  %v5803_v19 = vld [vmem:[#allocation7 + $0xd0] sm:$0xf0] }
  0x6e   : > { %1255 = vmatpush.bf16.msra.mxu2 %v5822_v8  ;;  %v5930_v17 = vor.u32 %v8497_v15, %v5929_v14  ;;  %v8495_v20 = vld [vmem:[#allocation7 + $0x1c4] sm:$0xf]  ;;  %v5806_v21 = vor.u32 %v8463_v18, %v5803_v19  ;;  %v5931_v22 = vld [vmem:[#allocation7 + $0x1d0] sm:$0xf0]  ;;  %v5785_v23 = vld [vmem:[#allocation7 + $0xa0] sm:$0xf] }
  0x6f   : > { %1269 = vmatpush.bf16.msra.mxu3 %v5950_v12  ;;  %v8461_v24 = vld [vmem:[#allocation7 + $0xac] sm:$0xf0]  ;;  %v5934_v25 = vor.u32 %v8495_v20, %v5931_v22  ;;  %v5913_v26 = vld [vmem:[#allocation7 + $0x1a0] sm:$0xf]  ;;  %v8459_v28 = vld [vmem:[#allocation7 + $0xa4] sm:$0xf] }
  0x70   : > { %v8493_v27 = vld [vmem:[#allocation7 + $0x1ac] sm:$0xf0]  ;;  %1228 = vmatpush.bf16.msra.mxu0 %v5802_v16  ;;  %v5786_v29 = vor.u32 %v8461_v24, %v5785_v23  ;;  %v5787_v30 = vld [vmem:[#allocation7 + $0xb0] sm:$0xf0]  ;;  %v8491_v31 = vld [vmem:[#allocation7 + $0x1a4] sm:$0xf] }
  0x71   : > { %v5915_v32 = vld [vmem:[#allocation7 + $0x1b0] sm:$0xf0]  ;;  %1242 = vmatpush.bf16.msra.mxu1 %v5930_v17  ;;  %v5914_v33 = vor.u32 %v8493_v27, %v5913_v26  ;;  %v5790_v34 = vor.u32 %v8459_v28, %v5787_v30  ;;  %v5769_v35 = vld [vmem:[#allocation7 + $0x80] sm:$0xf]  ;;  %v8457_v36 = vld [vmem:[#allocation7 + $0x8c] sm:$0xf0] }
  0x72   : > { %1256 = vmatpush.bf16.msra.mxu2 %v5806_v21  ;;  %v5897_v37 = vld [vmem:[#allocation7 + $0x180] sm:$0xf]  ;;  %v5918_v38 = vor.u32 %v8491_v31, %v5915_v32  ;;  %v8489_v39 = vld [vmem:[#allocation7 + $0x18c] sm:$0xf0]  ;;  %v8455_v40 = vld [vmem:[#allocation7 + $0x84] sm:$0xf]  ;;  %v5770_v44 = vor.u32 %v8457_v36, %v5769_v35 }
  0x73   : > { %1270 = vmatpush.bf16.msra.mxu3 %v5934_v25  ;;  %v5771_v41 = vld [vmem:[#allocation7 + $0x90] sm:$0xf0]  ;;  %v8487_v42 = vld [vmem:[#allocation7 + $0x184] sm:$0xf]  ;;  %v5898_v45 = vor.u32 %v8489_v39, %v5897_v37  ;;  %v5753_v47 = vld [vmem:[#allocation7 + $0x60] sm:$0xf] }
  0x74   : > { %v5899_v43 = vld [vmem:[#allocation7 + $0x190] sm:$0xf0]  ;;  %1229 = vmatpush.bf16.msra.mxu0 %v5786_v29  ;;  %v5774_v46 = vor.u32 %v8455_v40, %v5771_v41  ;;  %v8453_v48 = vld [vmem:[#allocation7 + $0x6c] sm:$0xf0]  ;;  %v5881_v49 = vld [vmem:[#allocation7 + $0x160] sm:$0xf] }
  0x75   : > { %1243 = vmatpush.bf16.msra.mxu1 %v5914_v33  ;;  %v5902_v50 = vor.u32 %v8487_v42, %v5899_v43  ;;  %v8485_v51 = vld [vmem:[#allocation7 + $0x16c] sm:$0xf0]  ;;  %v8451_v52 = vld [vmem:[#allocation7 + $0x64] sm:$0xf]  ;;  %v5755_v53 = vld [vmem:[#allocation7 + $0x70] sm:$0xf0]  ;;  %v5754_v56 = vor.u32 %v8453_v48, %v5753_v47 }
  0x76   : > { %1257 = vmatpush.bf16.msra.mxu2 %v5790_v34  ;;  %v8483_v54 = vld [vmem:[#allocation7 + $0x164] sm:$0xf]  ;;  %v5883_v55 = vld [vmem:[#allocation7 + $0x170] sm:$0xf0]  ;;  %v5882_v57 = vor.u32 %v8485_v51, %v5881_v49  ;;  %v5758_v58 = vor.u32 %v8451_v52, %v5755_v53  ;;  %v5737_v59 = vld [vmem:[#allocation7 + $0x40] sm:$0xf] }
  0x77   : > { %1271 = vmatpush.bf16.msra.mxu3 %v5918_v38  ;;  %v8449_v60 = vld [vmem:[#allocation7 + $0x4c] sm:$0xf0]  ;;  %v5865_v61 = vld [vmem:[#allocation7 + $0x140] sm:$0xf]  ;;  %v5886_v62 = vor.u32 %v8483_v54, %v5883_v55  ;;  %v8447_v0 = vld [vmem:[#allocation7 + $0x44] sm:$0xf] }
  0x78   : > { %1230 = vmatpush.bf16.msra.mxu0 %v5770_v44  ;;  %v8481_v63 = vld [vmem:[#allocation7 + $0x14c] sm:$0xf0]  ;;  %v5739_v1 = vld [vmem:[#allocation7 + $0x50] sm:$0xf0]  ;;  %v8479_v2 = vld [vmem:[#allocation7 + $0x144] sm:$0xf]  ;;  %v5738_v4 = vor.u32 %v8449_v60, %v5737_v59 }
  0x79   : > { %1244 = vmatpush.bf16.msra.mxu1 %v5898_v45  ;;  %v5867_v3 = vld [vmem:[#allocation7 + $0x150] sm:$0xf0]  ;;  %v5866_v5 = vor.u32 %v8481_v63, %v5865_v61  ;;  %v5742_v6 = vor.u32 %v8447_v0, %v5739_v1  ;;  %v5721_v7 = vld [vmem:[#allocation7 + $0x20] sm:$0xf]  ;;  %v8445_v8 = vld [vmem:[#allocation7 + $0x2c] sm:$0xf0] }
  0x7a   : > { %1258 = vmatpush.bf16.msra.mxu2 %v5774_v46  ;;  %v5849_v9 = vld [vmem:[#allocation7 + $0x120] sm:$0xf]  ;;  %v5870_v10 = vor.u32 %v8479_v2, %v5867_v3  ;;  %v8477_v11 = vld [vmem:[#allocation7 + $0x12c] sm:$0xf0]  ;;  %v8443_v12 = vld [vmem:[#allocation7 + $0x24] sm:$0xf]  ;;  %v5722_v16 = vor.u32 %v8445_v8, %v5721_v7 }
  0x7b   : > { %1272 = vmatpush.bf16.msra.mxu3 %v5902_v50  ;;  %v5723_v13 = vld [vmem:[#allocation7 + $0x30] sm:$0xf0]  ;;  %v8475_v14 = vld [vmem:[#allocation7 + $0x124] sm:$0xf]  ;;  %v5705_v17 = vld [vmem:[#allocation7] sm:$0xf]  ;;  %v5850_v19 = vor.u32 %v8477_v11, %v5849_v9 }
  0x7c   : > { %1231 = vmatpush.bf16.msra.mxu0 %v5754_v56  ;;  %v5851_v15 = vld [vmem:[#allocation7 + $0x130] sm:$0xf0]  ;;  %v8441_v18 = vld [vmem:[#allocation7 + $0xc] sm:$0xf0]  ;;  %v5726_v20 = vor.u32 %v8443_v12, %v5723_v13  ;;  %v5833_v21 = vld [vmem:[#allocation7 + $0x100] sm:$0xf] }
  0x7d   : > { %1245 = vmatpush.bf16.msra.mxu1 %v5882_v57  ;;  %v8473_v22 = vld [vmem:[#allocation7 + $0x10c] sm:$0xf0]  ;;  %v8439_v23 = vld [vmem:[#allocation7 + $0x4] sm:$0xf]  ;;  %v5854_v24 = vor.u32 %v8475_v14, %v5851_v15  ;;  %v5707_v25 = vld [vmem:[#allocation7 + $0x10] sm:$0xf0]  ;;  %v5706_v31 = vor.u32 %v8441_v18, %v5705_v17 }
  0x7e   : > { %1259 = vmatpush.bf16.msra.mxu2 %v5758_v58  ;;  %v8471_v26 = vld [vmem:[#allocation7 + $0x104] sm:$0xf]  ;;  %v5835_v27 = vld [vmem:[#allocation7 + $0x110] sm:$0xf0]  ;;  %v5825_v28 = vld [vmem:[#allocation7 + $0xe8] sm:$0xf]  ;;  %v5834_v35 = vor.u32 %v8473_v22, %v5833_v21  ;;  %v5710_v36 = vor.u32 %v8439_v23, %v5707_v25 }
  0x7f   : > { %1273 = vmatpush.bf16.msra.mxu3 %v5886_v62  ;;  %v8470_v29 = vld [vmem:[#allocation7 + $0xf4] sm:$0xf0]  ;;  %v5953_v30 = vld [vmem:[#allocation7 + $0x1e8] sm:$0xf]  ;;  %v8468_v33 = vld [vmem:[#allocation7 + $0xec] sm:$0xf]  ;;  %v5838_v39 = vor.u32 %v8471_v26, %v5835_v27 }
  0x80   : > { %1232 = vmatpush.bf16.msra.mxu0 %v5738_v4  ;;  %v8502_v32 = vld [vmem:[#allocation7 + $0x1f4] sm:$0xf0]  ;;  %v5827_v34 = vld [vmem:[#allocation7 + $0xf8] sm:$0xf0]  ;;  %v8500_v37 = vld [vmem:[#allocation7 + $0x1ec] sm:$0xf]  ;;  %v5826_v40 = vor.u32 %v8470_v29, %v5825_v28 }
  0x81   : > { %1246 = vmatpush.bf16.msra.mxu1 %v5866_v5  ;;  %v5955_v38 = vld [vmem:[#allocation7 + $0x1f8] sm:$0xf0]  ;;  %v5954_v41 = vor.u32 %v8502_v32, %v5953_v30  ;;  %v5830_v42 = vor.u32 %v8468_v33, %v5827_v34  ;;  %v5809_v43 = vld [vmem:[#allocation7 + $0xc8] sm:$0xf]  ;;  %v8466_v44 = vld [vmem:[#allocation7 + $0xd4] sm:$0xf0] }
  0x82   : > { %1260 = vmatpush.bf16.msra.mxu2 %v5742_v6  ;;  %v5937_v45 = vld [vmem:[#allocation7 + $0x1c8] sm:$0xf]  ;;  %v5958_v46 = vor.u32 %v8500_v37, %v5955_v38  ;;  %v8498_v47 = vld [vmem:[#allocation7 + $0x1d4] sm:$0xf0]  ;;  %v8464_v48 = vld [vmem:[#allocation7 + $0xcc] sm:$0xf]  ;;  %v5810_v52 = vor.u32 %v8466_v44, %v5809_v43 }
  0x83   : > { %1274 = vmatpush.bf16.msra.mxu3 %v5870_v10  ;;  %v5811_v49 = vld [vmem:[#allocation7 + $0xd8] sm:$0xf0]  ;;  %v8496_v50 = vld [vmem:[#allocation7 + $0x1cc] sm:$0xf]  ;;  %v5938_v53 = vor.u32 %v8498_v47, %v5937_v45  ;;  %v5793_v55 = vld [vmem:[#allocation7 + $0xa8] sm:$0xf] }
  0x84   : > { %1233 = vmatpush.bf16.msra.mxu0 %v5722_v16  ;;  %v5939_v51 = vld [vmem:[#allocation7 + $0x1d8] sm:$0xf0]  ;;  %v5814_v54 = vor.u32 %v8464_v48, %v5811_v49  ;;  %v8462_v56 = vld [vmem:[#allocation7 + $0xb4] sm:$0xf0]  ;;  %v5921_v57 = vld [vmem:[#allocation7 + $0x1a8] sm:$0xf] }
  0x85   : > { %1247 = vmatpush.bf16.msra.mxu1 %v5850_v19  ;;  %v5942_v58 = vor.u32 %v8496_v50, %v5939_v51  ;;  %v8494_v59 = vld [vmem:[#allocation7 + $0x1b4] sm:$0xf0]  ;;  %v8460_v60 = vld [vmem:[#allocation7 + $0xac] sm:$0xf]  ;;  %v5795_v61 = vld [vmem:[#allocation7 + $0xb8] sm:$0xf0]  ;;  %v5794_v1 = vor.u32 %v8462_v56, %v5793_v55 }
  0x86   : > { %1261 = vmatpush.bf16.msra.mxu2 %v5726_v20  ;;  %v8492_v62 = vld [vmem:[#allocation7 + $0x1ac] sm:$0xf]  ;;  %v5923_v63 = vld [vmem:[#allocation7 + $0x1b8] sm:$0xf0]  ;;  %v5777_v0 = vld [vmem:[#allocation7 + $0x88] sm:$0xf]  ;;  %v5922_v5 = vor.u32 %v8494_v59, %v5921_v57  ;;  %v5798_v6 = vor.u32 %v8460_v60, %v5795_v61 }
  0x87   : > { %1275 = vmatpush.bf16.msra.mxu3 %v5854_v24  ;;  %v8458_v2 = vld [vmem:[#allocation7 + $0x94] sm:$0xf0]  ;;  %v5697_v3 = vld [vmem:[%s9475_s2] sm:$0xf]  ;;  %v5905_v7 = vld [vmem:[#allocation7 + $0x188] sm:$0xf]  ;;  %v5926_v11 = vor.u32 %v8492_v62, %v5923_v63 }
  0x88   : > { %1234 = vmatpush.bf16.msra.mxu0 %v5706_v31  ;;  %v8438_v4 = vld [vmem:[%s9475_s2 + $0x4] sm:$0xf0]  ;;  %v8437_v9 = vld [vmem:[%s9475_s2 + $0x4] sm:$0xf]  ;;  %v5699_v10 = vld [vmem:[%s9475_s2 + $0x8] sm:$0xf0]  ;;  %v5778_v18 = vor.u32 %v8458_v2, %v5777_v0 }
  0x89   : > { %1248 = vmatpush.bf16.msra.mxu1 %v5834_v35  ;;  %v9499_v8 = vor.u32 %v8438_v4, %v5697_v3  ;;  %v8490_v12 = vld [vmem:[#allocation7 + $0x194] sm:$0xf0]  ;;  %v8456_v13 = vld [vmem:[#allocation7 + $0x8c] sm:$0xf]  ;;  %v5779_v14 = vld [vmem:[#allocation7 + $0x98] sm:$0xf0]  ;;  %v9503_v15 = vor.u32 %v8437_v9, %v5699_v10 }
  0x8a   : > { %1262 = vmatpush.bf16.msra.mxu2 %v5710_v36  ;;  %v8488_v16 = vld [vmem:[#allocation7 + $0x18c] sm:$0xf]  ;;  %v5907_v17 = vld [vmem:[#allocation7 + $0x198] sm:$0xf0]  ;;  %v5906_v19 = vor.u32 %v8490_v12, %v5905_v7  ;;  %v5782_v20 = vor.u32 %v8456_v13, %v5779_v14  ;;  %v5761_v21 = vld [vmem:[#allocation7 + $0x68] sm:$0xf] }
  0x8b   : > { %1276 = vmatpush.bf16.msra.mxu3 %v5838_v39  ;;  %1235 = vmatmul.bf16.vlgmr.msra.gmra.mxu0 %v9499_v8  ;;  %v8454_v22 = vld [vmem:[#allocation7 + $0x74] sm:$0xf0]  ;;  %v5889_v23 = vld [vmem:[#allocation7 + $0x168] sm:$0xf]  ;;  %v5910_v24 = vor.u32 %v8488_v16, %v5907_v17  ;;  %v8452_v26 = vld [vmem:[#allocation7 + $0x6c] sm:$0xf] }
  0x8c   : > { %1283 = vmatpush.bf16.msrb.mxu0 %v5826_v40  ;;  %v8486_v25 = vld [vmem:[#allocation7 + $0x174] sm:$0xf0]  ;;  %v5763_v27 = vld [vmem:[#allocation7 + $0x78] sm:$0xf0]  ;;  %1249 = vmatmul.bf16.vlgmr.msra.gmra.mxu1 %v9503_v15  ;;  %v8484_v28 = vld [vmem:[#allocation7 + $0x16c] sm:$0xf]  ;;  %v5762_v30 = vor.u32 %v8454_v22, %v5761_v21 }
  0x8d   : > { %1297 = vmatpush.bf16.msrb.mxu1 %v5954_v41  ;;  %1263 = vmatmul.bf16.vlgmr.msra.gmra.mxu2 %v9499_v8  ;;  %v5891_v29 = vld [vmem:[#allocation7 + $0x178] sm:$0xf0]  ;;  %v5890_v31 = vor.u32 %v8486_v25, %v5889_v23  ;;  %v5766_v32 = vor.u32 %v8452_v26, %v5763_v27  ;;  %v5745_v33 = vld [vmem:[#allocation7 + $0x48] sm:$0xf]  ;;  %v8450_v34 = vld [vmem:[#allocation7 + $0x54] sm:$0xf0] }
  0x8e   : > { %1311 = vmatpush.bf16.msrb.mxu2 %v5830_v42  ;;  %1277 = vmatmul.bf16.vlgmr.msra.gmra.mxu3 %v9503_v15  ;;  %v5873_v35 = vld [vmem:[#allocation7 + $0x148] sm:$0xf]  ;;  %v5894_v36 = vor.u32 %v8484_v28, %v5891_v29  ;;  %v8482_v37 = vld [vmem:[#allocation7 + $0x154] sm:$0xf0]  ;;  %v8448_v38 = vld [vmem:[#allocation7 + $0x4c] sm:$0xf]  ;;  %v5746_v42 = vor.u32 %v8450_v34, %v5745_v33 }
  0x8f   : > { %1325 = vmatpush.bf16.msrb.mxu3 %v5958_v46  ;;  %v5747_v39 = vld [vmem:[#allocation7 + $0x58] sm:$0xf0]  ;;  %v8480_v40 = vld [vmem:[#allocation7 + $0x14c] sm:$0xf]  ;;  %v5874_v43 = vor.u32 %v8482_v37, %v5873_v35  ;;  %v5729_v45 = vld [vmem:[#allocation7 + $0x28] sm:$0xf] }
  0x90   : > { %1284 = vmatpush.bf16.msrb.mxu0 %v5810_v52  ;;  %v5875_v41 = vld [vmem:[#allocation7 + $0x158] sm:$0xf0]  ;;  %v5750_v44 = vor.u32 %v8448_v38, %v5747_v39  ;;  %v8446_v46 = vld [vmem:[#allocation7 + $0x34] sm:$0xf0]  ;;  %v5857_v47 = vld [vmem:[#allocation7 + $0x128] sm:$0xf] }
  0x91   : > { %1298 = vmatpush.bf16.msrb.mxu1 %v5938_v53  ;;  %v5878_v48 = vor.u32 %v8480_v40, %v5875_v41  ;;  %v8478_v49 = vld [vmem:[#allocation7 + $0x134] sm:$0xf0]  ;;  %v8444_v50 = vld [vmem:[#allocation7 + $0x2c] sm:$0xf]  ;;  %v5731_v51 = vld [vmem:[#allocation7 + $0x38] sm:$0xf0] }
  0x92   : > { %1312 = vmatpush.bf16.msrb.mxu2 %v5814_v54  ;;  %v8476_v52 = vld [vmem:[#allocation7 + $0x12c] sm:$0xf]  ;;  %v5859_v53 = vld [vmem:[#allocation7 + $0x138] sm:$0xf0]  ;;  %v5730_v54 = vor.u32 %v8446_v46, %v5729_v45  ;;  %v5713_v55 = vld [vmem:[#allocation7 + $0x8] sm:$0xf]  ;;  %v5858_v57 = vor.u32 %v8478_v49, %v5857_v47 }
  0x93   : > { %1326 = vmatpush.bf16.msrb.mxu3 %v5942_v58  ;;  %v8442_v56 = vld [vmem:[#allocation7 + $0x14] sm:$0xf0]  ;;  %v5734_v58 = vor.u32 %v8444_v50, %v5731_v51  ;;  %v5841_v59 = vld [vmem:[#allocation7 + $0x108] sm:$0xf]  ;;  %v8440_v61 = vld [vmem:[#allocation7 + $0xc] sm:$0xf]  ;;  %v5862_v62 = vor.u32 %v8476_v52, %v5859_v53 }
  0x94   : > { %1285 = vmatpush.bf16.msrb.mxu0 %v5794_v1  ;;  %v8474_v60 = vld [vmem:[#allocation7 + $0x114] sm:$0xf0]  ;;  %v5715_v63 = vld [vmem:[#allocation7 + $0x18] sm:$0xf0]  ;;  %v8472_v0 = vld [vmem:[#allocation7 + $0x10c] sm:$0xf] }
  0x95   : > { %1299 = vmatpush.bf16.msrb.mxu1 %v5922_v5  ;;  %v5843_v1 = vld [vmem:[#allocation7 + $0x118] sm:$0xf0]  ;;  %v6105_v2 = vld [vmem:[#allocation6 + $0xe0] sm:$0xf]  ;;  %v8211_v3 = vld [vmem:[#allocation6 + $0xec] sm:$0xf0]  ;;  %v5714_v5 = vor.u32 %v8442_v56, %v5713_v55  ;;  %v5842_v10 = vor.u32 %v8474_v60, %v5841_v59 }
  0x96   : > { %1313 = vmatpush.bf16.msrb.mxu2 %v5798_v6  ;;  %v6233_v4 = vld [vmem:[#allocation6 + $0x1e0] sm:$0xf]  ;;  %v8243_v6 = vld [vmem:[#allocation6 + $0x1ec] sm:$0xf0]  ;;  %v5846_v14 = vor.u32 %v8472_v0, %v5843_v1  ;;  %v6106_v16 = vor.u32 %v8211_v3, %v6105_v2  ;;  %s5693_s15 = sshll.u32 %s9340_s24, 1  ;;  %vm5505_vm0 = vcmask 7168  }
  0x97   : > { %1327 = vmatpush.bf16.msrb.mxu3 %v5926_v11  ;;  %v6361_v7 = vld [vmem:[#allocation6 + $0x2e0] sm:$0xf]  ;;  %v8275_v9 = vld [vmem:[#allocation6 + $0x2ec] sm:$0xf0]  ;;  %v5718_v11 = vor.u32 %v8440_v61, %v5715_v63  ;;  %v6234_v17 = vor.u32 %v8243_v6, %v6233_v4  ;;  %p562_p1 = scmp.lt.s32.totalorder %s5693_s15, 3 }
  0x98   : > { %1286 = vmatpush.bf16.msrb.mxu0 %v5778_v18  ;;  %v6489_v12 = vld [vmem:[#allocation6 + $0x3e0] sm:$0xf]  ;;  %v8307_v13 = vld [vmem:[#allocation6 + $0x3ec] sm:$0xf0]  ;;  %v6362_v18 = vor.u32 %v8275_v9, %v6361_v7 }
  0x99   : > { %1300 = vmatpush.bf16.msrb.mxu1 %v5906_v19  ;;  %v6089_v19 = vld [vmem:[#allocation6 + $0xc0] sm:$0xf]  ;;  %v6490_v22 = vor.u32 %v8307_v13, %v6489_v12  ;;  %v8239_v23 = vld [vmem:[#allocation6 + $0x1cc] sm:$0xf0]  ;;  %s9794_s15 = smov (!%p562_p1, %s5693_s15), 3 }
  0x9a   : > { %1314 = vmatpush.bf16.msrb.mxu2 %v5782_v20  ;;  %v8207_v20 = vld [vmem:[#allocation6 + $0xcc] sm:$0xf0]  ;;  %v6217_v21 = vld [vmem:[#allocation6 + $0x1c0] sm:$0xf]  ;;  %s5694_s3 = sshll.u32 %s9794_s15, 3 }
  0x9b   : > { %1328 = vmatpush.bf16.msrb.mxu3 %v5910_v24  ;;  %v6345_v24 = vld [vmem:[#allocation6 + $0x2c0] sm:$0xf]  ;;  %v8271_v25 = vld [vmem:[#allocation6 + $0x2cc] sm:$0xf0]  ;;  %v6090_v28 = vor.u32 %v8207_v20, %v6089_v19  ;;  %v6218_v29 = vor.u32 %v8239_v23, %v6217_v21  ;;  %s565_s20 = scalar_lea.vmem %s9768_s11, %s5694_s3 }
  0x9c   : > { %1287 = vmatpush.bf16.msrb.mxu0 %v5762_v30  ;;  %v6473_v26 = vld [vmem:[#allocation6 + $0x3c0] sm:$0xf]  ;;  %v8303_v27 = vld [vmem:[#allocation6 + $0x3cc] sm:$0xf0]  ;;  %v6346_v30 = vor.u32 %v8271_v25, %v6345_v24 }
  0x9d   : > { %1301 = vmatpush.bf16.msrb.mxu1 %v5890_v31  ;;  %v6073_v31 = vld [vmem:[#allocation6 + $0xa0] sm:$0xf]  ;;  %v6474_v34 = vor.u32 %v8303_v27, %v6473_v26  ;;  %v8235_v35 = vld [vmem:[#allocation6 + $0x1ac] sm:$0xf0] }
  0x9e   : > { %1315 = vmatpush.bf16.msrb.mxu2 %v5766_v32  ;;  %v8203_v32 = vld [vmem:[#allocation6 + $0xac] sm:$0xf0]  ;;  %v6201_v33 = vld [vmem:[#allocation6 + $0x1a0] sm:$0xf] }
  0x9f   : > { %1329 = vmatpush.bf16.msrb.mxu3 %v5894_v36  ;;  %v6329_v36 = vld [vmem:[#allocation6 + $0x2a0] sm:$0xf]  ;;  %v8267_v37 = vld [vmem:[#allocation6 + $0x2ac] sm:$0xf0]  ;;  %v6074_v40 = vor.u32 %v8203_v32, %v6073_v31  ;;  %v6202_v41 = vor.u32 %v8235_v35, %v6201_v33 }
  0xa0   : > { %1288 = vmatpush.bf16.msrb.mxu0 %v5746_v42  ;;  %v6457_v38 = vld [vmem:[#allocation6 + $0x3a0] sm:$0xf]  ;;  %v8299_v39 = vld [vmem:[#allocation6 + $0x3ac] sm:$0xf0]  ;;  %v6330_v42 = vor.u32 %v8267_v37, %v6329_v36 }
  0xa1   : > { %1302 = vmatpush.bf16.msrb.mxu1 %v5874_v43  ;;  %v6057_v43 = vld [vmem:[#allocation6 + $0x80] sm:$0xf]  ;;  %v6458_v46 = vor.u32 %v8299_v39, %v6457_v38  ;;  %v8231_v47 = vld [vmem:[#allocation6 + $0x18c] sm:$0xf0] }
  0xa2   : > { %1316 = vmatpush.bf16.msrb.mxu2 %v5750_v44  ;;  %v8199_v44 = vld [vmem:[#allocation6 + $0x8c] sm:$0xf0]  ;;  %v6185_v45 = vld [vmem:[#allocation6 + $0x180] sm:$0xf] }
  0xa3   : > { %1330 = vmatpush.bf16.msrb.mxu3 %v5878_v48  ;;  %v6313_v48 = vld [vmem:[#allocation6 + $0x280] sm:$0xf]  ;;  %v8263_v49 = vld [vmem:[#allocation6 + $0x28c] sm:$0xf0]  ;;  %v6058_v51 = vor.u32 %v8199_v44, %v6057_v43  ;;  %v6186_v52 = vor.u32 %v8231_v47, %v6185_v45 }
  0xa4   : > { %1289 = vmatpush.bf16.msrb.mxu0 %v5730_v54  ;;  %v6441_v50 = vld [vmem:[#allocation6 + $0x380] sm:$0xf]  ;;  %v8195_v54 = vld [vmem:[#allocation6 + $0x6c] sm:$0xf0] }
  0xa5   : > { %1303 = vmatpush.bf16.msrb.mxu1 %v5858_v57  ;;  %v6041_v53 = vld [vmem:[#allocation6 + $0x60] sm:$0xf]  ;;  %v8227_v57 = vld [vmem:[#allocation6 + $0x16c] sm:$0xf0] }
  0xa6   : > { %1317 = vmatpush.bf16.msrb.mxu2 %v5734_v58  ;;  %v6169_v55 = vld [vmem:[#allocation6 + $0x160] sm:$0xf]  ;;  %v8259_v59 = vld [vmem:[#allocation6 + $0x26c] sm:$0xf0] }
  0xa7   : > { %1331 = vmatpush.bf16.msrb.mxu3 %v5862_v62  ;;  %v6297_v58 = vld [vmem:[#allocation6 + $0x260] sm:$0xf]  ;;  %v8291_v61 = vld [vmem:[#allocation6 + $0x36c] sm:$0xf0]  ;;  %v6042_v62 = vor.u32 %v8195_v54, %v6041_v53  ;;  %v6170_v63 = vor.u32 %v8227_v57, %v6169_v55  ;;  %v8174_v53 = vld [vmem:[%s9468_s17 + $0xc] sm:$0xf] }
  0xa8   : > { %1290 = vmatpush.bf16.msrb.mxu0 %v5714_v5  ;;  %v6425_v60 = vld [vmem:[#allocation6 + $0x360] sm:$0xf]  ;;  %v6298_v0 = vor.u32 %v8259_v59, %v6297_v58  ;;  %v8191_v2 = vld [vmem:[#allocation6 + $0x4c] sm:$0xf0]  ;;  %v5971_v54 = vld [vmem:[%s9468_s17 + $0x28] sm:$0xf0] }
  0xa9   : > { %1304 = vmatpush.bf16.msrb.mxu1 %v5842_v10  ;;  %v6025_v1 = vld [vmem:[#allocation6 + $0x40] sm:$0xf]  ;;  %v6426_v4 = vor.u32 %v8291_v61, %v6425_v60  ;;  %v8223_v5 = vld [vmem:[#allocation6 + $0x14c] sm:$0xf0] }
  0xaa   : > { %1318 = vmatpush.bf16.msrb.mxu2 %v5718_v11  ;;  %v6153_v3 = vld [vmem:[#allocation6 + $0x140] sm:$0xf]  ;;  %v8255_v7 = vld [vmem:[#allocation6 + $0x24c] sm:$0xf0]  ;;  %v6026_v11 = vor.u32 %v8191_v2, %v6025_v1 }
  0xab   : > { %1332 = vmatpush.bf16.msrb.mxu3 %v5846_v14  ;;  %1291 = vmatmul.bf16.vlgmr.msrb.gmra.mxu0 %v9499_v8  ;;  %v6281_v6 = vld [vmem:[#allocation6 + $0x240] sm:$0xf]  ;;  %v8287_v10 = vld [vmem:[#allocation6 + $0x34c] sm:$0xf0]  ;;  %v6154_v13 = vor.u32 %v8223_v5, %v6153_v3  ;;  %v9527_v5 = vor.u32 %v8174_v53, %v5971_v54 }
  0xac   : > { %2659 = vmatpush.bf16.msra.mxu0 %v6106_v16  ;;  %1305 = vmatmul.bf16.vlgmr.msrb.gmra.mxu1 %v9503_v15  ;;  %v6409_v9 = vld [vmem:[#allocation6 + $0x340] sm:$0xf]  ;;  %v6282_v14 = vor.u32 %v8255_v7, %v6281_v6  ;;  %v8187_v16 = vld [vmem:[#allocation6 + $0x2c] sm:$0xf0] }
  0xad   : > { %2673 = vmatpush.bf16.msra.mxu1 %v6234_v17  ;;  %1319 = vmatmul.bf16.vlgmr.msrb.gmra.mxu2 %v9499_v8  ;;  %v8295_v8 = vld [vmem:[#allocation6 + $0x38c] sm:$0xf0]  ;;  %v6009_v12 = vld [vmem:[#allocation6 + $0x20] sm:$0xf]  ;;  %v6410_v19 = vor.u32 %v8287_v10, %v6409_v9 }
  0xae   : > { %2687 = vmatpush.bf16.msra.mxu2 %v6362_v18  ;;  %1333 = vmatmul.bf16.vlgmr.msrb.gmra.mxu3 %v9503_v15  ;;  %v6314_v15 = vor.u32 %v8263_v49, %v6313_v48  ;;  %v6442_v56 = vor.u32 %v8295_v8, %v6441_v50  ;;  %v6137_v17 = vld [vmem:[#allocation6 + $0x120] sm:$0xf]  ;;  %v8219_v18 = vld [vmem:[#allocation6 + $0x12c] sm:$0xf0]  ;;  %v6010_v26 = vor.u32 %v8187_v16, %v6009_v12  ;;  %v5969_v49 = vld [vmem:[%s9468_s17 + $0x8] sm:$0xf] }
  0xaf   : > { %2701 = vmatpush.bf16.msra.mxu3 %v6490_v22  ;;  %v6265_v20 = vld [vmem:[#allocation6 + $0x220] sm:$0xf]  ;;  %v8251_v21 = vld [vmem:[#allocation6 + $0x22c] sm:$0xf0]  ;;  %v6138_v31 = vor.u32 %v8219_v18, %v6137_v17  ;;  %v8178_v50 = vld [vmem:[%s9468_s17 + $0x24] sm:$0xf0] }
  0xb0   : > { %2660 = vmatpush.bf16.msra.mxu0 %v6090_v28  ;;  %v6393_v22 = vld [vmem:[#allocation6 + $0x320] sm:$0xf]  ;;  %v8283_v23 = vld [vmem:[#allocation6 + $0x32c] sm:$0xf0]  ;;  %v6266_v32 = vor.u32 %v8251_v21, %v6265_v20  ;;  %v8173_v8 = vld [vmem:[%s9468_s17 + $0x4] sm:$0xf]  ;;  %v9523_v1 = vor.u32 %v8178_v50, %v5969_v49 }
  0xb1   : > { %2674 = vmatpush.bf16.msra.mxu1 %v6218_v29  ;;  %v5993_v24 = vld [vmem:[#allocation6] sm:$0xf]  ;;  %v8183_v25 = vld [vmem:[#allocation6 + $0xc] sm:$0xf0]  ;;  %v6394_v37 = vor.u32 %v8283_v23, %v6393_v22 }
  0xb2   : > { %2688 = vmatpush.bf16.msra.mxu2 %v6346_v30  ;;  %v6121_v27 = vld [vmem:[#allocation6 + $0x100] sm:$0xf]  ;;  %v8215_v28 = vld [vmem:[#allocation6 + $0x10c] sm:$0xf0]  ;;  %v5994_v43 = vor.u32 %v8183_v25, %v5993_v24 }
  0xb3   : > { %2702 = vmatpush.bf16.msra.mxu3 %v6474_v34  ;;  %v6249_v29 = vld [vmem:[#allocation6 + $0x200] sm:$0xf]  ;;  %v8247_v30 = vld [vmem:[#allocation6 + $0x20c] sm:$0xf0]  ;;  %v6122_v47 = vor.u32 %v8215_v28, %v6121_v27 }
  0xb4   : > { %2661 = vmatpush.bf16.msra.mxu0 %v6074_v40  ;;  %v6377_v33 = vld [vmem:[#allocation6 + $0x300] sm:$0xf]  ;;  %v8279_v34 = vld [vmem:[#allocation6 + $0x30c] sm:$0xf0]  ;;  %v6250_v48 = vor.u32 %v8247_v30, %v6249_v29 }
  0xb5   : > { %2675 = vmatpush.bf16.msra.mxu1 %v6202_v41  ;;  %v6617_v35 = vld [vmem:[#allocation6 + $0x4e0] sm:$0xf]  ;;  %v8339_v36 = vld [vmem:[#allocation6 + $0x4ec] sm:$0xf0] }
  0xb6   : > { %2689 = vmatpush.bf16.msra.mxu2 %v6330_v42  ;;  %v6745_v38 = vld [vmem:[#allocation6 + $0x5e0] sm:$0xf]  ;;  %v8371_v39 = vld [vmem:[#allocation6 + $0x5ec] sm:$0xf0] }
  0xb7   : > { %2703 = vmatpush.bf16.msra.mxu3 %v6458_v46  ;;  %v6873_v40 = vld [vmem:[#allocation6 + $0x6e0] sm:$0xf]  ;;  %v8403_v41 = vld [vmem:[#allocation6 + $0x6ec] sm:$0xf0]  ;;  %v6746_v55 = vor.u32 %v8371_v39, %v6745_v38 }
  0xb8   : > { %2662 = vmatpush.bf16.msra.mxu0 %v6058_v51  ;;  %v7001_v42 = vld [vmem:[#allocation6 + $0x7e0] sm:$0xf]  ;;  %v8435_v44 = vld [vmem:[#allocation6 + $0x7ec] sm:$0xf0]  ;;  %v6378_v51 = vor.u32 %v8279_v34, %v6377_v33 }
  0xb9   : > { %2676 = vmatpush.bf16.msra.mxu1 %v6186_v52  ;;  %v5961_v45 = vld [vmem:[%s9468_s17] sm:$0xf]  ;;  %v6618_v52 = vor.u32 %v8339_v36, %v6617_v35  ;;  %v8335_v58 = vld [vmem:[#allocation6 + $0x4cc] sm:$0xf0]  ;;  %v7002_v60 = vor.u32 %v8435_v44, %v7001_v42 }
  0xba   : > { %2690 = vmatpush.bf16.msra.mxu2 %v6314_v15  ;;  %v8177_v46 = vld [vmem:[%s9468_s17 + $0x1c] sm:$0xf0]  ;;  %v5963_v15 = vld [vmem:[%s9468_s17 + $0x20] sm:$0xf0]  ;;  %v8395_v17 = vld [vmem:[#allocation6 + $0x6ac] sm:$0xf0] }
  0xbb   : > { %2704 = vmatpush.bf16.msra.mxu3 %v6442_v56  ;;  %v6874_v56 = vor.u32 %v8403_v41, %v6873_v40  ;;  %v6601_v57 = vld [vmem:[#allocation6 + $0x4c0] sm:$0xf]  ;;  %v9521_v61 = vor.u32 %v8177_v46, %v5961_v45  ;;  %v9525_v2 = vor.u32 %v8173_v8, %v5963_v15  ;;  %v8327_v24 = vld [vmem:[#allocation6 + $0x48c] sm:$0xf0] }
  0xbc   : > { %2663 = vmatpush.bf16.msra.mxu0 %v6042_v62  ;;  %v6729_v59 = vld [vmem:[#allocation6 + $0x5c0] sm:$0xf]  ;;  %v8367_v62 = vld [vmem:[#allocation6 + $0x5cc] sm:$0xf0]  ;;  %v6602_v6 = vor.u32 %v8335_v58, %v6601_v57 }
  0xbd   : > { %2677 = vmatpush.bf16.msra.mxu1 %v6170_v63  ;;  %v6857_v63 = vld [vmem:[#allocation6 + $0x6c0] sm:$0xf]  ;;  %v6730_v7 = vor.u32 %v8367_v62, %v6729_v59  ;;  %v8359_v27 = vld [vmem:[#allocation6 + $0x58c] sm:$0xf0] }
  0xbe   : > { %2691 = vmatpush.bf16.msra.mxu2 %v6298_v0  ;;  %v8399_v0 = vld [vmem:[#allocation6 + $0x6cc] sm:$0xf0]  ;;  %v6985_v3 = vld [vmem:[#allocation6 + $0x7c0] sm:$0xf] }
  0xbf   : > { %2705 = vmatpush.bf16.msra.mxu3 %v6426_v4  ;;  %v8431_v4 = vld [vmem:[#allocation6 + $0x7cc] sm:$0xf0]  ;;  %v6858_v9 = vor.u32 %v8399_v0, %v6857_v63  ;;  %v6585_v10 = vld [vmem:[#allocation6 + $0x4a0] sm:$0xf] }
  0xc0   : > { %2664 = vmatpush.bf16.msra.mxu0 %v6026_v11  ;;  %v8331_v11 = vld [vmem:[#allocation6 + $0x4ac] sm:$0xf0]  ;;  %v6713_v12 = vld [vmem:[#allocation6 + $0x5a0] sm:$0xf] }
  0xc1   : > { %2678 = vmatpush.bf16.msra.mxu1 %v6154_v13  ;;  %v6986_v13 = vor.u32 %v8431_v4, %v6985_v3  ;;  %v6841_v16 = vld [vmem:[#allocation6 + $0x6a0] sm:$0xf]  ;;  %v6586_v20 = vor.u32 %v8331_v11, %v6585_v10  ;;  %v8391_v29 = vld [vmem:[#allocation6 + $0x68c] sm:$0xf0] }
  0xc2   : > { %2692 = vmatpush.bf16.msra.mxu2 %v6282_v14  ;;  %v8363_v14 = vld [vmem:[#allocation6 + $0x5ac] sm:$0xf0]  ;;  %v6969_v18 = vld [vmem:[#allocation6 + $0x7a0] sm:$0xf]  ;;  %v6842_v22 = vor.u32 %v8395_v17, %v6841_v16 }
  0xc3   : > { %2706 = vmatpush.bf16.msra.mxu3 %v6410_v19  ;;  %v8427_v19 = vld [vmem:[#allocation6 + $0x7ac] sm:$0xf0]  ;;  %v6714_v21 = vor.u32 %v8363_v14, %v6713_v12  ;;  %v6569_v23 = vld [vmem:[#allocation6 + $0x480] sm:$0xf] }
  0xc4   : > { %2665 = vmatpush.bf16.msra.mxu0 %v6010_v26  ;;  %v6697_v25 = vld [vmem:[#allocation6 + $0x580] sm:$0xf]  ;;  %v6970_v26 = vor.u32 %v8427_v19, %v6969_v18  ;;  %v8323_v36 = vld [vmem:[#allocation6 + $0x46c] sm:$0xf0]  ;;  %v8209_v19 = vld [vmem:[#allocation6 + $0xe4] sm:$0xf] }
  0xc5   : > { %2679 = vmatpush.bf16.msra.mxu1 %v6138_v31  ;;  %v6825_v28 = vld [vmem:[#allocation6 + $0x680] sm:$0xf]  ;;  %v8423_v31 = vld [vmem:[#allocation6 + $0x78c] sm:$0xf0]  ;;  %v6698_v33 = vor.u32 %v8359_v27, %v6697_v25  ;;  %v6363_v25 = vld [vmem:[#allocation6 + $0x2f0] sm:$0xf0] }
  0xc6   : > { %2693 = vmatpush.bf16.msra.mxu2 %v6266_v32  ;;  %v6953_v30 = vld [vmem:[#allocation6 + $0x780] sm:$0xf]  ;;  %v6570_v32 = vor.u32 %v8327_v24, %v6569_v23  ;;  %v6826_v34 = vor.u32 %v8391_v29, %v6825_v28  ;;  %v8355_v39 = vld [vmem:[#allocation6 + $0x56c] sm:$0xf0]  ;;  %v6235_v23 = vld [vmem:[#allocation6 + $0x1f0] sm:$0xf0] }
  0xc7   : > { %2707 = vmatpush.bf16.msra.mxu3 %v6394_v37  ;;  %v6553_v35 = vld [vmem:[#allocation6 + $0x460] sm:$0xf]  ;;  %v6954_v38 = vor.u32 %v8423_v31, %v6953_v30  ;;  %v8387_v41 = vld [vmem:[#allocation6 + $0x66c] sm:$0xf0]  ;;  %v8273_v24 = vld [vmem:[#allocation6 + $0x2e4] sm:$0xf] }
  0xc8   : > { %2666 = vmatpush.bf16.msra.mxu0 %v5994_v43  ;;  %v6681_v37 = vld [vmem:[#allocation6 + $0x560] sm:$0xf]  ;;  %v8419_v43 = vld [vmem:[#allocation6 + $0x76c] sm:$0xf0]  ;;  %v6554_v44 = vor.u32 %v8323_v36, %v6553_v35  ;;  %v6491_v28 = vld [vmem:[#allocation6 + $0x3f0] sm:$0xf0] }
  0xc9   : > { %2680 = vmatpush.bf16.msra.mxu1 %v6122_v47  ;;  %v6809_v40 = vld [vmem:[#allocation6 + $0x660] sm:$0xf]  ;;  %v6682_v45 = vor.u32 %v8355_v39, %v6681_v37  ;;  %v8351_v8 = vld [vmem:[#allocation6 + $0x54c] sm:$0xf0]  ;;  %v8175_v35 = vld [vmem:[%s9468_s17 + $0x14] sm:$0xf] }
  0xca   : > { %2694 = vmatpush.bf16.msra.mxu2 %v6250_v48  ;;  %v6937_v42 = vld [vmem:[#allocation6 + $0x760] sm:$0xf]  ;;  %v6810_v46 = vor.u32 %v8387_v41, %v6809_v40  ;;  %v8319_v48 = vld [vmem:[#allocation6 + $0x44c] sm:$0xf0]  ;;  %v8176_v39 = vld [vmem:[%s9468_s17 + $0x1c] sm:$0xf] }
  0xcb   : > { %2708 = vmatpush.bf16.msra.mxu3 %v6378_v51  ;;  %2667 = vmatmul.bf16.vlgmr.msra.gmra.mxu0 %v9521_v61  ;;  %v6537_v47 = vld [vmem:[#allocation6 + $0x440] sm:$0xf]  ;;  %v6938_v50 = vor.u32 %v8419_v43, %v6937_v42  ;;  %v8415_v53 = vld [vmem:[#allocation6 + $0x74c] sm:$0xf0]  ;;  %v5987_v40 = vld [vmem:[%s9468_s17 + $0x38] sm:$0xf0]  ;;  %v6366_v42 = vor.u32 %v8273_v24, %v6363_v25 }
  0xcc   : > { %2715 = vmatpush.bf16.msrb.mxu0 %v6618_v52  ;;  %2681 = vmatmul.bf16.vlgmr.msra.gmra.mxu1 %v9525_v2  ;;  %v6665_v49 = vld [vmem:[#allocation6 + $0x540] sm:$0xf]  ;;  %v8383_v52 = vld [vmem:[#allocation6 + $0x64c] sm:$0xf0]  ;;  %v6538_v54 = vor.u32 %v8319_v48, %v6537_v47  ;;  %v8205_v43 = vld [vmem:[#allocation6 + $0xc4] sm:$0xf] }
  0xcd   : > { %2729 = vmatpush.bf16.msrb.mxu1 %v6746_v55  ;;  %2695 = vmatmul.bf16.vlgmr.msra.gmra.mxu2 %v9523_v1  ;;  %v6793_v51 = vld [vmem:[#allocation6 + $0x640] sm:$0xf]  ;;  %v8315_v58 = vld [vmem:[#allocation6 + $0x42c] sm:$0xf0]  ;;  %v6219_v48 = vld [vmem:[#allocation6 + $0x1d0] sm:$0xf0] }
  0xce   : > { %2743 = vmatpush.bf16.msrb.mxu2 %v6874_v56  ;;  %2709 = vmatmul.bf16.vlgmr.msra.gmra.mxu3 %v9527_v5  ;;  %v6921_v15 = vld [vmem:[#allocation6 + $0x740] sm:$0xf]  ;;  %v6666_v56 = vor.u32 %v8351_v8, %v6665_v49  ;;  %v6794_v57 = vor.u32 %v8383_v52, %v6793_v51  ;;  %v8379_v0 = vld [vmem:[#allocation6 + $0x62c] sm:$0xf0]  ;;  %v8269_v49 = vld [vmem:[#allocation6 + $0x2c4] sm:$0xf] }
  0xcf   : > { %2757 = vmatpush.bf16.msrb.mxu3 %v7002_v60  ;;  %v6521_v55 = vld [vmem:[#allocation6 + $0x420] sm:$0xf]  ;;  %v8347_v60 = vld [vmem:[#allocation6 + $0x52c] sm:$0xf0]  ;;  %v6922_v62 = vor.u32 %v8415_v53, %v6921_v15  ;;  %v8301_v52 = vld [vmem:[#allocation6 + $0x3c4] sm:$0xf]  ;;  %v9547_v53 = vor.u32 %v8176_v39, %v5987_v40 }
  0xd0   : > { %2716 = vmatpush.bf16.msrb.mxu0 %v6602_v6  ;;  %v6649_v59 = vld [vmem:[#allocation6 + $0x520] sm:$0xf]  ;;  %v8411_v4 = vld [vmem:[#allocation6 + $0x72c] sm:$0xf0]  ;;  %v6475_v15 = vld [vmem:[#allocation6 + $0x3d0] sm:$0xf0] }
  0xd1   : > { %2730 = vmatpush.bf16.msrb.mxu1 %v6730_v7  ;;  %v6777_v63 = vld [vmem:[#allocation6 + $0x620] sm:$0xf]  ;;  %v8311_v7 = vld [vmem:[#allocation6 + $0x40c] sm:$0xf0]  ;;  %v6650_v14 = vor.u32 %v8347_v60, %v6649_v59  ;;  %v8233_v59 = vld [vmem:[#allocation6 + $0x1a4] sm:$0xf]  ;;  %v6478_v60 = vor.u32 %v8301_v52, %v6475_v15 }
  0xd2   : > { %2744 = vmatpush.bf16.msrb.mxu2 %v6858_v9  ;;  %v6905_v3 = vld [vmem:[#allocation6 + $0x720] sm:$0xf]  ;;  %v6522_v9 = vor.u32 %v8315_v58, %v6521_v55  ;;  %v8343_v11 = vld [vmem:[#allocation6 + $0x50c] sm:$0xf0]  ;;  %v6778_v16 = vor.u32 %v8379_v0, %v6777_v63  ;;  %v6075_v58 = vld [vmem:[#allocation6 + $0xb0] sm:$0xf0] }
  0xd3   : > { %2758 = vmatpush.bf16.msrb.mxu3 %v6986_v13  ;;  %v6505_v6 = vld [vmem:[#allocation6 + $0x400] sm:$0xf]  ;;  %v8375_v13 = vld [vmem:[#allocation6 + $0x60c] sm:$0xf0]  ;;  %v8265_v63 = vld [vmem:[#allocation6 + $0x2a4] sm:$0xf] }
  0xd4   : > { %2717 = vmatpush.bf16.msrb.mxu0 %v6586_v20  ;;  %v6633_v10 = vld [vmem:[#allocation6 + $0x500] sm:$0xf]  ;;  %v8407_v18 = vld [vmem:[#allocation6 + $0x70c] sm:$0xf0]  ;;  %v6906_v20 = vor.u32 %v8411_v4, %v6905_v3  ;;  %v6506_v27 = vor.u32 %v8311_v7, %v6505_v6  ;;  %v6331_v0 = vld [vmem:[#allocation6 + $0x2b0] sm:$0xf0] }
  0xd5   : > { %2731 = vmatpush.bf16.msrb.mxu1 %v6714_v21  ;;  %v6761_v12 = vld [vmem:[#allocation6 + $0x600] sm:$0xf]  ;;  %v6107_v21 = vld [vmem:[#allocation6 + $0xf0] sm:$0xf0]  ;;  %v5977_v29 = vld [vmem:[%s9468_s17 + $0x10] sm:$0xf]  ;;  %v6634_v31 = vor.u32 %v8343_v11, %v6633_v10 }
  0xd6   : > { %2745 = vmatpush.bf16.msrb.mxu2 %v6842_v22  ;;  %v6889_v17 = vld [vmem:[#allocation6 + $0x700] sm:$0xf]  ;;  %v8241_v22 = vld [vmem:[#allocation6 + $0x1e4] sm:$0xf]  ;;  %v8179_v30 = vld [vmem:[%s9468_s17 + $0x2c] sm:$0xf0]  ;;  %v6110_v37 = vor.u32 %v8209_v19, %v6107_v21 }
  0xd7   : > { %2759 = vmatpush.bf16.msrb.mxu3 %v6970_v26  ;;  %v8305_v26 = vld [vmem:[#allocation6 + $0x3e4] sm:$0xf]  ;;  %v6890_v36 = vor.u32 %v8407_v18, %v6889_v17  ;;  %v6238_v41 = vor.u32 %v8241_v22, %v6235_v23  ;;  %v9541_v47 = vor.u32 %v8179_v30, %v5977_v29  ;;  %v6459_v4 = vld [vmem:[#allocation6 + $0x3b0] sm:$0xf0] }
  0xd8   : > { %2718 = vmatpush.bf16.msrb.mxu0 %v6570_v32  ;;  %v6762_v32 = vor.u32 %v8375_v13, %v6761_v12  ;;  %v8297_v3 = vld [vmem:[#allocation6 + $0x3a4] sm:$0xf]  ;;  %v6059_v11 = vld [vmem:[#allocation6 + $0x90] sm:$0xf0] }
  0xd9   : > { %2732 = vmatpush.bf16.msrb.mxu1 %v6698_v33  ;;  %v5985_v33 = vld [vmem:[%s9468_s17 + $0x18] sm:$0xf]  ;;  %v8197_v10 = vld [vmem:[#allocation6 + $0x84] sm:$0xf]  ;;  %v6462_v13 = vor.u32 %v8297_v3, %v6459_v4  ;;  %v6315_v17 = vld [vmem:[#allocation6 + $0x290] sm:$0xf0] }
  0xda   : > { %2746 = vmatpush.bf16.msrb.mxu2 %v6826_v34  ;;  %v8180_v34 = vld [vmem:[%s9468_s17 + $0x34] sm:$0xf0]  ;;  %v8229_v12 = vld [vmem:[#allocation6 + $0x184] sm:$0xf]  ;;  %v6443_v19 = vld [vmem:[#allocation6 + $0x390] sm:$0xf0] }
  0xdb   : > { %2760 = vmatpush.bf16.msrb.mxu3 %v6954_v38  ;;  %v5979_v38 = vld [vmem:[%s9468_s17 + $0x30] sm:$0xf0]  ;;  %v9543_v8 = vor.u32 %v8180_v34, %v5985_v33  ;;  %v8293_v18 = vld [vmem:[#allocation6 + $0x384] sm:$0xf] }
  0xdc   : > { %2719 = vmatpush.bf16.msrb.mxu0 %v6554_v44  ;;  %v6091_v44 = vld [vmem:[#allocation6 + $0xd0] sm:$0xf0]  ;;  %v9545_v51 = vor.u32 %v8175_v35, %v5979_v38  ;;  %v8193_v23 = vld [vmem:[#allocation6 + $0x64] sm:$0xf] }
  0xdd   : > { %2733 = vmatpush.bf16.msrb.mxu1 %v6682_v45  ;;  %v8237_v45 = vld [vmem:[#allocation6 + $0x1c4] sm:$0xf]  ;;  %v6043_v24 = vld [vmem:[#allocation6 + $0x70] sm:$0xf0] }
  0xde   : > { %2747 = vmatpush.bf16.msrb.mxu2 %v6810_v46  ;;  %v6494_v46 = vor.u32 %v8305_v26, %v6491_v28  ;;  %v6222_v55 = vor.u32 %v8237_v45, %v6219_v48  ;;  %v8225_v25 = vld [vmem:[#allocation6 + $0x164] sm:$0xf]  ;;  %v6446_v26 = vor.u32 %v8293_v18, %v6443_v19  ;;  %v6299_v29 = vld [vmem:[#allocation6 + $0x270] sm:$0xf0] }
  0xdf   : > { %2761 = vmatpush.bf16.msrb.mxu3 %v6938_v50  ;;  %v6347_v50 = vld [vmem:[#allocation6 + $0x2d0] sm:$0xf0]  ;;  %v8257_v28 = vld [vmem:[#allocation6 + $0x264] sm:$0xf] }
  0xe0   : > { %2720 = vmatpush.bf16.msrb.mxu0 %v6538_v54  ;;  %v6094_v54 = vor.u32 %v8205_v43, %v6091_v44  ;;  %v8289_v30 = vld [vmem:[#allocation6 + $0x364] sm:$0xf]  ;;  %v6302_v34 = vor.u32 %v8257_v28, %v6299_v29  ;;  %v6155_v39 = vld [vmem:[#allocation6 + $0x150] sm:$0xf0] }
  0xe1   : > { %2734 = vmatpush.bf16.msrb.mxu1 %v6666_v56  ;;  %v6350_v56 = vor.u32 %v8269_v49, %v6347_v50  ;;  %v8189_v35 = vld [vmem:[#allocation6 + $0x44] sm:$0xf]  ;;  %v6411_v43 = vld [vmem:[#allocation6 + $0x350] sm:$0xf0] }
  0xe2   : > { %2748 = vmatpush.bf16.msrb.mxu2 %v6794_v57  ;;  %v8201_v57 = vld [vmem:[#allocation6 + $0xa4] sm:$0xf]  ;;  %v6011_v49 = vld [vmem:[#allocation6 + $0x30] sm:$0xf0] }
  0xe3   : > { %2762 = vmatpush.bf16.msrb.mxu3 %v6922_v62  ;;  %v6203_v62 = vld [vmem:[#allocation6 + $0x1b0] sm:$0xf0]  ;;  %v6078_v6 = vor.u32 %v8201_v57, %v6075_v58  ;;  %v8253_v40 = vld [vmem:[#allocation6 + $0x244] sm:$0xf] }
  0xe4   : > { %2721 = vmatpush.bf16.msrb.mxu0 %v6522_v9  ;;  %v6206_v7 = vor.u32 %v8233_v59, %v6203_v62  ;;  %v6334_v9 = vor.u32 %v8265_v63, %v6331_v0  ;;  %v8185_v48 = vld [vmem:[#allocation6 + $0x24] sm:$0xf]  ;;  %v6139_v15 = vld [vmem:[#allocation6 + $0x130] sm:$0xf0] }
  0xe5   : > { %2735 = vmatpush.bf16.msrb.mxu1 %v6650_v14  ;;  %v6187_v14 = vld [vmem:[#allocation6 + $0x190] sm:$0xf0]  ;;  %v8217_v50 = vld [vmem:[#allocation6 + $0x124] sm:$0xf]  ;;  %v6014_v58 = vor.u32 %v8185_v48, %v6011_v49 }
  0xe6   : > { %2749 = vmatpush.bf16.msrb.mxu2 %v6778_v16  ;;  %v8261_v16 = vld [vmem:[#allocation6 + $0x284] sm:$0xf]  ;;  %v6190_v21 = vor.u32 %v8229_v12, %v6187_v14  ;;  %v6395_v57 = vld [vmem:[#allocation6 + $0x330] sm:$0xf0]  ;;  %v6142_v62 = vor.u32 %v8217_v50, %v6139_v15 }
  0xe7   : > { %2763 = vmatpush.bf16.msrb.mxu3 %v6906_v20  ;;  %v6062_v20 = vor.u32 %v8197_v10, %v6059_v11  ;;  %v6318_v22 = vor.u32 %v8261_v16, %v6315_v17  ;;  %v8181_v59 = vld [vmem:[#allocation6 + $0x4] sm:$0xf]  ;;  %v6123_v3 = vld [vmem:[#allocation6 + $0x110] sm:$0xf0] }
  0xe8   : > { %2722 = vmatpush.bf16.msrb.mxu0 %v6506_v27  ;;  %v6171_v27 = vld [vmem:[#allocation6 + $0x170] sm:$0xf0]  ;;  %v8213_v0 = vld [vmem:[#allocation6 + $0x104] sm:$0xf] }
  0xe9   : > { %2736 = vmatpush.bf16.msrb.mxu1 %v6634_v31  ;;  %v6427_v31 = vld [vmem:[#allocation6 + $0x370] sm:$0xf0]  ;;  %v6174_v33 = vor.u32 %v8225_v25, %v6171_v27  ;;  %v8245_v4 = vld [vmem:[#allocation6 + $0x204] sm:$0xf]  ;;  %v6126_v19 = vor.u32 %v8213_v0, %v6123_v3 }
  0xea   : > { %2750 = vmatpush.bf16.msrb.mxu2 %v6762_v32  ;;  %v6046_v32 = vor.u32 %v8193_v23, %v6043_v24  ;;  %v6430_v38 = vor.u32 %v8289_v30, %v6427_v31  ;;  %v6379_v10 = vld [vmem:[#allocation6 + $0x310] sm:$0xf0]  ;;  %v8337_v11 = vld [vmem:[#allocation6 + $0x4e4] sm:$0xf] }
  0xeb   : > { %2764 = vmatpush.bf16.msrb.mxu3 %v6890_v36  ;;  %2723 = vmatmul.bf16.vlgmr.msrb.gmra.mxu0 %v9541_v47  ;;  %v6027_v36 = vld [vmem:[#allocation6 + $0x50] sm:$0xf0]  ;;  %v8401_v17 = vld [vmem:[#allocation6 + $0x6e4] sm:$0xf] }
  0xec   : > { %2771 = vmatpush.bf16.msra.mxu0 %v6110_v37  ;;  %2737 = vmatmul.bf16.vlgmr.msrb.gmra.mxu1 %v9545_v51  ;;  %v8221_v37 = vld [vmem:[#allocation6 + $0x144] sm:$0xf]  ;;  %v6030_v44 = vor.u32 %v8189_v35, %v6027_v36  ;;  %v6619_v12 = vld [vmem:[#allocation6 + $0x4f0] sm:$0xf0] }
  0xed   : > { %2785 = vmatpush.bf16.msra.mxu1 %v6238_v41  ;;  %2751 = vmatmul.bf16.vlgmr.msrb.gmra.mxu2 %v9543_v8  ;;  %v6283_v41 = vld [vmem:[#allocation6 + $0x250] sm:$0xf0]  ;;  %v6158_v45 = vor.u32 %v8221_v37, %v6155_v39  ;;  %v6622_v24 = vor.u32 %v8337_v11, %v6619_v12  ;;  %v8333_v27 = vld [vmem:[#allocation6 + $0x4c4] sm:$0xf] }
  0xee   : > { %2799 = vmatpush.bf16.msra.mxu2 %v6366_v42  ;;  %2765 = vmatmul.bf16.vlgmr.msrb.gmra.mxu3 %v9547_v53  ;;  %v8285_v42 = vld [vmem:[#allocation6 + $0x344] sm:$0xf]  ;;  %v6747_v16 = vld [vmem:[#allocation6 + $0x5f0] sm:$0xf0] }
  0xef   : > { %2813 = vmatpush.bf16.msra.mxu3 %v6494_v46  ;;  %v6286_v46 = vor.u32 %v8253_v40, %v6283_v41  ;;  %v6414_v52 = vor.u32 %v8285_v42, %v6411_v43  ;;  %v6875_v18 = vld [vmem:[#allocation6 + $0x6f0] sm:$0xf0]  ;;  %v8365_v29 = vld [vmem:[#allocation6 + $0x5c4] sm:$0xf] }
  0xf0   : > { %2772 = vmatpush.bf16.msra.mxu0 %v6094_v54  ;;  %v8249_v54 = vld [vmem:[#allocation6 + $0x224] sm:$0xf]  ;;  %v6603_v28 = vld [vmem:[#allocation6 + $0x4d0] sm:$0xf0] }
  0xf1   : > { %2786 = vmatpush.bf16.msra.mxu1 %v6222_v55  ;;  %v6267_v55 = vld [vmem:[#allocation6 + $0x230] sm:$0xf0]  ;;  %v6606_v36 = vor.u32 %v8333_v27, %v6603_v28  ;;  %v8329_v39 = vld [vmem:[#allocation6 + $0x4a4] sm:$0xf] }
  0xf2   : > { %2800 = vmatpush.bf16.msra.mxu2 %v6350_v56  ;;  %v8281_v56 = vld [vmem:[#allocation6 + $0x324] sm:$0xf]  ;;  %v6270_v63 = vor.u32 %v8249_v54, %v6267_v55  ;;  %v6731_v31 = vld [vmem:[#allocation6 + $0x5d0] sm:$0xf0] }
  0xf3   : > { %2814 = vmatpush.bf16.msra.mxu3 %v6478_v60  ;;  %v5995_v60 = vld [vmem:[#allocation6 + $0x10] sm:$0xf0]  ;;  %v6734_v37 = vor.u32 %v8365_v29, %v6731_v31  ;;  %v8361_v41 = vld [vmem:[#allocation6 + $0x5a4] sm:$0xf] }
  0xf4   : > { %2773 = vmatpush.bf16.msra.mxu0 %v6078_v6  ;;  %v6398_v6 = vor.u32 %v8281_v56, %v6395_v57  ;;  %v5998_v14 = vor.u32 %v8181_v59, %v5995_v60  ;;  %v6987_v35 = vld [vmem:[#allocation6 + $0x7d0] sm:$0xf0]  ;;  %v8325_v15 = vld [vmem:[#allocation6 + $0x484] sm:$0xf] }
  0xf5   : > { %2787 = vmatpush.bf16.msra.mxu1 %v6206_v7  ;;  %v6251_v7 = vld [vmem:[#allocation6 + $0x210] sm:$0xf0]  ;;  %v8357_v55 = vld [vmem:[#allocation6 + $0x584] sm:$0xf] }
  0xf6   : > { %2801 = vmatpush.bf16.msra.mxu2 %v6334_v9  ;;  %v8277_v9 = vld [vmem:[#allocation6 + $0x304] sm:$0xf]  ;;  %v6587_v40 = vld [vmem:[#allocation6 + $0x4b0] sm:$0xf0] }
  0xf7   : > { %2815 = vmatpush.bf16.msra.mxu3 %v6462_v13  ;;  %v8369_v13 = vld [vmem:[#allocation6 + $0x5e4] sm:$0xf]  ;;  %v6382_v23 = vor.u32 %v8277_v9, %v6379_v10  ;;  %v6715_v43 = vld [vmem:[#allocation6 + $0x5b0] sm:$0xf0]  ;;  %v6590_v49 = vor.u32 %v8329_v39, %v6587_v40 }
  0xf8   : > { %2774 = vmatpush.bf16.msra.mxu0 %v6062_v20  ;;  %v6254_v20 = vor.u32 %v8245_v4, %v6251_v7  ;;  %v6750_v25 = vor.u32 %v8369_v13, %v6747_v16  ;;  %v6971_v48 = vld [vmem:[#allocation6 + $0x7b0] sm:$0xf0]  ;;  %v6718_v50 = vor.u32 %v8361_v41, %v6715_v43  ;;  %v8421_v60 = vld [vmem:[#allocation6 + $0x784] sm:$0xf] }
  0xf9   : > { %2788 = vmatpush.bf16.msra.mxu1 %v6190_v21  ;;  %v8433_v21 = vld [vmem:[#allocation6 + $0x7e4] sm:$0xf]  ;;  %v6571_v54 = vld [vmem:[#allocation6 + $0x490] sm:$0xf0] }
  0xfa   : > { %2802 = vmatpush.bf16.msra.mxu2 %v6318_v22  ;;  %v7003_v22 = vld [vmem:[#allocation6 + $0x7f0] sm:$0xf0]  ;;  %v8321_v4 = vld [vmem:[#allocation6 + $0x464] sm:$0xf] }
  0xfb   : > { %2816 = vmatpush.bf16.msra.mxu3 %v6446_v26  ;;  %v6878_v26 = vor.u32 %v8401_v17, %v6875_v18  ;;  %v7006_v30 = vor.u32 %v8433_v21, %v7003_v22  ;;  %v6699_v57 = vld [vmem:[#allocation6 + $0x590] sm:$0xf0]  ;;  %v8353_v7 = vld [vmem:[#allocation6 + $0x564] sm:$0xf] }
  0xfc   : > { %2775 = vmatpush.bf16.msra.mxu0 %v6046_v32  ;;  %v8397_v32 = vld [vmem:[#allocation6 + $0x6c4] sm:$0xf]  ;;  %v6827_v59 = vld [vmem:[#allocation6 + $0x690] sm:$0xf0]  ;;  %v6702_v0 = vor.u32 %v8357_v55, %v6699_v57 }
  0xfd   : > { %2789 = vmatpush.bf16.msra.mxu1 %v6174_v33  ;;  %v6859_v33 = vld [vmem:[#allocation6 + $0x6d0] sm:$0xf0]  ;;  %v8385_v11 = vld [vmem:[#allocation6 + $0x664] sm:$0xf] }
  0xfe   : > { %2803 = vmatpush.bf16.msra.mxu2 %v6302_v34  ;;  %v8429_v34 = vld [vmem:[#allocation6 + $0x7c4] sm:$0xf]  ;;  %v6683_v10 = vld [vmem:[#allocation6 + $0x570] sm:$0xf0] }
  0xff   : > { %2817 = vmatpush.bf16.msra.mxu3 %v6430_v38  ;;  %v6862_v38 = vor.u32 %v8397_v32, %v6859_v33  ;;  %v6990_v42 = vor.u32 %v8429_v34, %v6987_v35  ;;  %v6811_v12 = vld [vmem:[#allocation6 + $0x670] sm:$0xf0]  ;;  %v8417_v13 = vld [vmem:[#allocation6 + $0x764] sm:$0xf]  ;;  %v6686_v17 = vor.u32 %v8353_v7, %v6683_v10  ;;  %v6497_v10 = vld [vmem:[#allocation6 + $0x3e8] sm:$0xf] }
 0x100   : > { %2776 = vmatpush.bf16.msra.mxu0 %v6030_v44  ;;  %v8393_v44 = vld [vmem:[#allocation6 + $0x6a4] sm:$0xf]  ;;  %v6814_v18 = vor.u32 %v8385_v11, %v6811_v12  ;;  %v6923_v27 = vld [vmem:[#allocation6 + $0x750] sm:$0xf0]  ;;  %v8308_v11 = vld [vmem:[#allocation6 + $0x3f4] sm:$0xf0] }
 0x101   : > { %2790 = vmatpush.bf16.msra.mxu1 %v6158_v45  ;;  %v6843_v45 = vld [vmem:[#allocation6 + $0x6b0] sm:$0xf0]  ;;  %v8349_v21 = vld [vmem:[#allocation6 + $0x544] sm:$0xf] }
 0x102   : > { %2804 = vmatpush.bf16.msra.mxu2 %v6286_v46  ;;  %v8425_v46 = vld [vmem:[#allocation6 + $0x7a4] sm:$0xf]  ;;  %v6523_v35 = vld [vmem:[#allocation6 + $0x430] sm:$0xf0] }
 0x103   : > { %2818 = vmatpush.bf16.msra.mxu3 %v6414_v52  ;;  %v6846_v52 = vor.u32 %v8393_v44, %v6843_v45  ;;  %v6974_v56 = vor.u32 %v8425_v46, %v6971_v48  ;;  %v8313_v34 = vld [vmem:[#allocation6 + $0x424] sm:$0xf]  ;;  %v6779_v40 = vld [vmem:[#allocation6 + $0x630] sm:$0xf0] }
 0x104   : > { %2777 = vmatpush.bf16.msra.mxu0 %v6014_v58  ;;  %v8389_v58 = vld [vmem:[#allocation6 + $0x684] sm:$0xf]  ;;  %v6526_v45 = vor.u32 %v8313_v34, %v6523_v35  ;;  %v6507_v48 = vld [vmem:[#allocation6 + $0x410] sm:$0xf0]  ;;  %v6209_v34 = vld [vmem:[#allocation6 + $0x1a8] sm:$0xf] }
 0x105   : > { %2791 = vmatpush.bf16.msra.mxu1 %v6142_v62  ;;  %v6955_v62 = vld [vmem:[#allocation6 + $0x790] sm:$0xf0]  ;;  %v6830_v3 = vor.u32 %v8389_v58, %v6827_v59  ;;  %v8377_v39 = vld [vmem:[#allocation6 + $0x624] sm:$0xf] }
 0x106   : > { %2805 = vmatpush.bf16.msra.mxu2 %v6270_v63  ;;  %v6574_v63 = vor.u32 %v8325_v15, %v6571_v54  ;;  %v6958_v9 = vor.u32 %v8421_v60, %v6955_v62  ;;  %v8409_v41 = vld [vmem:[#allocation6 + $0x724] sm:$0xf]  ;;  %v6635_v54 = vld [vmem:[#allocation6 + $0x510] sm:$0xf0]  ;;  %v6113_v60 = vld [vmem:[#allocation6 + $0xe8] sm:$0xf] }
 0x107   : > { %2819 = vmatpush.bf16.msra.mxu3 %v6398_v6  ;;  %v6555_v6 = vld [vmem:[#allocation6 + $0x470] sm:$0xf0]  ;;  %v8309_v46 = vld [vmem:[#allocation6 + $0x404] sm:$0xf]  ;;  %v8212_v62 = vld [vmem:[#allocation6 + $0xf4] sm:$0xf0] }
 0x108   : > { %2778 = vmatpush.bf16.msra.mxu0 %v5998_v14  ;;  %v6939_v14 = vld [vmem:[#allocation6 + $0x770] sm:$0xf0]  ;;  %v6558_v16 = vor.u32 %v8321_v4, %v6555_v6  ;;  %v1236_v28 = vpop.f32.mrf.mxu0  ;;  %v8341_v15 = vld [vmem:[#allocation6 + $0x504] sm:$0xf]  ;;  %v6369_v4 = vld [vmem:[#allocation6 + $0x2e8] sm:$0xf] }
 0x109   : > { %2792 = vmatpush.bf16.msra.mxu1 %v6126_v19  ;;  %v8317_v19 = vld [vmem:[#allocation6 + $0x444] sm:$0xf]  ;;  %v6942_v22 = vor.u32 %v8417_v13, %v6939_v14  ;;  %v1250_v29 = vpop.f32.mrf.mxu1  ;;  %v6763_v57 = vld [vmem:[#allocation6 + $0x610] sm:$0xf0]  ;;  %v8276_v6 = vld [vmem:[#allocation6 + $0x2f4] sm:$0xf0]  ;;  %v6638_v7 = vor.u32 %v8341_v15, %v6635_v54  ;;  %v6114_v13 = vor.u32 %v8212_v62, %v6113_v60 }
 0x10a   : > { %2806 = vmatpush.bf16.msra.mxu2 %v6254_v20  ;;  %v6539_v20 = vld [vmem:[#allocation6 + $0x450] sm:$0xf0]  ;;  %v9557_v31 = vadd.f32 %v1250_v29, %v1236_v28  ;;  %v8373_v55 = vld [vmem:[#allocation6 + $0x604] sm:$0xf]  ;;  %v8264_v15 = vld [vmem:[#allocation6 + $0x294] sm:$0xf0] }
 0x10b   : > { %2820 = vmatpush.bf16.msra.mxu3 %v6382_v23  ;;  %2779 = vmatmul.bf16.vlgmr.msra.gmra.mxu0 %v9521_v61  ;;  %v6667_v23 = vld [vmem:[#allocation6 + $0x550] sm:$0xf0]  ;;  %v8405_v58 = vld [vmem:[#allocation6 + $0x704] sm:$0xf]  ;;  %v6449_v54 = vld [vmem:[#allocation6 + $0x388] sm:$0xf] }
 0x10c   : > { %2827 = vmatpush.bf16.msrb.mxu0 %v6622_v24  ;;  %2793 = vmatmul.bf16.vlgmr.msra.gmra.mxu1 %v9525_v2  ;;  %v8381_v24 = vld [vmem:[#allocation6 + $0x644] sm:$0xf]  ;;  %v6670_v32 = vor.u32 %v8349_v21, %v6667_v23  ;;  %v6891_v59 = vld [vmem:[#allocation6 + $0x710] sm:$0xf0]  ;;  %v8240_v21 = vld [vmem:[#allocation6 + $0x1d4] sm:$0xf0] }
 0x10d   : > { %2841 = vmatpush.bf16.msrb.mxu1 %v6750_v25  ;;  %2807 = vmatmul.bf16.vlgmr.msra.gmra.mxu2 %v9523_v1  ;;  %v6795_v25 = vld [vmem:[#allocation6 + $0x650] sm:$0xf0]  ;;  %v6894_v12 = vor.u32 %v8405_v58, %v6891_v59  ;;  %v8272_v23 = vld [vmem:[#allocation6 + $0x2d4] sm:$0xf0] }
 0x10e   : > { %2855 = vmatpush.bf16.msrb.mxu2 %v6878_v26  ;;  %2821 = vmatmul.bf16.vlgmr.msra.gmra.mxu3 %v9527_v5  ;;  %v8413_v26 = vld [vmem:[#allocation6 + $0x744] sm:$0xf]  ;;  %v6798_v33 = vor.u32 %v8381_v24, %v6795_v25  ;;  %v6481_v24 = vld [vmem:[#allocation6 + $0x3c8] sm:$0xf]  ;;  %v8304_v25 = vld [vmem:[#allocation6 + $0x3d4] sm:$0xf0] }
 0x10f   : > { %2869 = vmatpush.bf16.msrb.mxu3 %v7006_v30  ;;  %v6542_v30 = vor.u32 %v8317_v19, %v6539_v20  ;;  %v6225_v19 = vld [vmem:[#allocation6 + $0x1c8] sm:$0xf]  ;;  %v6498_v20 = vor.u32 %v8308_v11, %v6497_v10  ;;  %v6482_v35 = vor.u32 %v8304_v25, %v6481_v24  ;;  %v8260_v11 = vld [vmem:[#allocation6 + $0x274] sm:$0xf0] }
 0x110   : > { %2828 = vmatpush.bf16.msrb.mxu0 %v6606_v36  ;;  %v8345_v36 = vld [vmem:[#allocation6 + $0x524] sm:$0xf]  ;;  %v1264_v43 = vpop.f32.mrf.mxu2  ;;  %v6226_v29 = vor.u32 %v8240_v21, %v6225_v19  ;;  %v6305_v10 = vld [vmem:[#allocation6 + $0x268] sm:$0xf]  ;;  %v8192_v19 = vld [vmem:[#allocation6 + $0x54] sm:$0xf0] }
 0x111   : > { %2842 = vmatpush.bf16.msrb.mxu1 %v6734_v37  ;;  %v6926_v37 = vor.u32 %v8413_v26, %v6923_v27  ;;  %v1278_v44 = vpop.f32.mrf.mxu3  ;;  %v9561_v27 = vpop.f32.mrf.mxu0  ;;  %v8256_v24 = vld [vmem:[#allocation6 + $0x254] sm:$0xf0]  ;;  %v6417_v25 = vld [vmem:[#allocation6 + $0x348] sm:$0xf] }
 0x112   : > { %2856 = vmatpush.bf16.msrb.mxu2 %v6862_v38  ;;  %v6651_v38 = vld [vmem:[#allocation6 + $0x530] sm:$0xf0]  ;;  %v9563_v28 = vpop.f32.mrf.mxu1 }
 0x113   : > { %2870 = vmatpush.bf16.msrb.mxu3 %v6990_v42  ;;  %v6907_v42 = vld [vmem:[#allocation6 + $0x730] sm:$0xf0] }
 0x114   : > { %2829 = vmatpush.bf16.msrb.mxu0 %v6590_v49  ;;  %v9559_v49 = vadd.f32 %v1278_v44, %v1264_v43  ;;  %v6065_v44 = vld [vmem:[#allocation6 + $0x88] sm:$0xf] }
 0x115   : > { %2843 = vmatpush.bf16.msrb.mxu1 %v6718_v50  ;;  %v6654_v50 = vor.u32 %v8345_v36, %v6651_v38  ;;  %v8236_v36 = vld [vmem:[#allocation6 + $0x1b4] sm:$0xf0] }
 0x116   : > { %2857 = vmatpush.bf16.msrb.mxu2 %v6846_v52  ;;  %v6782_v52 = vor.u32 %v8377_v39, %v6779_v40  ;;  %v8268_v38 = vld [vmem:[#allocation6 + $0x2b4] sm:$0xf0]  ;;  %v6465_v39 = vld [vmem:[#allocation6 + $0x3a8] sm:$0xf] }
 0x117   : > { %2871 = vmatpush.bf16.msrb.mxu3 %v6974_v56  ;;  %v6910_v56 = vor.u32 %v8409_v41, %v6907_v42  ;;  %v8300_v40 = vld [vmem:[#allocation6 + $0x3b4] sm:$0xf0]  ;;  %v6210_v42 = vor.u32 %v8236_v36, %v6209_v34  ;;  %v6017_v36 = vld [vmem:[#allocation6 + $0x28] sm:$0xf] }
 0x118   : > { %2830 = vmatpush.bf16.msrb.mxu0 %v6574_v63  ;;  %v6241_v63 = vld [vmem:[#allocation6 + $0x1e8] sm:$0xf] }
 0x119   : > { %2844 = vmatpush.bf16.msrb.mxu1 %v6702_v0  ;;  %v6510_v0 = vor.u32 %v8309_v46, %v6507_v48  ;;  %v6193_v46 = vld [vmem:[#allocation6 + $0x188] sm:$0xf]  ;;  %v6466_v48 = vor.u32 %v8300_v40, %v6465_v39  ;;  %v8220_v40 = vld [vmem:[#allocation6 + $0x134] sm:$0xf0] }
 0x11a   : > { %2858 = vmatpush.bf16.msrb.mxu2 %v6830_v3  ;;  %v8244_v3 = vld [vmem:[#allocation6 + $0x1f4] sm:$0xf0] }
 0x11b   : > { %2872 = vmatpush.bf16.msrb.mxu3 %v6958_v9  ;;  %v6766_v9 = vor.u32 %v8373_v55, %v6763_v57  ;;  %v6242_v14 = vor.u32 %v8244_v3, %v6241_v63  ;;  %v8296_v55 = vld [vmem:[#allocation6 + $0x394] sm:$0xf0]  ;;  %v9571_v57 = vpop.f32.mrf.mxu3 }
 0x11c   : > { %2831 = vmatpush.bf16.msrb.mxu0 %v6558_v16  ;;  %v6370_v16 = vor.u32 %v8276_v6, %v6369_v4  ;;  %v8196_v3 = vld [vmem:[#allocation6 + $0x74] sm:$0xf0]  ;;  %v6177_v4 = vld [vmem:[#allocation6 + $0x168] sm:$0xf] }
 0x11d   : > { %2845 = vmatpush.bf16.msrb.mxu1 %v6686_v17  ;;  %v6097_v17 = vld [vmem:[#allocation6 + $0xc8] sm:$0xf] }
 0x11e   : > { %2859 = vmatpush.bf16.msrb.mxu2 %v6814_v18  ;;  %v8208_v18 = vld [vmem:[#allocation6 + $0xd4] sm:$0xf0] }
 0x11f   : > { %2873 = vmatpush.bf16.msrb.mxu3 %v6942_v22  ;;  %v6353_v22 = vld [vmem:[#allocation6 + $0x2c8] sm:$0xf]  ;;  %v6098_v26 = vor.u32 %v8208_v18, %v6097_v17  ;;  %v6306_v17 = vor.u32 %v8260_v11, %v6305_v10  ;;  %v8404_v10 = vld [vmem:[#allocation6 + $0x6f4] sm:$0xf0] }
 0x120   : > { %2832 = vmatpush.bf16.msrb.mxu0 %v6542_v30  ;;  %v6354_v30 = vor.u32 %v8272_v23, %v6353_v22  ;;  %v6033_v18 = vld [vmem:[#allocation6 + $0x48] sm:$0xf]  ;;  %v8224_v22 = vld [vmem:[#allocation6 + $0x154] sm:$0xf0] }
 0x121   : > { %2846 = vmatpush.bf16.msrb.mxu1 %v6670_v32  ;;  %v6081_v32 = vld [vmem:[#allocation6 + $0xa8] sm:$0xf] }
 0x122   : > { %2860 = vmatpush.bf16.msrb.mxu2 %v6798_v33  ;;  %v8204_v33 = vld [vmem:[#allocation6 + $0xb4] sm:$0xf0]  ;;  %v6289_v23 = vld [vmem:[#allocation6 + $0x248] sm:$0xf] }
 0x123   : > { %2874 = vmatpush.bf16.msrb.mxu3 %v6926_v37  ;;  %v6337_v37 = vld [vmem:[#allocation6 + $0x2a8] sm:$0xf]  ;;  %v6082_v41 = vor.u32 %v8204_v33, %v6081_v32  ;;  %v6034_v32 = vor.u32 %v8192_v19, %v6033_v18 }
 0x124   : > { %2833 = vmatpush.bf16.msrb.mxu0 %v6526_v45  ;;  %v6338_v43 = vor.u32 %v8268_v38, %v6337_v37  ;;  %v8200_v45 = vld [vmem:[#allocation6 + $0x94] sm:$0xf0]  ;;  %v6145_v38 = vld [vmem:[#allocation6 + $0x128] sm:$0xf] }
 0x125   : > { %2847 = vmatpush.bf16.msrb.mxu1 %v6654_v50  ;;  %v8232_v50 = vld [vmem:[#allocation6 + $0x194] sm:$0xf0]  ;;  %v6066_v58 = vor.u32 %v8200_v45, %v6065_v44 }
 0x126   : > { %2861 = vmatpush.bf16.msrb.mxu2 %v6782_v52  ;;  %v6321_v52 = vld [vmem:[#allocation6 + $0x288] sm:$0xf]  ;;  %v6194_v62 = vor.u32 %v8232_v50, %v6193_v46  ;;  %v8188_v37 = vld [vmem:[#allocation6 + $0x34] sm:$0xf0]  ;;  %v6146_v50 = vor.u32 %v8220_v40, %v6145_v38 }
 0x127   : > { %2875 = vmatpush.bf16.msrb.mxu3 %v6910_v56  ;;  %v9569_v56 = vpop.f32.mrf.mxu2  ;;  %v6322_v63 = vor.u32 %v8264_v15, %v6321_v52  ;;  %v8284_v44 = vld [vmem:[#allocation6 + $0x334] sm:$0xf0]  ;;  %v6018_v45 = vor.u32 %v8188_v37, %v6017_v36  ;;  %v6001_v46 = vld [vmem:[#allocation6 + $0x8] sm:$0xf] }
 0x128   : > { %2834 = vmatpush.bf16.msrb.mxu0 %v6510_v0  ;;  %v1292_v59 = vpop.f32.mrf.mxu0  ;;  %v6049_v0 = vld [vmem:[#allocation6 + $0x68] sm:$0xf]  ;;  %v8332_v37 = vld [vmem:[#allocation6 + $0x4b4] sm:$0xf0] }
 0x129   : > { %2848 = vmatpush.bf16.msrb.mxu1 %v6638_v7  ;;  %v1306_v60 = vpop.f32.mrf.mxu1  ;;  %v6450_v7 = vor.u32 %v8296_v55, %v6449_v54  ;;  %v6129_v15 = vld [vmem:[#allocation6 + $0x108] sm:$0xf]  ;;  %v8216_v54 = vld [vmem:[#allocation6 + $0x114] sm:$0xf0] }
 0x12a   : > { %2862 = vmatpush.bf16.msrb.mxu2 %v6766_v9  ;;  %v9573_v6 = vadd.f32 %v1306_v60, %v1292_v59  ;;  %v8228_v9 = vld [vmem:[#allocation6 + $0x174] sm:$0xf0]  ;;  %v6257_v55 = vld [vmem:[#allocation6 + $0x208] sm:$0xf]  ;;  %v6130_v11 = vor.u32 %v8216_v54, %v6129_v15 }
 0x12b   : > { %2876 = vmatpush.bf16.msrb.mxu3 %v6894_v12  ;;  %2835 = vmatmul.bf16.vlgmr.msrb.gmra.mxu0 %v9541_v47  ;;  %v6433_v12 = vld [vmem:[#allocation6 + $0x368] sm:$0xf]  ;;  %v8248_v59 = vld [vmem:[#allocation6 + $0x214] sm:$0xf0] }
 0x12c   : > { %2883 = vmatpush.bf16.msra.mxu0 %v6114_v13  ;;  %2849 = vmatmul.bf16.vlgmr.msrb.gmra.mxu1 %v9545_v51  ;;  %v8292_v13 = vld [vmem:[#allocation6 + $0x374] sm:$0xf0]  ;;  %v6385_v60 = vld [vmem:[#allocation6 + $0x308] sm:$0xf] }
 0x12d   : > { %2897 = vmatpush.bf16.msra.mxu1 %v6242_v14  ;;  %2863 = vmatmul.bf16.vlgmr.msrb.gmra.mxu2 %v9543_v8  ;;  %v6050_v14 = vor.u32 %v8196_v3, %v6049_v0  ;;  %v6434_v21 = vor.u32 %v8292_v13, %v6433_v12  ;;  %v8340_v0 = vld [vmem:[#allocation6 + $0x4f4] sm:$0xf0]  ;;  %v6753_v3 = vld [vmem:[#allocation6 + $0x5e8] sm:$0xf]  ;;  %v6258_v12 = vor.u32 %v8248_v59, %v6257_v55 }
 0x12e   : > { %2911 = vmatpush.bf16.msra.mxu2 %v6370_v16  ;;  %2877 = vmatmul.bf16.vlgmr.msrb.gmra.mxu3 %v9547_v53  ;;  %v6178_v16 = vor.u32 %v8228_v9, %v6177_v4  ;;  %v6881_v9 = vld [vmem:[#allocation6 + $0x6e8] sm:$0xf]  ;;  %v8364_v40 = vld [vmem:[#allocation6 + $0x5b4] sm:$0xf0] }
 0x12f   : > { %2925 = vmatpush.bf16.msra.mxu3 %v6498_v20  ;;  %v6161_v20 = vld [vmem:[#allocation6 + $0x148] sm:$0xf]  ;;  %v6882_v19 = vor.u32 %v8404_v10, %v6881_v9  ;;  %v8360_v55 = vld [vmem:[#allocation6 + $0x594] sm:$0xf0] }
 0x130   : > { %2884 = vmatpush.bf16.msra.mxu0 %v6098_v26  ;;  %v8288_v26 = vld [vmem:[#allocation6 + $0x354] sm:$0xf0]  ;;  %v6162_v34 = vor.u32 %v8224_v22, %v6161_v20  ;;  %v7009_v13 = vld [vmem:[#allocation6 + $0x7e8] sm:$0xf] }
 0x131   : > { %2898 = vmatpush.bf16.msra.mxu1 %v6226_v29  ;;  %v1320_v29 = vpop.f32.mrf.mxu2  ;;  %v6418_v39 = vor.u32 %v8288_v26, %v6417_v25  ;;  %v6609_v20 = vld [vmem:[#allocation6 + $0x4c8] sm:$0xf]  ;;  %v8400_v26 = vld [vmem:[#allocation6 + $0x6d4] sm:$0xf0] }
 0x132   : > { %2912 = vmatpush.bf16.msra.mxu2 %v6354_v30  ;;  %v1334_v30 = vpop.f32.mrf.mxu3  ;;  %v6737_v22 = vld [vmem:[#allocation6 + $0x5c8] sm:$0xf]  ;;  %v8392_v59 = vld [vmem:[#allocation6 + $0x694] sm:$0xf0] }
 0x133   : > { %2926 = vmatpush.bf16.msra.mxu3 %v6482_v35  ;;  %v9575_v33 = vadd.f32 %v1334_v30, %v1320_v29  ;;  %v6290_v35 = vor.u32 %v8256_v24, %v6289_v23  ;;  %v8368_v24 = vld [vmem:[#allocation6 + $0x5d4] sm:$0xf0]  ;;  %v6865_v25 = vld [vmem:[#allocation6 + $0x6c8] sm:$0xf] }
 0x134   : > { %2885 = vmatpush.bf16.msra.mxu0 %v6082_v41  ;;  %v6273_v41 = vld [vmem:[#allocation6 + $0x228] sm:$0xf]  ;;  %v8432_v30 = vld [vmem:[#allocation6 + $0x7d4] sm:$0xf0] }
 0x135   : > { %2899 = vmatpush.bf16.msra.mxu1 %v6210_v42  ;;  %v8252_v42 = vld [vmem:[#allocation6 + $0x234] sm:$0xf0]  ;;  %v6993_v29 = vld [vmem:[#allocation6 + $0x7c8] sm:$0xf] }
 0x136   : > { %2913 = vmatpush.bf16.msra.mxu2 %v6338_v43  ;;  %v6401_v43 = vld [vmem:[#allocation6 + $0x328] sm:$0xf]  ;;  %v6274_v52 = vor.u32 %v8252_v42, %v6273_v41  ;;  %v8396_v42 = vld [vmem:[#allocation6 + $0x6b4] sm:$0xf0] }
 0x137   : > { %2927 = vmatpush.bf16.msra.mxu3 %v6466_v48  ;;  %v8184_v48 = vld [vmem:[#allocation6 + $0x14] sm:$0xf0]  ;;  %v6593_v36 = vld [vmem:[#allocation6 + $0x4a8] sm:$0xf] }
 0x138   : > { %2886 = vmatpush.bf16.msra.mxu0 %v6066_v58  ;;  %v6402_v58 = vor.u32 %v8284_v44, %v6401_v43  ;;  %v6002_v4 = vor.u32 %v8184_v48, %v6001_v46  ;;  %v6721_v38 = vld [vmem:[#allocation6 + $0x5a8] sm:$0xf]  ;;  %v8428_v44 = vld [vmem:[#allocation6 + $0x7b4] sm:$0xf0] }
 0x139   : > { %2900 = vmatpush.bf16.msra.mxu1 %v6194_v62  ;;  %v8280_v62 = vld [vmem:[#allocation6 + $0x314] sm:$0xf0]  ;;  %v6849_v41 = vld [vmem:[#allocation6 + $0x6a8] sm:$0xf]  ;;  %v6722_v46 = vor.u32 %v8364_v40, %v6721_v38 }
 0x13a   : > { %2914 = vmatpush.bf16.msra.mxu2 %v6322_v63  ;;  %v6625_v63 = vld [vmem:[#allocation6 + $0x4e8] sm:$0xf]  ;;  %v6850_v48 = vor.u32 %v8396_v42, %v6849_v41  ;;  %v8348_v40 = vld [vmem:[#allocation6 + $0x534] sm:$0xf0] }
 0x13b   : > { %2928 = vmatpush.bf16.msra.mxu3 %v6450_v7  ;;  %v8372_v7 = vld [vmem:[#allocation6 + $0x5f4] sm:$0xf0]  ;;  %v6977_v43 = vld [vmem:[#allocation6 + $0x7a8] sm:$0xf] }
 0x13c   : > { %2887 = vmatpush.bf16.msra.mxu0 %v6050_v14  ;;  %v8436_v14 = vld [vmem:[#allocation6 + $0x7f4] sm:$0xf0]  ;;  %v6754_v18 = vor.u32 %v8372_v7, %v6753_v3  ;;  %v6705_v15 = vld [vmem:[#allocation6 + $0x588] sm:$0xf]  ;;  %v6978_v54 = vor.u32 %v8428_v44, %v6977_v43 }
 0x13d   : > { %2901 = vmatpush.bf16.msra.mxu1 %v6178_v16  ;;  %v6386_v16 = vor.u32 %v8280_v62, %v6385_v60  ;;  %v7010_v23 = vor.u32 %v8436_v14, %v7009_v13  ;;  %v6961_v60 = vld [vmem:[#allocation6 + $0x788] sm:$0xf]  ;;  %v8424_v62 = vld [vmem:[#allocation6 + $0x794] sm:$0xf0] }
 0x13e   : > { %2915 = vmatpush.bf16.msra.mxu2 %v6306_v17  ;;  %v6626_v17 = vor.u32 %v8340_v0, %v6625_v63  ;;  %v6706_v0 = vor.u32 %v8360_v55, %v6705_v15  ;;  %v8324_v7 = vld [vmem:[#allocation6 + $0x474] sm:$0xf0]  ;;  %v6689_v9 = vld [vmem:[#allocation6 + $0x568] sm:$0xf]  ;;  %v6962_v10 = vor.u32 %v8424_v62, %v6961_v60 }
 0x13f   : > { %2929 = vmatpush.bf16.msra.mxu3 %v6434_v21  ;;  %v8336_v21 = vld [vmem:[#allocation6 + $0x4d4] sm:$0xf0]  ;;  %v6945_v14 = vld [vmem:[#allocation6 + $0x768] sm:$0xf] }
 0x140   : > { %2888 = vmatpush.bf16.msra.mxu0 %v6034_v32  ;;  %v6610_v32 = vor.u32 %v8336_v21, %v6609_v20  ;;  %v8388_v13 = vld [vmem:[#allocation6 + $0x674] sm:$0xf0]  ;;  %v6545_v20 = vld [vmem:[#allocation6 + $0x448] sm:$0xf] }
 0x141   : > { %2902 = vmatpush.bf16.msra.mxu1 %v6162_v34  ;;  %v6738_v34 = vor.u32 %v8368_v24, %v6737_v22  ;;  %v8320_v21 = vld [vmem:[#allocation6 + $0x454] sm:$0xf0]  ;;  %v6673_v22 = vld [vmem:[#allocation6 + $0x548] sm:$0xf] }
 0x142   : > { %2916 = vmatpush.bf16.msra.mxu2 %v6290_v35  ;;  %v6866_v35 = vor.u32 %v8400_v26, %v6865_v25  ;;  %v8352_v24 = vld [vmem:[#allocation6 + $0x554] sm:$0xf0]  ;;  %v6801_v25 = vld [vmem:[#allocation6 + $0x648] sm:$0xf] }
 0x143   : > { %2930 = vmatpush.bf16.msra.mxu3 %v6418_v39  ;;  %v6994_v39 = vor.u32 %v8432_v30, %v6993_v29  ;;  %v8384_v26 = vld [vmem:[#allocation6 + $0x654] sm:$0xf0]  ;;  %v6929_v29 = vld [vmem:[#allocation6 + $0x748] sm:$0xf] }
 0x144   : > { %2889 = vmatpush.bf16.msra.mxu0 %v6018_v45  ;;  %v6594_v45 = vor.u32 %v8332_v37, %v6593_v36  ;;  %v8416_v30 = vld [vmem:[#allocation6 + $0x754] sm:$0xf0]  ;;  %v6529_v36 = vld [vmem:[#allocation6 + $0x428] sm:$0xf] }
 0x145   : > { %2903 = vmatpush.bf16.msra.mxu1 %v6146_v50  ;;  %v6577_v50 = vld [vmem:[#allocation6 + $0x488] sm:$0xf]  ;;  %v8316_v37 = vld [vmem:[#allocation6 + $0x434] sm:$0xf0] }
 0x146   : > { %2917 = vmatpush.bf16.msra.mxu2 %v6274_v52  ;;  %v8328_v52 = vld [vmem:[#allocation6 + $0x494] sm:$0xf0]  ;;  %v6657_v38 = vld [vmem:[#allocation6 + $0x528] sm:$0xf] }
 0x147   : > { %2931 = vmatpush.bf16.msra.mxu3 %v6402_v58  ;;  %v6833_v58 = vld [vmem:[#allocation6 + $0x688] sm:$0xf]  ;;  %v6578_v63 = vor.u32 %v8328_v52, %v6577_v50  ;;  %v8380_v42 = vld [vmem:[#allocation6 + $0x634] sm:$0xf0]  ;;  %v6658_v50 = vor.u32 %v8348_v40, %v6657_v38  ;;  %v8234_v38 = vld [vmem:[#allocation6 + $0x1ac] sm:$0xf] }
 0x148   : > { %2890 = vmatpush.bf16.msra.mxu0 %v6002_v4  ;;  %v6834_v3 = vor.u32 %v8392_v59, %v6833_v58  ;;  %v6561_v4 = vld [vmem:[#allocation6 + $0x468] sm:$0xf]  ;;  %v8412_v44 = vld [vmem:[#allocation6 + $0x734] sm:$0xf0]  ;;  %v6211_v40 = vld [vmem:[#allocation6 + $0x1b8] sm:$0xf0] }
 0x149   : > { %2904 = vmatpush.bf16.msra.mxu1 %v6130_v11  ;;  %v8356_v11 = vld [vmem:[#allocation6 + $0x574] sm:$0xf0]  ;;  %v6785_v41 = vld [vmem:[#allocation6 + $0x628] sm:$0xf] }
 0x14a   : > { %2918 = vmatpush.bf16.msra.mxu2 %v6258_v12  ;;  %v6817_v12 = vld [vmem:[#allocation6 + $0x668] sm:$0xf]  ;;  %v6786_v52 = vor.u32 %v8380_v42, %v6785_v41  ;;  %v8376_v59 = vld [vmem:[#allocation6 + $0x614] sm:$0xf0]  ;;  %v8266_v41 = vld [vmem:[#allocation6 + $0x2ac] sm:$0xf] }
 0x14b   : > { %2932 = vmatpush.bf16.msra.mxu3 %v6386_v16  ;;  %2891 = vmatmul.bf16.vlgmr.msra.gmra.mxu0 %v9521_v61  ;;  %v8420_v16 = vld [vmem:[#allocation6 + $0x774] sm:$0xf0]  ;;  %v6913_v43 = vld [vmem:[#allocation6 + $0x728] sm:$0xf]  ;;  %v6339_v42 = vld [vmem:[#allocation6 + $0x2b8] sm:$0xf0] }
 0x14c   : > { %2939 = vmatpush.bf16.msrb.mxu0 %v6626_v17  ;;  %2905 = vmatmul.bf16.vlgmr.msra.gmra.mxu1 %v9525_v2  ;;  %v6562_v17 = vor.u32 %v8324_v7, %v6561_v4  ;;  %v6641_v15 = vld [vmem:[#allocation6 + $0x508] sm:$0xf]  ;;  %v6914_v58 = vor.u32 %v8412_v44, %v6913_v43  ;;  %v8408_v62 = vld [vmem:[#allocation6 + $0x714] sm:$0xf0]  ;;  %v6243_v7 = vld [vmem:[#allocation6 + $0x1f8] sm:$0xf0]  ;;  %v9582_v43 = vpop.f32.mrf.mxu0 }
 0x14d   : > { %2953 = vmatpush.bf16.msrb.mxu1 %v6754_v18  ;;  %2919 = vmatmul.bf16.vlgmr.msra.gmra.mxu2 %v9523_v1  ;;  %v6690_v18 = vor.u32 %v8356_v11, %v6689_v9  ;;  %v6769_v55 = vld [vmem:[#allocation6 + $0x608] sm:$0xf]  ;;  %v8274_v9 = vld [vmem:[#allocation6 + $0x2ec] sm:$0xf] }
 0x14e   : > { %2967 = vmatpush.bf16.msrb.mxu2 %v6882_v19  ;;  %2933 = vmatmul.bf16.vlgmr.msra.gmra.mxu3 %v9527_v5  ;;  %v6818_v19 = vor.u32 %v8388_v13, %v6817_v12  ;;  %v6897_v60 = vld [vmem:[#allocation6 + $0x708] sm:$0xf]  ;;  %v6770_v12 = vor.u32 %v8376_v59, %v6769_v55  ;;  %v8306_v13 = vld [vmem:[#allocation6 + $0x3ec] sm:$0xf]  ;;  %v6195_v59 = vld [vmem:[#allocation6 + $0x198] sm:$0xf0] }
 0x14f   : > { %2981 = vmatpush.bf16.msrb.mxu3 %v7010_v23  ;;  %v6946_v23 = vor.u32 %v8420_v16, %v6945_v14  ;;  %v6499_v14 = vld [vmem:[#allocation6 + $0x3f8] sm:$0xf0]  ;;  %v6898_v16 = vor.u32 %v8408_v62, %v6897_v60  ;;  %v8298_v44 = vld [vmem:[#allocation6 + $0x3ac] sm:$0xf] }
 0x150   : > { %2940 = vmatpush.bf16.msrb.mxu0 %v6610_v32  ;;  %v6546_v32 = vor.u32 %v8320_v21, %v6545_v20  ;;  %v8206_v20 = vld [vmem:[#allocation6 + $0xcc] sm:$0xf]  ;;  %v6099_v21 = vld [vmem:[#allocation6 + $0xd8] sm:$0xf0] }
 0x151   : > { %2954 = vmatpush.bf16.msrb.mxu1 %v6738_v34  ;;  %v6674_v34 = vor.u32 %v8352_v24, %v6673_v22  ;;  %v8238_v22 = vld [vmem:[#allocation6 + $0x1cc] sm:$0xf]  ;;  %v6227_v24 = vld [vmem:[#allocation6 + $0x1d8] sm:$0xf0] }
 0x152   : > { %2968 = vmatpush.bf16.msrb.mxu2 %v6866_v35  ;;  %v6802_v35 = vor.u32 %v8384_v26, %v6801_v25  ;;  %v8270_v25 = vld [vmem:[#allocation6 + $0x2cc] sm:$0xf]  ;;  %v6355_v26 = vld [vmem:[#allocation6 + $0x2d8] sm:$0xf0] }
 0x153   : > { %2982 = vmatpush.bf16.msrb.mxu3 %v6994_v39  ;;  %v6930_v39 = vor.u32 %v8416_v30, %v6929_v29  ;;  %v8302_v29 = vld [vmem:[#allocation6 + $0x3cc] sm:$0xf]  ;;  %v6483_v30 = vld [vmem:[#allocation6 + $0x3d8] sm:$0xf0] }
 0x154   : > { %2941 = vmatpush.bf16.msrb.mxu0 %v6594_v45  ;;  %v6530_v45 = vor.u32 %v8316_v37, %v6529_v36  ;;  %v8202_v36 = vld [vmem:[#allocation6 + $0xac] sm:$0xf]  ;;  %v6083_v37 = vld [vmem:[#allocation6 + $0xb8] sm:$0xf0] }
 0x155   : > { %2955 = vmatpush.bf16.msrb.mxu1 %v6722_v46  ;;  %v6513_v46 = vld [vmem:[#allocation6 + $0x408] sm:$0xf]  ;;  %v8230_v55 = vld [vmem:[#allocation6 + $0x18c] sm:$0xf]  ;;  %v6323_v62 = vld [vmem:[#allocation6 + $0x298] sm:$0xf0] }
 0x156   : > { %2969 = vmatpush.bf16.msrb.mxu2 %v6850_v48  ;;  %v8312_v48 = vld [vmem:[#allocation6 + $0x414] sm:$0xf0]  ;;  %v8262_v60 = vld [vmem:[#allocation6 + $0x28c] sm:$0xf] }
 0x157   : > { %2983 = vmatpush.bf16.msrb.mxu3 %v6978_v54  ;;  %v8344_v54 = vld [vmem:[#allocation6 + $0x514] sm:$0xf0]  ;;  %v6514_v4 = vor.u32 %v8312_v48, %v6513_v46  ;;  %v9586_v46 = vpop.f32.mrf.mxu1  ;;  %v6086_v48 = vor.u32 %v8202_v36, %v6083_v37  ;;  %v6291_v36 = vld [vmem:[#allocation6 + $0x258] sm:$0xf0]  ;;  %v8286_v37 = vld [vmem:[#allocation6 + $0x34c] sm:$0xf] }
 0x158   : > { %2942 = vmatpush.bf16.msrb.mxu0 %v6578_v63  ;;  %v8210_v63 = vld [vmem:[#allocation6 + $0xec] sm:$0xf]  ;;  %v6642_v11 = vor.u32 %v8344_v54, %v6641_v15  ;;  %v6067_v54 = vld [vmem:[#allocation6 + $0x98] sm:$0xf0] }
 0x159   : > { %2956 = vmatpush.bf16.msrb.mxu1 %v6706_v0  ;;  %v6115_v0 = vld [vmem:[#allocation6 + $0xf8] sm:$0xf0]  ;;  %v8198_v15 = vld [vmem:[#allocation6 + $0x8c] sm:$0xf] }
 0x15a   : > { %2970 = vmatpush.bf16.msrb.mxu2 %v6834_v3  ;;  %v8242_v3 = vld [vmem:[#allocation6 + $0x1ec] sm:$0xf] }
 0x15b   : > { %2984 = vmatpush.bf16.msrb.mxu3 %v6962_v10  ;;  %v6371_v10 = vld [vmem:[#allocation6 + $0x2f8] sm:$0xf0] }
 0x15c   : > { %2943 = vmatpush.bf16.msrb.mxu0 %v6562_v17  ;;  %v6118_v17 = vor.u32 %v8210_v63, %v6115_v0  ;;  %v8294_v63 = vld [vmem:[#allocation6 + $0x38c] sm:$0xf]  ;;  %v6451_v0 = vld [vmem:[#allocation6 + $0x398] sm:$0xf0] }
 0x15d   : > { %2957 = vmatpush.bf16.msrb.mxu1 %v6690_v18  ;;  %v6246_v18 = vor.u32 %v8242_v3, %v6243_v7  ;;  %v6070_v3 = vor.u32 %v8198_v15, %v6067_v54  ;;  %v6326_v7 = vor.u32 %v8262_v60, %v6323_v62  ;;  %v6275_v15 = vld [vmem:[#allocation6 + $0x238] sm:$0xf0]  ;;  %v8282_v54 = vld [vmem:[#allocation6 + $0x32c] sm:$0xf] }
 0x15e   : > { %2971 = vmatpush.bf16.msrb.mxu2 %v6818_v19  ;;  %v6374_v19 = vor.u32 %v8274_v9, %v6371_v10  ;;  %v8194_v9 = vld [vmem:[#allocation6 + $0x6c] sm:$0xf]  ;;  %v6051_v10 = vld [vmem:[#allocation6 + $0x78] sm:$0xf0] }
 0x15f   : > { %2985 = vmatpush.bf16.msrb.mxu3 %v6946_v23  ;;  %v6502_v23 = vor.u32 %v8306_v13, %v6499_v14  ;;  %v6454_v13 = vor.u32 %v8294_v63, %v6451_v0  ;;  %v6179_v14 = vld [vmem:[#allocation6 + $0x178] sm:$0xf0]  ;;  %v8182_v60 = vld [vmem:[#allocation6 + $0xc] sm:$0xf] }
 0x160   : > { %2944 = vmatpush.bf16.msrb.mxu0 %v6546_v32  ;;  %v6102_v32 = vor.u32 %v8206_v20, %v6099_v21  ;;  %v6435_v20 = vld [vmem:[#allocation6 + $0x378] sm:$0xf0]  ;;  %v6054_v21 = vor.u32 %v8194_v9, %v6051_v10  ;;  %v8246_v9 = vld [vmem:[#allocation6 + $0x20c] sm:$0xf] }
 0x161   : > { %2958 = vmatpush.bf16.msrb.mxu1 %v6674_v34  ;;  %v6230_v34 = vor.u32 %v8238_v22, %v6227_v24  ;;  %v9593_v22 = vpop.f32.mrf.mxu0  ;;  %v6003_v62 = vld [vmem:[#allocation6 + $0x18] sm:$0xf0] }
 0x162   : > { %2972 = vmatpush.bf16.msrb.mxu2 %v6802_v35  ;;  %v6358_v35 = vor.u32 %v8270_v25, %v6355_v26  ;;  %v8190_v25 = vld [vmem:[#allocation6 + $0x4c] sm:$0xf]  ;;  %v6035_v26 = vld [vmem:[#allocation6 + $0x58] sm:$0xf0] }
 0x163   : > { %2986 = vmatpush.bf16.msrb.mxu3 %v6930_v39  ;;  %v6486_v39 = vor.u32 %v8302_v29, %v6483_v30  ;;  %v8222_v29 = vld [vmem:[#allocation6 + $0x14c] sm:$0xf]  ;;  %v9595_v30 = vpop.f32.mrf.mxu1 }
 0x164   : > { %2945 = vmatpush.bf16.msrb.mxu0 %v6530_v45  ;;  %v6467_v45 = vld [vmem:[#allocation6 + $0x3b8] sm:$0xf0] }
 0x165   : > { %2959 = vmatpush.bf16.msrb.mxu1 %v6658_v50  ;;  %v6214_v50 = vor.u32 %v8234_v38, %v6211_v40  ;;  %v6419_v38 = vld [vmem:[#allocation6 + $0x358] sm:$0xf0] }
 0x166   : > { %2973 = vmatpush.bf16.msrb.mxu2 %v6786_v52  ;;  %v6342_v52 = vor.u32 %v8266_v41, %v6339_v42  ;;  %v8186_v42 = vld [vmem:[#allocation6 + $0x2c] sm:$0xf] }
 0x167   : > { %2987 = vmatpush.bf16.msrb.mxu3 %v6914_v58  ;;  %v6470_v58 = vor.u32 %v8298_v44, %v6467_v45  ;;  %v6019_v44 = vld [vmem:[#allocation6 + $0x38] sm:$0xf0]  ;;  %v8218_v45 = vld [vmem:[#allocation6 + $0x12c] sm:$0xf] }
 0x168   : > { %2946 = vmatpush.bf16.msrb.mxu0 %v6514_v4  ;;  %v6198_v4 = vor.u32 %v8230_v55, %v6195_v59  ;;  %v6403_v55 = vld [vmem:[#allocation6 + $0x338] sm:$0xf0]  ;;  %v6022_v59 = vor.u32 %v8186_v42, %v6019_v44  ;;  %v8366_v42 = vld [vmem:[#allocation6 + $0x5cc] sm:$0xf] }
 0x169   : > { %2960 = vmatpush.bf16.msrb.mxu1 %v6642_v11  ;;  %v8226_v11 = vld [vmem:[#allocation6 + $0x16c] sm:$0xf]  ;;  %v6406_v10 = vor.u32 %v8282_v54, %v6403_v55 }
 0x16a   : > { %2974 = vmatpush.bf16.msrb.mxu2 %v6770_v12  ;;  %v9589_v12 = vpop.f32.mrf.mxu2 }
 0x16b   : > { %2988 = vmatpush.bf16.msrb.mxu3 %v6898_v16  ;;  %2947 = vmatmul.bf16.vlgmr.msrb.gmra.mxu0 %v9541_v47  ;;  %v8258_v16 = vld [vmem:[#allocation6 + $0x26c] sm:$0xf] }
 0x16c   : > { %2995 = vmatpush.bf16.msra.mxu0 %v6118_v17  ;;  %2961 = vmatmul.bf16.vlgmr.msrb.gmra.mxu1 %v9545_v51  ;;  %v6307_v17 = vld [vmem:[#allocation6 + $0x278] sm:$0xf0] }
 0x16d   : > { %3009 = vmatpush.bf16.msra.mxu1 %v6246_v18  ;;  %2975 = vmatmul.bf16.vlgmr.msrb.gmra.mxu2 %v9543_v8  ;;  %v9591_v18 = vpop.f32.mrf.mxu3  ;;  %v6310_v24 = vor.u32 %v8258_v16, %v6307_v17  ;;  %v9601_v16 = vpop.f32.mrf.mxu0  ;;  %v8338_v17 = vld [vmem:[#allocation6 + $0x4ec] sm:$0xf] }
 0x16e   : > { %3023 = vmatpush.bf16.msra.mxu2 %v6374_v19  ;;  %2989 = vmatmul.bf16.vlgmr.msrb.gmra.mxu3 %v9547_v53  ;;  %v8290_v19 = vld [vmem:[#allocation6 + $0x36c] sm:$0xf] }
 0x16f   : > { %3037 = vmatpush.bf16.msra.mxu3 %v6502_v23  ;;  %v6182_v23 = vor.u32 %v8226_v11, %v6179_v14  ;;  %v6259_v11 = vld [vmem:[#allocation6 + $0x218] sm:$0xf0] }
 0x170   : > { %2996 = vmatpush.bf16.msra.mxu0 %v6102_v32  ;;  %v6438_v32 = vor.u32 %v8290_v19, %v6435_v20  ;;  %v6387_v14 = vld [vmem:[#allocation6 + $0x318] sm:$0xf0]  ;;  %v8370_v20 = vld [vmem:[#allocation6 + $0x5ec] sm:$0xf] }
 0x171   : > { %3010 = vmatpush.bf16.msra.mxu1 %v6230_v34  ;;  %v6163_v34 = vld [vmem:[#allocation6 + $0x158] sm:$0xf0] }
 0x172   : > { %3024 = vmatpush.bf16.msra.mxu2 %v6358_v35  ;;  %v8254_v35 = vld [vmem:[#allocation6 + $0x24c] sm:$0xf]  ;;  %v6166_v40 = vor.u32 %v8222_v29, %v6163_v34  ;;  %v6627_v19 = vld [vmem:[#allocation6 + $0x4f8] sm:$0xf0] }
 0x173   : > { %3038 = vmatpush.bf16.msra.mxu3 %v6486_v39  ;;  %v6038_v39 = vor.u32 %v8190_v25, %v6035_v26  ;;  %v6294_v41 = vor.u32 %v8254_v35, %v6291_v36  ;;  %v8402_v25 = vld [vmem:[#allocation6 + $0x6ec] sm:$0xf]  ;;  %v6883_v26 = vld [vmem:[#allocation6 + $0x6f8] sm:$0xf0] }
 0x174   : > { %2997 = vmatpush.bf16.msra.mxu0 %v6086_v48  ;;  %v6422_v48 = vor.u32 %v8286_v37, %v6419_v38  ;;  %v8434_v34 = vld [vmem:[#allocation6 + $0x7ec] sm:$0xf]  ;;  %v7011_v35 = vld [vmem:[#allocation6 + $0x7f8] sm:$0xf0]  ;;  %v6630_v37 = vor.u32 %v8338_v17, %v6627_v19 }
 0x175   : > { %3011 = vmatpush.bf16.msra.mxu1 %v6214_v50  ;;  %v6147_v50 = vld [vmem:[#allocation6 + $0x138] sm:$0xf0]  ;;  %v9599_v63 = vpop.f32.mrf.mxu3  ;;  %v7014_v44 = vor.u32 %v8434_v34, %v7011_v35  ;;  %v8426_v17 = vld [vmem:[#allocation6 + $0x7ac] sm:$0xf] }
 0x176   : > { %3025 = vmatpush.bf16.msra.mxu2 %v6342_v52  ;;  %v8250_v52 = vld [vmem:[#allocation6 + $0x22c] sm:$0xf]  ;;  %v6150_v0 = vor.u32 %v8218_v45, %v6147_v50  ;;  %v6739_v45 = vld [vmem:[#allocation6 + $0x5d8] sm:$0xf0] }
 0x177   : > { %3039 = vmatpush.bf16.msra.mxu3 %v6470_v58  ;;  %v9597_v58 = vpop.f32.mrf.mxu2  ;;  %v6867_v50 = vld [vmem:[#allocation6 + $0x6d8] sm:$0xf0]  ;;  %v8390_v34 = vld [vmem:[#allocation6 + $0x68c] sm:$0xf] }
 0x178   : > { %2998 = vmatpush.bf16.msra.mxu0 %v6070_v3  ;;  %v6278_v3 = vor.u32 %v8250_v52, %v6275_v15  ;;  %v8430_v52 = vld [vmem:[#allocation6 + $0x7cc] sm:$0xf]  ;;  %v6995_v15 = vld [vmem:[#allocation6 + $0x7d8] sm:$0xf0] }
 0x179   : > { %3012 = vmatpush.bf16.msra.mxu1 %v6198_v4  ;;  %v8214_v4 = vld [vmem:[#allocation6 + $0x10c] sm:$0xf]  ;;  %v6979_v19 = vld [vmem:[#allocation6 + $0x7b8] sm:$0xf0] }
 0x17a   : > { %3026 = vmatpush.bf16.msra.mxu2 %v6326_v7  ;;  %v6131_v7 = vld [vmem:[#allocation6 + $0x118] sm:$0xf0]  ;;  %v8422_v35 = vld [vmem:[#allocation6 + $0x78c] sm:$0xf] }
 0x17b   : > { %3040 = vmatpush.bf16.msra.mxu3 %v6454_v13  ;;  %v8278_v13 = vld [vmem:[#allocation6 + $0x30c] sm:$0xf]  ;;  %v6134_v29 = vor.u32 %v8214_v4, %v6131_v7  ;;  %v6595_v4 = vld [vmem:[#allocation6 + $0x4b8] sm:$0xf0] }
 0x17c   : > { %2999 = vmatpush.bf16.msra.mxu0 %v6054_v21  ;;  %v9603_v21 = vpop.f32.mrf.mxu1  ;;  %v6390_v36 = vor.u32 %v8278_v13, %v6387_v14  ;;  %v8362_v7 = vld [vmem:[#allocation6 + $0x5ac] sm:$0xf]  ;;  %v6851_v14 = vld [vmem:[#allocation6 + $0x6b8] sm:$0xf0] }
 0x17d   : > { %3013 = vmatpush.bf16.msra.mxu1 %v6182_v23  ;;  %v6006_v23 = vor.u32 %v8182_v60, %v6003_v62  ;;  %v9609_v60 = vpop.f32.mrf.mxu0  ;;  %v6742_v62 = vor.u32 %v8366_v42, %v6739_v45  ;;  %v8394_v13 = vld [vmem:[#allocation6 + $0x6ac] sm:$0xf]  ;;  %v6691_v45 = vld [vmem:[#allocation6 + $0x578] sm:$0xf0] }
 0x17e   : > { %3027 = vmatpush.bf16.msra.mxu2 %v6310_v24  ;;  %v6755_v24 = vld [vmem:[#allocation6 + $0x5f8] sm:$0xf0]  ;;  %v8354_v42 = vld [vmem:[#allocation6 + $0x56c] sm:$0xf] }
 0x17f   : > { %3041 = vmatpush.bf16.msra.mxu3 %v6438_v32  ;;  %v6262_v32 = vor.u32 %v8246_v9, %v6259_v11  ;;  %v6758_v38 = vor.u32 %v8370_v20, %v6755_v24  ;;  %v9605_v54 = vpop.f32.mrf.mxu2  ;;  %v6723_v11 = vld [vmem:[#allocation6 + $0x5b8] sm:$0xf0]  ;;  %v6854_v24 = vor.u32 %v8394_v13, %v6851_v14 }
 0x180   : > { %3000 = vmatpush.bf16.msra.mxu0 %v6038_v39  ;;  %v6886_v39 = vor.u32 %v8402_v25, %v6883_v26  ;;  %v8326_v25 = vld [vmem:[#allocation6 + $0x48c] sm:$0xf]  ;;  %v6675_v14 = vld [vmem:[#allocation6 + $0x558] sm:$0xf0] }
 0x181   : > { %3014 = vmatpush.bf16.msra.mxu1 %v6166_v40  ;;  %v8334_v40 = vld [vmem:[#allocation6 + $0x4cc] sm:$0xf] }
 0x182   : > { %3028 = vmatpush.bf16.msra.mxu2 %v6294_v41  ;;  %v6611_v41 = vld [vmem:[#allocation6 + $0x4d8] sm:$0xf0]  ;;  %v8358_v26 = vld [vmem:[#allocation6 + $0x58c] sm:$0xf] }
 0x183   : > { %3042 = vmatpush.bf16.msra.mxu3 %v6422_v48  ;;  %v8398_v48 = vld [vmem:[#allocation6 + $0x6cc] sm:$0xf]  ;;  %v6614_v55 = vor.u32 %v8334_v40, %v6611_v41  ;;  %v6563_v41 = vld [vmem:[#allocation6 + $0x478] sm:$0xf0] }
 0x184   : > { %3001 = vmatpush.bf16.msra.mxu0 %v6022_v59  ;;  %v9607_v59 = vpop.f32.mrf.mxu3  ;;  %v9611_v9 = vpop.f32.mrf.mxu1  ;;  %v8322_v40 = vld [vmem:[#allocation6 + $0x46c] sm:$0xf] }
 0x185   : > { %3015 = vmatpush.bf16.msra.mxu1 %v6150_v0  ;;  %v6870_v0 = vor.u32 %v8398_v48, %v6867_v50  ;;  %v8386_v48 = vld [vmem:[#allocation6 + $0x66c] sm:$0xf]  ;;  %v6819_v50 = vld [vmem:[#allocation6 + $0x678] sm:$0xf0] }
 0x186   : > { %3029 = vmatpush.bf16.msra.mxu2 %v6278_v3  ;;  %v8330_v3 = vld [vmem:[#allocation6 + $0x4ac] sm:$0xf] }
 0x187   : > { %3043 = vmatpush.bf16.msra.mxu3 %v6406_v10  ;;  %v6998_v10 = vor.u32 %v8430_v52, %v6995_v15  ;;  %v6598_v20 = vor.u32 %v8330_v3, %v6595_v4  ;;  %v9621_v52 = vpop.f32.mrf.mxu0  ;;  %v8418_v15 = vld [vmem:[#allocation6 + $0x76c] sm:$0xf]  ;;  %v6694_v3 = vor.u32 %v8354_v42, %v6691_v45  ;;  %v6822_v4 = vor.u32 %v8386_v48, %v6819_v50  ;;  %v6915_v42 = vld [vmem:[#allocation6 + $0x738] sm:$0xf0] }
 0x188   : > { %3002 = vmatpush.bf16.msra.mxu0 %v6006_v23  ;;  %v6726_v23 = vor.u32 %v8362_v7, %v6723_v11  ;;  %v8318_v7 = vld [vmem:[#allocation6 + $0x44c] sm:$0xf] }
 0x189   : > { %3016 = vmatpush.bf16.msra.mxu1 %v6134_v29  ;;  %v6982_v29 = vor.u32 %v8426_v17, %v6979_v19  ;;  %v8350_v11 = vld [vmem:[#allocation6 + $0x54c] sm:$0xf]  ;;  %v6803_v19 = vld [vmem:[#allocation6 + $0x658] sm:$0xf0] }
 0x18a   : > { %3030 = vmatpush.bf16.msra.mxu2 %v6262_v32  ;;  %v6707_v32 = vld [vmem:[#allocation6 + $0x598] sm:$0xf0]  ;;  %v8382_v17 = vld [vmem:[#allocation6 + $0x64c] sm:$0xf] }
 0x18b   : > { %3044 = vmatpush.bf16.msra.mxu3 %v6390_v36  ;;  %3003 = vmatmul.bf16.vlgmr.msra.gmra.mxu0 %v9521_v61  ;;  %v6579_v61 = vld [vmem:[#allocation6 + $0x498] sm:$0xf0]  ;;  %v9617_v36 = vpop.f32.mrf.mxu2  ;;  %v8310_v50 = vld [vmem:[#allocation6 + $0x40c] sm:$0xf] }
 0x18c   : > { %3051 = vmatpush.bf16.msrb.mxu0 %v6630_v37  ;;  %3017 = vmatmul.bf16.vlgmr.msra.gmra.mxu1 %v9525_v2  ;;  %v6963_v2 = vld [vmem:[#allocation6 + $0x798] sm:$0xf0]  ;;  %v9619_v37 = vpop.f32.mrf.mxu3 }
 0x18d   : > { %3065 = vmatpush.bf16.msrb.mxu1 %v6758_v38  ;;  %3031 = vmatmul.bf16.vlgmr.msra.gmra.mxu2 %v9523_v1  ;;  %v6835_v1 = vld [vmem:[#allocation6 + $0x698] sm:$0xf0]  ;;  %v6710_v38 = vor.u32 %v8358_v26, %v6707_v32  ;;  %v8314_v26 = vld [vmem:[#allocation6 + $0x42c] sm:$0xf] }
 0x18e   : > { %3079 = vmatpush.bf16.msrb.mxu2 %v6886_v39  ;;  %3045 = vmatmul.bf16.vlgmr.msra.gmra.mxu3 %v9527_v5  ;;  %v6582_v5 = vor.u32 %v8326_v25, %v6579_v61  ;;  %v6838_v39 = vor.u32 %v8390_v34, %v6835_v1  ;;  %v6678_v25 = vor.u32 %v8350_v11, %v6675_v14  ;;  %v8346_v32 = vld [vmem:[#allocation6 + $0x52c] sm:$0xf]  ;;  %v8533_v14 = vld [vmem:[#allocation10 + $0xec] sm:$0xf0] }
 0x18f   : > { %3093 = vmatpush.bf16.msrb.mxu3 %v7014_v44  ;;  %v6966_v44 = vor.u32 %v8422_v35, %v6963_v2  ;;  %v6806_v61 = vor.u32 %v8382_v17, %v6803_v19  ;;  %v1253_v34 = vadd.f32 %v9563_v28, %v9561_v27  ;;  %v6659_v2 = vld [vmem:[#allocation6 + $0x538] sm:$0xf0]  ;;  %v8406_v11 = vld [vmem:[#allocation6 + $0x70c] sm:$0xf] }
 0x190   : > { %3052 = vmatpush.bf16.msrb.mxu0 %v6614_v55  ;;  %v6947_v55 = vld [vmem:[#allocation6 + $0x778] sm:$0xf0]  ;;  %v6662_v27 = vor.u32 %v8346_v32, %v6659_v2  ;;  %v8529_v2 = vld [vmem:[#allocation10 + $0xcc] sm:$0xf0] }
 0x191   : > { %3066 = vmatpush.bf16.msrb.mxu1 %v6742_v62  ;;  %v9623_v62 = vpop.f32.mrf.mxu1  ;;  %v6950_v13 = vor.u32 %v8418_v15, %v6947_v55  ;;  %v6515_v15 = vld [vmem:[#allocation6 + $0x418] sm:$0xf0]  ;;  %v8342_v55 = vld [vmem:[#allocation6 + $0x50c] sm:$0xf] }
 0x192   : > { %3080 = vmatpush.bf16.msrb.mxu2 %v6870_v0  ;;  %v6566_v0 = vor.u32 %v8322_v40, %v6563_v41  ;;  %v2780_v40 = vpop.f32.mrf.mxu0  ;;  %v8410_v41 = vld [vmem:[#allocation6 + $0x72c] sm:$0xf]  ;;  %v6518_v19 = vor.u32 %v8310_v50, %v6515_v15  ;;  %v8525_v50 = vld [vmem:[#allocation10 + $0xac] sm:$0xf0]  ;;  %v1281_v15 = vadd.f32 %v9571_v57, %v9569_v56 }
 0x193   : > { %3094 = vmatpush.bf16.msrb.mxu3 %v6998_v10  ;;  %v6547_v10 = vld [vmem:[#allocation6 + $0x458] sm:$0xf0]  ;;  %v9627_v1 = vpop.f32.mrf.mxu2  ;;  %v2781_v32 = vadd.f32 %v2780_v40, %v9559_v49  ;;  %v7097_v40 = vld [vmem:[#allocation10 + $0xa0] sm:$0xf]  ;;  %v8553_v56 = vld [vmem:[#allocation10 + $0x18c] sm:$0xf0] }
 0x194   : > { %3053 = vmatpush.bf16.msrb.mxu0 %v6598_v20  ;;  %v8414_v20 = vld [vmem:[#allocation6 + $0x74c] sm:$0xf] }
 0x195   : > { %3067 = vmatpush.bf16.msrb.mxu1 %v6726_v23  ;;  %v6931_v23 = vld [vmem:[#allocation6 + $0x758] sm:$0xf0] }
 0x196   : > { %3081 = vmatpush.bf16.msrb.mxu2 %v6854_v24  ;;  %v6550_v24 = vor.u32 %v8318_v7, %v6547_v10  ;;  %v6934_v35 = vor.u32 %v8414_v20, %v6931_v23  ;;  %v8374_v7 = vld [vmem:[#allocation6 + $0x60c] sm:$0xf]  ;;  %v6771_v10 = vld [vmem:[#allocation6 + $0x618] sm:$0xf0]  ;;  %v7257_v20 = vld [vmem:[#allocation10 + $0x1e0] sm:$0xf] }
 0x197   : > { %3095 = vmatpush.bf16.msrb.mxu3 %v6982_v29  ;;  %v6531_v29 = vld [vmem:[#allocation6 + $0x438] sm:$0xf0]  ;;  %v8565_v23 = vld [vmem:[#allocation10 + $0x1ec] sm:$0xf0] }
 0x198   : > { %3054 = vmatpush.bf16.msrb.mxu0 %v6582_v5  ;;  %v8378_v5 = vld [vmem:[#allocation6 + $0x62c] sm:$0xf]  ;;  %v6534_v48 = vor.u32 %v8314_v26, %v6531_v29 }
 0x199   : > { %3068 = vmatpush.bf16.msrb.mxu1 %v6710_v38  ;;  %v6787_v38 = vld [vmem:[#allocation6 + $0x638] sm:$0xf0]  ;;  %v2794_v45 = vpop.f32.mrf.mxu1 }
 0x19a   : > { %3082 = vmatpush.bf16.msrb.mxu2 %v6838_v39  ;;  %v9629_v39 = vpop.f32.mrf.mxu3  ;;  %v6790_v28 = vor.u32 %v8378_v5, %v6787_v38  ;;  %v7241_v38 = vld [vmem:[#allocation10 + $0x1c0] sm:$0xf] }
 0x19b   : > { %3096 = vmatpush.bf16.msrb.mxu3 %v6966_v44  ;;  %v2671_v44 = vadd.f32 %v9601_v16, %v1253_v34  ;;  %v6899_v16 = vld [vmem:[#allocation6 + $0x718] sm:$0xf0] }
 0x19c   : > { %3055 = vmatpush.bf16.msrb.mxu0 %v6566_v0  ;;  %v6643_v0 = vld [vmem:[#allocation6 + $0x518] sm:$0xf0]  ;;  %v6902_v26 = vor.u32 %v8406_v11, %v6899_v16  ;;  %v7209_v11 = vld [vmem:[#allocation10 + $0x180] sm:$0xf] }
 0x19d   : > { %3069 = vmatpush.bf16.msrb.mxu1 %v6694_v3  ;;  %v2669_v3 = vadd.f32 %v9593_v22, %v9557_v31  ;;  %v2685_v17 = vadd.f32 %v9603_v21, %v2671_v44  ;;  %v7258_v21 = vor.u32 %v8565_v23, %v7257_v20  ;;  %v8593_v20 = vld [vmem:[#allocation10 + $0x2cc] sm:$0xf0] }
 0x19e   : > { %3083 = vmatpush.bf16.msrb.mxu2 %v6822_v4  ;;  %v6918_v4 = vor.u32 %v8410_v41, %v6915_v42  ;;  %v8561_v41 = vld [vmem:[#allocation10 + $0x1cc] sm:$0xf0]  ;;  %v2782_v42 = vpop.f32.mrf.mxu0 }
 0x19f   : > { %3097 = vmatpush.bf16.msrb.mxu3 %v6950_v13  ;;  %v7129_v13 = vld [vmem:[#allocation10 + $0xe0] sm:$0xf]  ;;  %v2683_v31 = vadd.f32 %v9595_v30, %v2669_v3  ;;  %v2699_v22 = vadd.f32 %v9605_v54, %v2685_v17  ;;  %v7242_v49 = vor.u32 %v8561_v41, %v7241_v38  ;;  %v2783_v3 = vadd.f32 %v2782_v42, %v1281_v15  ;;  %v8513_v41 = vld [vmem:[#allocation10 + $0x4c] sm:$0xf0] }
 0x1a0   : > { %3056 = vmatpush.bf16.msrb.mxu0 %v6550_v24  ;;  %v6646_v24 = vor.u32 %v8342_v55, %v6643_v0  ;;  %v7130_v29 = vor.u32 %v8533_v14, %v7129_v13  ;;  %v7098_v55 = vor.u32 %v8525_v50, %v7097_v40  ;;  %v7385_v0 = vld [vmem:[#allocation10 + $0x2e0] sm:$0xf] }
 0x1a1   : > { %3070 = vmatpush.bf16.msrb.mxu1 %v6678_v25  ;;  %v6774_v25 = vor.u32 %v8374_v7, %v6771_v10  ;;  %v2697_v5 = vadd.f32 %v9597_v58, %v2683_v31  ;;  %v2713_v30 = vadd.f32 %v9607_v59, %v2699_v22  ;;  %v2796_v54 = vpop.f32.mrf.mxu1  ;;  %v7225_v59 = vld [vmem:[#allocation10 + $0x1a0] sm:$0xf]  ;;  %v8517_v31 = vld [vmem:[#allocation10 + $0x6c] sm:$0xf0] }
 0x1a2   : > { %3084 = vmatpush.bf16.msrb.mxu2 %v6806_v61  ;;  %v2808_v61 = vpop.f32.mrf.mxu2  ;;  %v2822_v34 = vpop.f32.mrf.mxu3  ;;  %v2797_v23 = vadd.f32 %v2796_v54, %v2783_v3  ;;  %v7049_v38 = vld [vmem:[#allocation10 + $0x40] sm:$0xf] }
 0x1a3   : > { %3098 = vmatpush.bf16.msrb.mxu3 %v6934_v35  ;;  %v7113_v35 = vld [vmem:[#allocation10 + $0xc0] sm:$0xf]  ;;  %v2711_v58 = vadd.f32 %v9599_v63, %v2697_v5  ;;  %v8597_v63 = vld [vmem:[#allocation10 + $0x2ec] sm:$0xf0] }
 0x1a4   : > { %3057 = vmatpush.bf16.msrb.mxu0 %v6534_v48  ;;  %v7114_v44 = vor.u32 %v8529_v2, %v7113_v35  ;;  %v2795_v48 = vadd.f32 %v2794_v45, %v2781_v32  ;;  %v9653_v32 = vld [vmem:[#allocation9] sm:$0xf]  ;;  %v8589_v35 = vld [vmem:[#allocation10 + $0x2ac] sm:$0xf0]  ;;  %v7161_v3 = vld [vmem:[#allocation10 + $0x120] sm:$0xf] }
 0x1a5   : > { %3071 = vmatpush.bf16.msrb.mxu1 %v6662_v27  ;;  %v2727_v27 = vadd.f32 %v9621_v52, %v2713_v30  ;;  %v3109_v30 = vperm.slane %v9653_v32, 0 }
 0x1a6   : > { %3085 = vmatpush.bf16.msrb.mxu2 %v6790_v28  ;;  %v8557_v28 = vld [vmem:[#allocation10 + $0x1ac] sm:$0xf0]  ;;  %v2809_v45 = vadd.f32 %v2808_v61, %v2795_v48  ;;  %v7193_v61 = vld [vmem:[#allocation10 + $0x160] sm:$0xf] }
 0x1a7   : > { %3099 = vmatpush.bf16.msrb.mxu3 %v6918_v4  ;;  %v7226_v52 = vor.u32 %v8557_v28, %v7225_v59  ;;  %v8521_v4 = vld [vmem:[#allocation10 + $0x8c] sm:$0xf0]  ;;  %v2741_v7 = vadd.f32 %v9623_v62, %v2727_v27  ;;  %v7210_v62 = vor.u32 %v8553_v56, %v7209_v11  ;;  %v7050_v27 = vor.u32 %v8513_v41, %v7049_v38  ;;  %v7337_v59 = vld [vmem:[#allocation10 + $0x280] sm:$0xf]  ;;  %v7115_v38 = vld [vmem:[#allocation10 + $0xd0] sm:$0xf0] }
 0x1a8   : > { %3058 = vmatpush.bf16.msrb.mxu0 %v6518_v19  ;;  %v2823_v57 = vadd.f32 %v2822_v34, %v2809_v45  ;;  %v7369_v19 = vld [vmem:[#allocation10 + $0x2c0] sm:$0xf]  ;;  %v8585_v28 = vld [vmem:[#allocation10 + $0x28c] sm:$0xf0] }
 0x1a9   : > { %3072 = vmatpush.bf16.msrb.mxu1 %v6646_v24  ;;  %v2755_v13 = vadd.f32 %v9627_v1, %v2741_v7  ;;  %v2850_v17 = vpop.f32.mrf.mxu1  ;;  %v7370_v22 = vor.u32 %v8593_v20, %v7369_v19  ;;  %v8581_v11 = vld [vmem:[#allocation10 + $0x26c] sm:$0xf0]  ;;  %v8531_v19 = vld [vmem:[#allocation10 + $0xe4] sm:$0xf]  ;;  %v7131_v20 = vld [vmem:[#allocation10 + $0xf0] sm:$0xf0] }
 0x1aa   : > { %3086 = vmatpush.bf16.msrb.mxu2 %v6774_v25  ;;  %v2810_v10 = vpop.f32.mrf.mxu2  ;;  %v2824_v16 = vpop.f32.mrf.mxu3  ;;  %v7065_v25 = vld [vmem:[#allocation10 + $0x60] sm:$0xf] }
 0x1ab   : > { %3100 = vmatpush.bf16.msrb.mxu3 %v6902_v26  ;;  %3059 = vmatmul.bf16.vlgmr.msrb.gmra.mxu0 %v9541_v47  ;;  %v2725_v47 = vadd.f32 %v9609_v60, %v2711_v58  ;;  %v8549_v26 = vld [vmem:[#allocation10 + $0x16c] sm:$0xf0]  ;;  %v2769_v1 = vadd.f32 %v9629_v39, %v2755_v13  ;;  %v7066_v34 = vor.u32 %v8517_v31, %v7065_v25  ;;  %v8563_v31 = vld [vmem:[#allocation10 + $0x1e4] sm:$0xf] }
 0x1ac   : > { %3923 = vmatpush.bf16.msra.mxu0 %v7130_v29  ;;  %3073 = vmatmul.bf16.vlgmr.msrb.gmra.mxu1 %v9545_v51  ;;  %v7081_v51 = vld [vmem:[#allocation10 + $0x80] sm:$0xf]  ;;  %v7194_v5 = vor.u32 %v8549_v26, %v7193_v61 }
 0x1ad   : > { %3937 = vmatpush.bf16.msra.mxu1 %v7258_v21  ;;  %3087 = vmatmul.bf16.vlgmr.msrb.gmra.mxu2 %v9543_v8  ;;  %v7386_v8 = vor.u32 %v8597_v63, %v7385_v0  ;;  %v2739_v60 = vadd.f32 %v9611_v9, %v2725_v47  ;;  %v7082_v14 = vor.u32 %v8521_v4, %v7081_v51  ;;  %v7353_v21 = vld [vmem:[#allocation10 + $0x2a0] sm:$0xf]  ;;  %v3110_v4 = vperm.slane %v9653_v32, 1 }
 0x1ae   : > { %3101 = vmatmul.bf16.vlgmr.msrb.gmra.mxu3 %v9547_v53  ;;  %v2836_v53 = vpop.f32.mrf.mxu0  ;;  %v2811_v9 = vadd.f32 %v2810_v10, %v2797_v23  ;;  %v7354_v42 = vor.u32 %v8589_v35, %v7353_v21  ;;  %v9658_v58 = vadd.f32 %v3109_v30, %v2769_v1  ;;  %v7033_v47 = vld [vmem:[#allocation10 + $0x20] sm:$0xf]  ;;  %v7338_v0 = vor.u32 %v8585_v28, %v7337_v59  ;;  %v7099_v59 = vld [vmem:[#allocation10 + $0xb0] sm:$0xf0]  ;;  %v8555_v28 = vld [vmem:[#allocation10 + $0x1a4] sm:$0xf] }
 0x1af   : > { %3951 = vmatpush.bf16.msra.mxu2 %v7386_v8  ;;  %v2837_v24 = vadd.f32 %v2836_v53, %v2823_v57  ;;  %v2753_v29 = vadd.f32 %v9617_v36, %v2739_v60  ;;  %v7177_v36 = vld [vmem:[#allocation10 + $0x140] sm:$0xf]  ;;  %v8505_v53 = vld [vmem:[#allocation10 + $0xc] sm:$0xf0]  ;;  %v7134_v21 = vor.u32 %v8531_v19, %v7131_v20  ;;  %v8547_v19 = vld [vmem:[#allocation10 + $0x164] sm:$0xf] }
 0x1b0   : > { %3924 = vmatpush.bf16.msra.mxu0 %v7114_v44  ;;  %v8545_v44 = vld [vmem:[#allocation10 + $0x14c] sm:$0xf0]  ;;  %v3129_v8 = vmul.f32 0.2, %v9658_v58  ;;  %v7321_v10 = vld [vmem:[#allocation10 + $0x260] sm:$0xf] }
 0x1b1   : > { %3938 = vmatpush.bf16.msra.mxu1 %v7242_v49  ;;  %v2851_v2 = vadd.f32 %v2850_v17, %v2837_v24  ;;  %v2767_v48 = vadd.f32 %v9619_v37, %v2753_v29  ;;  %v2825_v49 = vadd.f32 %v2824_v16, %v2811_v9  ;;  %v7178_v45 = vor.u32 %v8545_v44, %v7177_v36  ;;  %v2852_v63 = vpop.f32.mrf.mxu1  ;;  %v8541_v37 = vld [vmem:[#allocation10 + $0x12c] sm:$0xf0]  ;;  %v7017_v16 = vld [vmem:[#allocation10] sm:$0xf]  ;;  %v7243_v36 = vld [vmem:[#allocation10 + $0x1d0] sm:$0xf0] }
 0x1b2   : > { %v2864_v54 = vpop.f32.mrf.mxu2  ;;  %v2878_v50 = vpop.f32.mrf.mxu3  ;;  %v7162_v57 = vor.u32 %v8541_v37, %v7161_v3  ;;  %v7145_v60 = vld [vmem:[#allocation10 + $0x100] sm:$0xf]  ;;  %v7322_v13 = vor.u32 %v8581_v11, %v7321_v10  ;;  %v8537_v17 = vld [vmem:[#allocation10 + $0x10c] sm:$0xf0]  ;;  %v3137_v61 = vmax.f32 %v9658_v58, %v3129_v8  ;;  %v7018_v26 = vor.u32 %v8505_v53, %v7017_v16  ;;  %v8519_v8 = vld [vmem:[#allocation10 + $0x84] sm:$0xf] }
 0x1b3   : > { %3952 = vmatpush.bf16.msra.mxu2 %v7370_v22  ;;  %v2865_v40 = vadd.f32 %v2864_v54, %v2851_v2  ;;  %v7259_v22 = vld [vmem:[#allocation10 + $0x1f0] sm:$0xf0]  ;;  %v7305_v29 = vld [vmem:[#allocation10 + $0x240] sm:$0xf]  ;;  %v8577_v9 = vld [vmem:[#allocation10 + $0x24c] sm:$0xf0] }
 0x1b4   : > { %3925 = vmatpush.bf16.msra.mxu0 %v7098_v55  ;;  %v8509_v55 = vld [vmem:[#allocation10 + $0x2c] sm:$0xf0]  ;;  %v7306_v35 = vor.u32 %v8577_v9, %v7305_v29  ;;  %v7262_v2 = vor.u32 %v8563_v31, %v7259_v22  ;;  %v8559_v54 = vld [vmem:[#allocation10 + $0x1c4] sm:$0xf]  ;;  %v7289_v44 = vld [vmem:[#allocation10 + $0x220] sm:$0xf] }
 0x1b5   : > { %3939 = vmatpush.bf16.msra.mxu1 %v7226_v52  ;;  %v3117_v52 = vadd.f32 %v3109_v30, %v2767_v48  ;;  %v2879_v51 = vadd.f32 %v2878_v50, %v2865_v40  ;;  %v7034_v7 = vor.u32 %v8509_v55, %v7033_v47  ;;  %v8573_v48 = vld [vmem:[#allocation10 + $0x22c] sm:$0xf0]  ;;  %v7246_v58 = vor.u32 %v8559_v54, %v7243_v36  ;;  %v7227_v47 = vld [vmem:[#allocation10 + $0x1b0] sm:$0xf0]  ;;  %v7273_v55 = vld [vmem:[#allocation10 + $0x200] sm:$0xf] }
 0x1b6   : > { %v2838_v39 = vpop.f32.mrf.mxu0  ;;  %v7290_v50 = vor.u32 %v8573_v48, %v7289_v44  ;;  %v8551_v11 = vld [vmem:[#allocation10 + $0x184] sm:$0xf]  ;;  %v7371_v53 = vld [vmem:[#allocation10 + $0x2d0] sm:$0xf0] }
 0x1b7   : > { %3953 = vmatpush.bf16.msra.mxu2 %v7354_v42  ;;  %v2839_v15 = vadd.f32 %v2838_v39, %v2825_v49  ;;  %v3125_v23 = vmul.f32 0.2, %v3117_v52  ;;  %v3118_v24 = vadd.f32 %v3110_v4, %v2879_v51  ;;  %v7387_v51 = vld [vmem:[#allocation10 + $0x2f0] sm:$0xf0]  ;;  %v8591_v16 = vld [vmem:[#allocation10 + $0x2c4] sm:$0xf] }
 0x1b8   : > { %3926 = vmatpush.bf16.msra.mxu0 %v7082_v14  ;;  %v7195_v20 = vld [vmem:[#allocation10 + $0x170] sm:$0xf0]  ;;  %v8511_v31 = vld [vmem:[#allocation10 + $0x44] sm:$0xf] }
 0x1b9   : > { %3940 = vmatpush.bf16.msra.mxu1 %v7210_v62  ;;  %v2853_v56 = vadd.f32 %v2852_v63, %v2839_v15  ;;  %v3133_v41 = vmax.f32 %v3117_v52, %v3125_v23  ;;  %v3126_v42 = vmul.f32 0.2, %v3118_v24  ;;  %v8595_v52 = vld [vmem:[#allocation10 + $0x2e4] sm:$0xf]  ;;  %v7051_v22 = vld [vmem:[#allocation10 + $0x50] sm:$0xf0] }
 0x1ba   : > { %v2866_v14 = vpop.f32.mrf.mxu2  ;;  %v2880_v25 = vpop.f32.mrf.mxu3  ;;  %v7390_v10 = vor.u32 %v8595_v52, %v7387_v51  ;;  %v7179_v29 = vld [vmem:[#allocation10 + $0x150] sm:$0xf0]  ;;  %v7054_v9 = vor.u32 %v8511_v31, %v7051_v22  ;;  %v8579_v54 = vld [vmem:[#allocation10 + $0x264] sm:$0xf] }
 0x1bb   : > { %3954 = vmatpush.bf16.msra.mxu2 %v7338_v0  ;;  %v2867_v62 = vadd.f32 %v2866_v14, %v2853_v56  ;;  %v9663_v40 = vpack.c.bf16 %v3137_v61, %v3133_v41  ;;  %v3134_v15 = vmax.f32 %v3118_v24, %v3126_v42  ;;  %v8569_v0 = vld [vmem:[#allocation10 + $0x20c] sm:$0xf0]  ;;  %v7211_v56 = vld [vmem:[#allocation10 + $0x190] sm:$0xf0]  ;;  %v8587_v24 = vld [vmem:[#allocation10 + $0x2a4] sm:$0xf] }
 0x1bc   : > { %3927 = vmatpush.bf16.msra.mxu0 %v7066_v34  ;;  %v7146_v34 = vor.u32 %v8537_v17, %v7145_v60  ;;  %v7274_v63 = vor.u32 %v8569_v0, %v7273_v55  ;;  %v7214_v60 = vor.u32 %v8551_v11, %v7211_v56  ;;  %v7067_v14 = vld [vmem:[#allocation10 + $0x70] sm:$0xf0]  ;;  %v7374_v17 = vor.u32 %v8591_v16, %v7371_v53  ;;  %v8575_v55 = vld [vmem:[#allocation10 + $0x244] sm:$0xf]  ;;  %v8562_v11 = vld [vmem:[#allocation10 + $0x1d4] sm:$0xf0] }
 0x1bd   : > { %3941 = vmatpush.bf16.msra.mxu1 %v7194_v5  ;;  %v2881_v1 = vadd.f32 %v2880_v25, %v2867_v62  ;;  %v8527_v5 = vld [vmem:[#allocation10 + $0xc4] sm:$0xf]  ;;  %v7355_v62 = vld [vmem:[#allocation10 + $0x2b0] sm:$0xf0]  ;;  %v7198_v25 = vor.u32 %v8547_v19, %v7195_v20  ;;  %v7105_v19 = vld [vmem:[#allocation10 + $0xa8] sm:$0xf] }
 0x1be   : > { %v7118_v39 = vor.u32 %v8527_v5, %v7115_v38  ;;  %v7358_v61 = vor.u32 %v8587_v24, %v7355_v62  ;;  %v8539_v5 = vld [vmem:[#allocation10 + $0x124] sm:$0xf]  ;;  %v7163_v38 = vld [vmem:[#allocation10 + $0x130] sm:$0xf0]  ;;  %v8526_v20 = vld [vmem:[#allocation10 + $0xb4] sm:$0xf0] }
 0x1bf   : > { %3955 = vmatpush.bf16.msra.mxu2 %v7322_v13  ;;  %v3122_v30 = vadd.f32 %v3110_v4, %v2881_v1  ;;  %v7230_v4 = vor.u32 %v8555_v28, %v7227_v47  ;;  %v8515_v13 = vld [vmem:[#allocation10 + $0x64] sm:$0xf]  ;;  %v7323_v36 = vld [vmem:[#allocation10 + $0x270] sm:$0xf0]  ;;  %v7166_v48 = vor.u32 %v8539_v5, %v7163_v38  ;;  %v8534_v28 = vld [vmem:[#allocation10 + $0xf4] sm:$0xf0]  ;;  %v7106_v22 = vor.u32 %v8526_v20, %v7105_v19 }
 0x1c0   : > { %3928 = vmatpush.bf16.msra.mxu0 %v7050_v27  ;;  %v8523_v27 = vld [vmem:[#allocation10 + $0xa4] sm:$0xf]  ;;  %v7070_v23 = vor.u32 %v8515_v13, %v7067_v14  ;;  %v7307_v0 = vld [vmem:[#allocation10 + $0x250] sm:$0xf0]  ;;  %v7233_v24 = vld [vmem:[#allocation10 + $0x1a8] sm:$0xf] }
 0x1c1   : > { %3942 = vmatpush.bf16.msra.mxu1 %v7178_v45  ;;  %v3130_v49 = vmul.f32 0.2, %v3122_v30  ;;  %v7102_v3 = vor.u32 %v8523_v27, %v7099_v59  ;;  %v8583_v1 = vld [vmem:[#allocation10 + $0x284] sm:$0xf]  ;;  %v7147_v27 = vld [vmem:[#allocation10 + $0x110] sm:$0xf0]  ;;  %v7310_v52 = vor.u32 %v8575_v55, %v7307_v0 }
 0x1c2   : > { %v7137_v59 = vld [vmem:[#allocation10 + $0xe8] sm:$0xf]  ;;  %v8571_v16 = vld [vmem:[#allocation10 + $0x224] sm:$0xf]  ;;  %v7291_v53 = vld [vmem:[#allocation10 + $0x230] sm:$0xf0] }
 0x1c3   : > { %3956 = vmatpush.bf16.msra.mxu2 %v7306_v35  ;;  %v3138_v45 = vmax.f32 %v3122_v30, %v3130_v49  ;;  %v7035_v35 = vld [vmem:[#allocation10 + $0x30] sm:$0xf0]  ;;  %v8503_v49 = vld [vmem:[#allocation10 + $0x4] sm:$0xf]  ;;  %v7294_v13 = vor.u32 %v8571_v16, %v7291_v53  ;;  %v8558_v62 = vld [vmem:[#allocation10 + $0x1b4] sm:$0xf0] }
 0x1c4   : > { %3929 = vmatpush.bf16.msra.mxu0 %v7034_v7  ;;  %v7083_v7 = vld [vmem:[#allocation10 + $0x90] sm:$0xf0]  ;;  %v8554_v5 = vld [vmem:[#allocation10 + $0x194] sm:$0xf0]  ;;  %v8621_v55 = vld [vmem:[#allocation10 + $0x3ac] sm:$0xf0] }
 0x1c5   : > { %3943 = vmatpush.bf16.msra.mxu1 %v7162_v57  ;;  %v9666_v37 = vpack.c.bf16 %v3138_v45, %v3134_v15  ;;  %v7086_v57 = vor.u32 %v8519_v8, %v7083_v7  ;;  %v7265_v15 = vld [vmem:[#allocation10 + $0x1e8] sm:$0xf]  ;;  %v8566_v45 = vld [vmem:[#allocation10 + $0x1f4] sm:$0xf0]  ;;  %v7275_v31 = vld [vmem:[#allocation10 + $0x210] sm:$0xf0] }
 0x1c6   : > { %v7266_v51 = vor.u32 %v8566_v45, %v7265_v15  ;;  %v8530_v8 = vld [vmem:[#allocation10 + $0xd4] sm:$0xf0] }
 0x1c7   : > { %3957 = vmatpush.bf16.msra.mxu2 %v7290_v50  ;;  %v8535_v50 = vld [vmem:[#allocation10 + $0x104] sm:$0xf]  ;;  %v8510_v19 = vld [vmem:[#allocation10 + $0x34] sm:$0xf0] }
 0x1c8   : > { %3930 = vmatpush.bf16.msra.mxu0 %v7018_v26  ;;  %v8543_v26 = vld [vmem:[#allocation10 + $0x144] sm:$0xf]  ;;  %v2892_v42 = vpop.f32.mrf.mxu0 }
 0x1c9   : > { %3944 = vmatpush.bf16.msra.mxu1 %v7146_v34  ;;  %v7182_v34 = vor.u32 %v8543_v26, %v7179_v29  ;;  %v2906_v44 = vpop.f32.mrf.mxu1  ;;  %v2893_v56 = vadd.f32 %v2892_v42, %v9573_v6  ;;  %v1309_v29 = vadd.f32 %v9586_v46, %v9582_v43 }
 0x1cb   : > { %3931 = vmatmul.bf16.vlgmr.msra.gmra.mxu0 %v9663_v40  ;;  %3958 = vmatpush.bf16.msra.mxu2 %v7274_v63  ;;  %v7150_v63 = vor.u32 %v8535_v50, %v7147_v27  ;;  %v2907_v6 = vadd.f32 %v2906_v44, %v2893_v56  ;;  %v7201_v27 = vld [vmem:[#allocation10 + $0x168] sm:$0xf]  ;;  %v7465_v56 = vld [vmem:[#allocation10 + $0x380] sm:$0xf] }
 0x1cc   : > { %3979 = vmatpush.bf16.msrb.mxu0 %v7134_v21  ;;  %3945 = vmatmul.bf16.vlgmr.msra.gmra.mxu1 %v9666_v37  ;;  %v8507_v21 = vld [vmem:[#allocation10 + $0x24] sm:$0xf] }
 0x1cd   : > { %3993 = vmatpush.bf16.msrb.mxu1 %v7262_v2  ;;  %v7339_v2 = vld [vmem:[#allocation10 + $0x290] sm:$0xf0]  ;;  %v7038_v30 = vor.u32 %v8507_v21, %v7035_v35  ;;  %v7513_v21 = vld [vmem:[#allocation10 + $0x3e0] sm:$0xf]  ;;  %v8629_v35 = vld [vmem:[#allocation10 + $0x3ec] sm:$0xf0] }
 0x1ce   : > { %v7342_v41 = vor.u32 %v8583_v1, %v7339_v2  ;;  %v7234_v1 = vor.u32 %v8558_v62, %v7233_v24  ;;  %v7217_v2 = vld [vmem:[#allocation10 + $0x188] sm:$0xf]  ;;  %v7514_v38 = vor.u32 %v8629_v35, %v7513_v21  ;;  %v8542_v24 = vld [vmem:[#allocation10 + $0x134] sm:$0xf0] }
 0x1cf   : > { %4007 = vmatpush.bf16.msrb.mxu2 %v7390_v10  ;;  %v7249_v10 = vld [vmem:[#allocation10 + $0x1c8] sm:$0xf]  ;;  %v7218_v46 = vor.u32 %v8554_v5, %v7217_v2  ;;  %v8538_v35 = vld [vmem:[#allocation10 + $0x114] sm:$0xf0]  ;;  %v8532_v2 = vld [vmem:[#allocation10 + $0xec] sm:$0xf] }
 0x1d0   : > { %3980 = vmatpush.bf16.msrb.mxu0 %v7118_v39  ;;  %v7019_v39 = vld [vmem:[#allocation10 + $0x10] sm:$0xf0]  ;;  %v2920_v7 = vpop.f32.mrf.mxu2  ;;  %v2894_v14 = vpop.f32.mrf.mxu0  ;;  %3965 = vmatpush.bf16.msra.mxu3 %v7514_v38  ;;  %v7139_v5 = vld [vmem:[#allocation10 + $0xf8] sm:$0xf0] }
 0x1d1   : > { %3994 = vmatpush.bf16.msrb.mxu1 %v7246_v58  ;;  %v7326_v58 = vor.u32 %v8579_v54, %v7323_v36  ;;  %v7022_v47 = vor.u32 %v8503_v49, %v7019_v39  ;;  %v7497_v54 = vld [vmem:[#allocation10 + $0x3c0] sm:$0xf]  ;;  %v8625_v36 = vld [vmem:[#allocation10 + $0x3cc] sm:$0xf0]  ;;  %v7073_v49 = vld [vmem:[#allocation10 + $0x68] sm:$0xf] }
 0x1d2   : > { %v8518_v39 = vld [vmem:[#allocation10 + $0x74] sm:$0xf0]  ;;  %v7498_v50 = vor.u32 %v8625_v36, %v7497_v54  ;;  %v7433_v36 = vld [vmem:[#allocation10 + $0x340] sm:$0xf] }
 0x1d3   : > { %4008 = vmatpush.bf16.msrb.mxu2 %v7374_v17  ;;  %v7250_v17 = vor.u32 %v8562_v11, %v7249_v10  ;;  %v7074_v45 = vor.u32 %v8518_v39, %v7073_v49  ;;  %v7142_v49 = vor.u32 %v8532_v2, %v7139_v5  ;;  %v8609_v39 = vld [vmem:[#allocation10 + $0x34c] sm:$0xf0]  ;;  %v8516_v2 = vld [vmem:[#allocation10 + $0x6c] sm:$0xf]  ;;  %v7075_v5 = vld [vmem:[#allocation10 + $0x78] sm:$0xf0] }
 0x1d4   : > { %3981 = vmatpush.bf16.msrb.mxu0 %v7102_v3  ;;  %v7138_v3 = vor.u32 %v8534_v28, %v7137_v59  ;;  %v8550_v59 = vld [vmem:[#allocation10 + $0x174] sm:$0xf0]  ;;  %3966 = vmatpush.bf16.msra.mxu3 %v7498_v50 }
 0x1d5   : > { %3995 = vmatpush.bf16.msrb.mxu1 %v7230_v4  ;;  %v7121_v4 = vld [vmem:[#allocation10 + $0xc8] sm:$0xf] }
 0x1d7   : > { %4009 = vmatpush.bf16.msrb.mxu2 %v7358_v61  ;;  %v7089_v61 = vld [vmem:[#allocation10 + $0x88] sm:$0xf] }
 0x1d8   : > { %3982 = vmatpush.bf16.msrb.mxu0 %v7086_v57  ;;  %v2934_v57 = vpop.f32.mrf.mxu3  ;;  %v2922_v42 = vpop.f32.mrf.mxu2 }
 0x1d9   : > { %3996 = vmatpush.bf16.msrb.mxu1 %v7214_v60  ;;  %v7122_v60 = vor.u32 %v8530_v8, %v7121_v4  ;;  %v7185_v4 = vld [vmem:[#allocation10 + $0x148] sm:$0xf]  ;;  %v8546_v8 = vld [vmem:[#allocation10 + $0x154] sm:$0xf0] }
 0x1db   : > { %4010 = vmatpush.bf16.msrb.mxu2 %v7342_v41  ;;  %v2895_v41 = vadd.f32 %v2894_v14, %v1309_v29  ;;  %v7186_v14 = vor.u32 %v8546_v8, %v7185_v4  ;;  %v8556_v4 = vld [vmem:[#allocation10 + $0x1ac] sm:$0xf] }
 0x1dc   : > { %3983 = vmatpush.bf16.msrb.mxu0 %v7070_v23  ;;  %v2908_v23 = vpop.f32.mrf.mxu1 }
 0x1dd   : > { %3997 = vmatpush.bf16.msrb.mxu1 %v7198_v25  ;;  %v8567_v25 = vld [vmem:[#allocation10 + $0x204] sm:$0xf]  ;;  %v2909_v28 = vadd.f32 %v2908_v23, %v2895_v41  ;;  %v7169_v23 = vld [vmem:[#allocation10 + $0x128] sm:$0xf]  ;;  %v8564_v41 = vld [vmem:[#allocation10 + $0x1ec] sm:$0xf] }
 0x1de   : > { %v7278_v26 = vor.u32 %v8567_v25, %v7275_v31  ;;  %v7170_v29 = vor.u32 %v8542_v24, %v7169_v23 }
 0x1df   : > { %4011 = vmatpush.bf16.msrb.mxu2 %v7326_v58  ;;  %v2923_v0 = vadd.f32 %v2922_v42, %v2909_v28  ;;  %v7267_v42 = vld [vmem:[#allocation10 + $0x1f8] sm:$0xf0] }
 0x1e0   : > { %3984 = vmatpush.bf16.msrb.mxu0 %v7054_v9  ;;  %v2921_v9 = vadd.f32 %v2920_v7, %v2907_v6  ;;  %v3111_v6 = vperm.slane %v9653_v32, 2  ;;  %v7270_v50 = vor.u32 %v8564_v41, %v7267_v42  ;;  %v7203_v41 = vld [vmem:[#allocation10 + $0x178] sm:$0xf0]  ;;  %v7361_v42 = vld [vmem:[#allocation10 + $0x2a8] sm:$0xf] }
 0x1e1   : > { %3998 = vmatpush.bf16.msrb.mxu1 %v7182_v34  ;;  %v8522_v34 = vld [vmem:[#allocation10 + $0x94] sm:$0xf0] }
 0x1e2   : > { %v2935_v44 = vadd.f32 %v2934_v57, %v2921_v9  ;;  %v8617_v57 = vld [vmem:[#allocation10 + $0x38c] sm:$0xf0]  ;;  %v7025_v9 = vld [vmem:[#allocation10 + $0x8] sm:$0xf] }
 0x1e3   : > { %4012 = vmatpush.bf16.msrb.mxu2 %v7310_v52  ;;  %v8514_v52 = vld [vmem:[#allocation10 + $0x54] sm:$0xf0]  ;;  %v7466_v20 = vor.u32 %v8617_v57, %v7465_v56  ;;  %v8601_v56 = vld [vmem:[#allocation10 + $0x30c] sm:$0xf0] }
 0x1e4   : > { %3985 = vmatpush.bf16.msrb.mxu0 %v7038_v30  ;;  %v7090_v30 = vor.u32 %v8522_v34, %v7089_v61  ;;  %v8613_v61 = vld [vmem:[#allocation10 + $0x36c] sm:$0xf0]  ;;  %v7153_v34 = vld [vmem:[#allocation10 + $0x108] sm:$0xf] }
 0x1e5   : > { %3999 = vmatpush.bf16.msrb.mxu1 %v7166_v48  ;;  %v2936_v48 = vpop.f32.mrf.mxu3 }
 0x1e6   : > { %v2937_v16 = vadd.f32 %v2936_v48, %v2923_v0  ;;  %v8605_v0 = vld [vmem:[#allocation10 + $0x32c] sm:$0xf0] }
 0x1e7   : > { %4013 = vmatpush.bf16.msrb.mxu2 %v7294_v13 }
 0x1e8   : > { %3986 = vmatpush.bf16.msrb.mxu0 %v7022_v47  ;;  %v2948_v43 = vpop.f32.mrf.mxu0  ;;  %v7481_v47 = vld [vmem:[#allocation10 + $0x3a0] sm:$0xf] }
 0x1e9   : > { %4000 = vmatpush.bf16.msrb.mxu1 %v7150_v63  ;;  %v2962_v58 = vpop.f32.mrf.mxu1  ;;  %v2949_v15 = vadd.f32 %v2948_v43, %v2935_v44  ;;  %v7202_v63 = vor.u32 %v8550_v59, %v7201_v27  ;;  %v7123_v27 = vld [vmem:[#allocation10 + $0xd8] sm:$0xf0]  ;;  %v7434_v59 = vor.u32 %v8609_v39, %v7433_v36  ;;  %v7078_v36 = vor.u32 %v8516_v2, %v7075_v5 }
 0x1ea   : > { %v7059_v39 = vld [vmem:[#allocation10 + $0x58] sm:$0xf0] }
 0x1eb   : > { %3987 = vmatmul.bf16.vlgmr.msrb.gmra.mxu0 %v9663_v40  ;;  %4014 = vmatpush.bf16.msrb.mxu2 %v7278_v26  ;;  %v2963_v7 = vadd.f32 %v2962_v58, %v2949_v15  ;;  %v8528_v58 = vld [vmem:[#allocation10 + $0xcc] sm:$0xf] }
 0x1ec   : > { %4035 = vmatpush.bf16.msra.mxu0 %v7138_v3  ;;  %4001 = vmatmul.bf16.vlgmr.msrb.gmra.mxu1 %v9666_v37  ;;  %v7057_v3 = vld [vmem:[#allocation10 + $0x48] sm:$0xf]  ;;  %v8560_v15 = vld [vmem:[#allocation10 + $0x1cc] sm:$0xf] }
 0x1ed   : > { %4049 = vmatpush.bf16.msra.mxu1 %v7266_v51  ;;  %v7482_v51 = vor.u32 %v8621_v55, %v7481_v47  ;;  %v7058_v11 = vor.u32 %v8514_v52, %v7057_v3  ;;  %v8524_v47 = vld [vmem:[#allocation10 + $0xac] sm:$0xf]  ;;  %v7417_v55 = vld [vmem:[#allocation10 + $0x320] sm:$0xf]  ;;  %v7126_v52 = vor.u32 %v8528_v58, %v7123_v27  ;;  %v7187_v58 = vld [vmem:[#allocation10 + $0x158] sm:$0xf0] }
 0x1ee   : > { %v7418_v8 = vor.u32 %v8605_v0, %v7417_v55  ;;  %v7345_v27 = vld [vmem:[#allocation10 + $0x288] sm:$0xf] }
 0x1ef   : > { %3967 = vmatpush.bf16.msra.mxu3 %v7482_v51  ;;  %v7107_v51 = vld [vmem:[#allocation10 + $0xb8] sm:$0xf0] }
 0x1f0   : > { %4036 = vmatpush.bf16.msra.mxu0 %v7122_v60  ;;  %v2976_v10 = vpop.f32.mrf.mxu2  ;;  %v2950_v60 = vpop.f32.mrf.mxu0 }
 0x1f1   : > { %4050 = vmatpush.bf16.msra.mxu1 %v7250_v17  ;;  %v2977_v53 = vadd.f32 %v2976_v10, %v2963_v7  ;;  %v2990_v13 = vpop.f32.mrf.mxu3  ;;  %v7041_v17 = vld [vmem:[#allocation10 + $0x28] sm:$0xf]  ;;  %v2951_v62 = vadd.f32 %v2950_v60, %v2937_v16  ;;  %v2964_v25 = vpop.f32.mrf.mxu1  ;;  %v7235_v10 = vld [vmem:[#allocation10 + $0x1b8] sm:$0xf0] }
 0x1f2   : > { %v7042_v31 = vor.u32 %v8510_v19, %v7041_v17  ;;  %v7393_v16 = vld [vmem:[#allocation10 + $0x2e8] sm:$0xf]  ;;  %v7110_v17 = vor.u32 %v8524_v47, %v7107_v51  ;;  %v8627_v19 = vld [vmem:[#allocation10 + $0x3e4] sm:$0xf]  ;;  %v7238_v23 = vor.u32 %v8556_v4, %v7235_v10  ;;  %v7467_v47 = vld [vmem:[#allocation10 + $0x390] sm:$0xf0] }
 0x1f3   : > { %3968 = vmatpush.bf16.msra.mxu3 %v7466_v20  ;;  %v2991_v26 = vadd.f32 %v2990_v13, %v2977_v53  ;;  %v2965_v38 = vadd.f32 %v2964_v25, %v2951_v62  ;;  %v8598_v53 = vld [vmem:[#allocation10 + $0x2f4] sm:$0xf0]  ;;  %v7515_v20 = vld [vmem:[#allocation10 + $0x3f0] sm:$0xf0]  ;;  %v8520_v62 = vld [vmem:[#allocation10 + $0x8c] sm:$0xf] }
 0x1f4   : > { %4037 = vmatpush.bf16.msra.mxu0 %v7106_v22  ;;  %v7449_v22 = vld [vmem:[#allocation10 + $0x360] sm:$0xf]  ;;  %v7394_v24 = vor.u32 %v8598_v53, %v7393_v16  ;;  %v8552_v25 = vld [vmem:[#allocation10 + $0x18c] sm:$0xf]  ;;  %v7171_v51 = vld [vmem:[#allocation10 + $0x138] sm:$0xf0] }
 0x1f5   : > { %4051 = vmatpush.bf16.msra.mxu1 %v7234_v1  ;;  %v8506_v1 = vld [vmem:[#allocation10 + $0x14] sm:$0xf0]  ;;  %v7450_v21 = vor.u32 %v8613_v61, %v7449_v22  ;;  %v3119_v44 = vadd.f32 %v3111_v6, %v2991_v26  ;;  %v7219_v22 = vld [vmem:[#allocation10 + $0x198] sm:$0xf0]  ;;  %v7377_v61 = vld [vmem:[#allocation10 + $0x2c8] sm:$0xf] }
 0x1f6   : > { %v7026_v54 = vor.u32 %v8506_v1, %v7025_v9  ;;  %v8594_v26 = vld [vmem:[#allocation10 + $0x2d4] sm:$0xf0]  ;;  %v8623_v1 = vld [vmem:[#allocation10 + $0x3c4] sm:$0xf]  ;;  %v7329_v4 = vld [vmem:[#allocation10 + $0x268] sm:$0xf] }
 0x1f7   : > { %3969 = vmatpush.bf16.msra.mxu3 %v7450_v21  ;;  %v7222_v21 = vor.u32 %v8552_v25, %v7219_v22  ;;  %v7435_v25 = vld [vmem:[#allocation10 + $0x350] sm:$0xf0] }
 0x1f8   : > { %4038 = vmatpush.bf16.msra.mxu0 %v7090_v30  ;;  %v2978_v30 = vpop.f32.mrf.mxu2 }
 0x1f9   : > { %4052 = vmatpush.bf16.msra.mxu1 %v7218_v46  ;;  %v2979_v48 = vadd.f32 %v2978_v30, %v2965_v38  ;;  %v2992_v43 = vpop.f32.mrf.mxu3  ;;  %v7154_v46 = vor.u32 %v8538_v35, %v7153_v34  ;;  %v7499_v34 = vld [vmem:[#allocation10 + $0x3d0] sm:$0xf0]  ;;  %v7378_v35 = vor.u32 %v8594_v26, %v7377_v61  ;;  %v8548_v38 = vld [vmem:[#allocation10 + $0x16c] sm:$0xf]  ;;  %v8590_v30 = vld [vmem:[#allocation10 + $0x2b4] sm:$0xf0] }
 0x1fa   : > { %v7297_v26 = vld [vmem:[#allocation10 + $0x228] sm:$0xf] }
 0x1fb   : > { %v2993_v28 = vadd.f32 %v2992_v43, %v2979_v48  ;;  %3970 = vmatpush.bf16.msra.mxu3 %v7434_v59  ;;  %v7483_v48 = vld [vmem:[#allocation10 + $0x3b0] sm:$0xf0]  ;;  %v7206_v43 = vor.u32 %v8548_v38, %v7203_v41  ;;  %v8586_v59 = vld [vmem:[#allocation10 + $0x294] sm:$0xf0]  ;;  %v7281_v38 = vld [vmem:[#allocation10 + $0x208] sm:$0xf] }
 0x1fc   : > { %4039 = vmatpush.bf16.msra.mxu0 %v7074_v45  ;;  %v7251_v45 = vld [vmem:[#allocation10 + $0x1d8] sm:$0xf0]  ;;  %v7346_v0 = vor.u32 %v8586_v59, %v7345_v27  ;;  %v8570_v41 = vld [vmem:[#allocation10 + $0x214] sm:$0xf0]  ;;  %v8592_v27 = vld [vmem:[#allocation10 + $0x2cc] sm:$0xf] }
 0x1fd   : > { %4053 = vmatpush.bf16.msra.mxu1 %v7202_v63  ;;  %v3127_v63 = vmul.f32 0.2, %v3119_v44  ;;  %v3123_v3 = vadd.f32 %v3111_v6, %v2993_v28  ;;  %v7254_v7 = vor.u32 %v8560_v15, %v7251_v45  ;;  %v7091_v6 = vld [vmem:[#allocation10 + $0x98] sm:$0xf0]  ;;  %v8615_v45 = vld [vmem:[#allocation10 + $0x384] sm:$0xf] }
 0x1fe   : > { %v7094_v9 = vor.u32 %v8520_v62, %v7091_v6  ;;  %v8607_v6 = vld [vmem:[#allocation10 + $0x344] sm:$0xf]  ;;  %v7379_v59 = vld [vmem:[#allocation10 + $0x2d8] sm:$0xf0] }
 0x1ff   : > { %v3131_v57 = vmul.f32 0.2, %v3123_v3  ;;  %3971 = vmatpush.bf16.msra.mxu3 %v7418_v8  ;;  %v3135_v13 = vmax.f32 %v3119_v44, %v3127_v63  ;;  %v8619_v44 = vld [vmem:[#allocation10 + $0x3a4] sm:$0xf]  ;;  %v8508_v63 = vld [vmem:[#allocation10 + $0x2c] sm:$0xf] }
 0x200   : > { %4040 = vmatpush.bf16.msra.mxu0 %v7058_v11  ;;  %v7401_v11 = vld [vmem:[#allocation10 + $0x300] sm:$0xf]  ;;  %v7486_v28 = vor.u32 %v8619_v44, %v7483_v48  ;;  %v8582_v8 = vld [vmem:[#allocation10 + $0x274] sm:$0xf0]  ;;  %v8599_v44 = vld [vmem:[#allocation10 + $0x304] sm:$0xf] }
 0x201   : > { %4054 = vmatpush.bf16.msra.mxu1 %v7186_v14  ;;  %v7402_v60 = vor.u32 %v8601_v56, %v7401_v11  ;;  %v3139_v14 = vmax.f32 %v3123_v3, %v3131_v57  ;;  %v7043_v3 = vld [vmem:[#allocation10 + $0x38] sm:$0xf0]  ;;  %v8611_v11 = vld [vmem:[#allocation10 + $0x364] sm:$0xf]  ;;  %v7451_v56 = vld [vmem:[#allocation10 + $0x370] sm:$0xf0]  ;;  %v7330_v53 = vor.u32 %v8582_v8, %v7329_v4 }
 0x202   : > { %v7046_v10 = vor.u32 %v8508_v63, %v7043_v3  ;;  %v7403_v48 = vld [vmem:[#allocation10 + $0x310] sm:$0xf0]  ;;  %v7347_v4 = vld [vmem:[#allocation10 + $0x298] sm:$0xf0] }
 0x203   : > { %3972 = vmatpush.bf16.msra.mxu3 %v7402_v60  ;;  %v8504_v60 = vld [vmem:[#allocation10 + $0xc] sm:$0xf] }
 0x204   : > { %4041 = vmatpush.bf16.msra.mxu0 %v7042_v31  ;;  %v9677_v31 = vpack.c.bf16 %v3139_v14, %v3135_v13  ;;  %v7027_v13 = vld [vmem:[#allocation10 + $0x18] sm:$0xf0]  ;;  %v8536_v14 = vld [vmem:[#allocation10 + $0x10c] sm:$0xf] }
 0x205   : > { %4055 = vmatpush.bf16.msra.mxu1 %v7170_v29  ;;  %v7518_v29 = vor.u32 %v8627_v19, %v7515_v20  ;;  %v7313_v19 = vld [vmem:[#allocation10 + $0x248] sm:$0xf]  ;;  %v8578_v20 = vld [vmem:[#allocation10 + $0x254] sm:$0xf0]  ;;  %v7030_v62 = vor.u32 %v8504_v60, %v7027_v13  ;;  %v7331_v60 = vld [vmem:[#allocation10 + $0x278] sm:$0xf0] }
 0x206   : > { %3959 = vmatmul.bf16.vlgmr.msra.gmra.mxu2 %v9677_v31  ;;  %v7314_v61 = vor.u32 %v8578_v20, %v7313_v19  ;;  %v3112_v19 = vperm.slane %v9653_v32, 3  ;;  %v8576_v20 = vld [vmem:[#allocation10 + $0x24c] sm:$0xf] }
 0x207   : > { %4063 = vmatpush.bf16.msra.mxu2 %v7394_v24  ;;  %4021 = vmatpush.bf16.msrb.mxu3 %v7518_v29  ;;  %v8574_v29 = vld [vmem:[#allocation10 + $0x234] sm:$0xf0] }
 0x208   : > { %4042 = vmatpush.bf16.msra.mxu0 %v7026_v54  ;;  %v7502_v54 = vor.u32 %v8623_v1, %v7499_v34  ;;  %v3004_v57 = vpop.f32.mrf.mxu0  ;;  %v8603_v34 = vld [vmem:[#allocation10 + $0x324] sm:$0xf]  ;;  %v7298_v5 = vor.u32 %v8574_v29, %v7297_v26  ;;  %v8572_v26 = vld [vmem:[#allocation10 + $0x22c] sm:$0xf]  ;;  %v7299_v29 = vld [vmem:[#allocation10 + $0x238] sm:$0xf0] }
 0x209   : > { %4056 = vmatpush.bf16.msra.mxu1 %v7154_v46  ;;  %v7362_v46 = vor.u32 %v8590_v30, %v7361_v42  ;;  %v3018_v24 = vpop.f32.mrf.mxu1 }
 0x20b   : > { %4043 = vmatmul.bf16.vlgmr.msra.gmra.mxu0 %v9663_v40  ;;  %4064 = vmatpush.bf16.msra.mxu2 %v7378_v35  ;;  %v3005_v35 = vadd.f32 %v3004_v57, %v9575_v33  ;;  %v7282_v33 = vor.u32 %v8570_v41, %v7281_v38  ;;  %v7521_v38 = vld [vmem:[#allocation10 + $0x3e8] sm:$0xf]  ;;  %v8630_v41 = vld [vmem:[#allocation10 + $0x3f4] sm:$0xf0] }
 0x20c   : > { %4091 = vmatpush.bf16.msrb.mxu0 %v7142_v49  ;;  %4057 = vmatmul.bf16.vlgmr.msra.gmra.mxu1 %v9666_v37  ;;  %v8512_v49 = vld [vmem:[#allocation10 + $0x4c] sm:$0xf] }
 0x20d   : > { %4105 = vmatpush.bf16.msrb.mxu1 %v7270_v50  ;;  %v8544_v50 = vld [vmem:[#allocation10 + $0x14c] sm:$0xf]  ;;  %4022 = vmatpush.bf16.msrb.mxu3 %v7502_v54  ;;  %v7062_v15 = vor.u32 %v8512_v49, %v7059_v39  ;;  %v7406_v39 = vor.u32 %v8599_v44, %v7403_v48  ;;  %v7505_v48 = vld [vmem:[#allocation10 + $0x3c8] sm:$0xf] }
 0x20e   : > { %v7190_v55 = vor.u32 %v8544_v50, %v7187_v58  ;;  %v8596_v54 = vld [vmem:[#allocation10 + $0x2ec] sm:$0xf]  ;;  %v1337_v50 = vadd.f32 %v9591_v18, %v9589_v12 }
 0x20f   : > { %4065 = vmatpush.bf16.msra.mxu2 %v7362_v46 }
 0x210   : > { %4092 = vmatpush.bf16.msrb.mxu0 %v7126_v52  ;;  %v8540_v52 = vld [vmem:[#allocation10 + $0x12c] sm:$0xf]  ;;  %v3032_v1 = vpop.f32.mrf.mxu2  ;;  %v3006_v30 = vpop.f32.mrf.mxu0 }
 0x211   : > { %4106 = vmatpush.bf16.msrb.mxu1 %v7254_v7  ;;  %4023 = vmatpush.bf16.msrb.mxu3 %v7486_v28  ;;  %v7470_v7 = vor.u32 %v8615_v45, %v7467_v47  ;;  %v7174_v16 = vor.u32 %v8540_v52, %v7171_v51  ;;  %v3046_v2 = vpop.f32.mrf.mxu3  ;;  %v3020_v46 = vpop.f32.mrf.mxu1  ;;  %v8584_v51 = vld [vmem:[#allocation10 + $0x28c] sm:$0xf] }
 0x213   : > { %4066 = vmatpush.bf16.msra.mxu2 %v7346_v0  ;;  %v7363_v0 = vld [vmem:[#allocation10 + $0x2b8] sm:$0xf0] }
 0x214   : > { %4093 = vmatpush.bf16.msrb.mxu0 %v7110_v17  ;;  %v7155_v17 = vld [vmem:[#allocation10 + $0x118] sm:$0xf0] }
 0x215   : > { %4107 = vmatpush.bf16.msrb.mxu1 %v7238_v23  ;;  %4024 = vmatpush.bf16.msrb.mxu3 %v7470_v7  ;;  %v7454_v23 = vor.u32 %v8611_v11, %v7451_v56  ;;  %v7158_v22 = vor.u32 %v8536_v14, %v7155_v17 }
 0x216   : > { %4015 = vmatmul.bf16.vlgmr.msrb.gmra.mxu2 %v9677_v31 }
 0x217   : > { %4067 = vmatpush.bf16.msra.mxu2 %v7330_v53  ;;  %v8580_v53 = vld [vmem:[#allocation10 + $0x26c] sm:$0xf] }
 0x218   : > { %4094 = vmatpush.bf16.msrb.mxu0 %v7094_v9  ;;  %v7438_v9 = vor.u32 %v8607_v6, %v7435_v25  ;;  %v3034_v28 = vpop.f32.mrf.mxu2  ;;  %v7334_v14 = vor.u32 %v8580_v53, %v7331_v60  ;;  %v8612_v53 = vld [vmem:[#allocation10 + $0x36c] sm:$0xf]  ;;  %v7459_v60 = vld [vmem:[#allocation10 + $0x378] sm:$0xf0] }
 0x219   : > { %4108 = vmatpush.bf16.msrb.mxu1 %v7222_v21  ;;  %4025 = vmatpush.bf16.msrb.mxu3 %v7454_v23  ;;  %v7419_v21 = vld [vmem:[#allocation10 + $0x330] sm:$0xf0]  ;;  %v3048_v45 = vpop.f32.mrf.mxu3  ;;  %v7315_v23 = vld [vmem:[#allocation10 + $0x258] sm:$0xf0] }
 0x21a   : > { %v7422_v42 = vor.u32 %v8603_v34, %v7419_v21  ;;  %v7318_v25 = vor.u32 %v8576_v20, %v7315_v23  ;;  %v7302_v34 = vor.u32 %v8572_v26, %v7299_v29  ;;  %v8604_v20 = vld [vmem:[#allocation10 + $0x32c] sm:$0xf]  ;;  %v7427_v23 = vld [vmem:[#allocation10 + $0x338] sm:$0xf0]  ;;  %v7625_v29 = vld [vmem:[#allocation12 + $0xc0] sm:$0xf] }
 0x21b   : > { %4068 = vmatpush.bf16.msra.mxu2 %v7314_v61 }
 0x21c   : > { %4095 = vmatpush.bf16.msrb.mxu0 %v7078_v36  ;;  %v7395_v36 = vld [vmem:[#allocation10 + $0x2f8] sm:$0xf0] }
 0x21d   : > { %4109 = vmatpush.bf16.msrb.mxu1 %v7206_v43  ;;  %4026 = vmatpush.bf16.msrb.mxu3 %v7438_v9  ;;  %v3019_v43 = vadd.f32 %v3018_v24, %v3005_v35  ;;  %v7398_v49 = vor.u32 %v8596_v54, %v7395_v36  ;;  %v7522_v36 = vor.u32 %v8630_v41, %v7521_v38  ;;  %v7577_v38 = vld [vmem:[#allocation12 + $0x60] sm:$0xf]  ;;  %v8645_v41 = vld [vmem:[#allocation12 + $0x6c] sm:$0xf0] }
 0x21f   : > { %4069 = vmatpush.bf16.msra.mxu2 %v7298_v5  ;;  %v3033_v58 = vadd.f32 %v3032_v1, %v3019_v43  ;;  %v7283_v5 = vld [vmem:[#allocation10 + $0x218] sm:$0xf0]  ;;  %v8626_v43 = vld [vmem:[#allocation10 + $0x3d4] sm:$0xf0] }
 0x220   : > { %4096 = vmatpush.bf16.msrb.mxu0 %v7062_v15 }
 0x221   : > { %4110 = vmatpush.bf16.msrb.mxu1 %v7190_v55  ;;  %4027 = vmatpush.bf16.msrb.mxu3 %v7422_v42  ;;  %v3047_v15 = vadd.f32 %v3046_v2, %v3033_v58  ;;  %v8588_v55 = vld [vmem:[#allocation10 + $0x2ac] sm:$0xf]  ;;  %v8618_v58 = vld [vmem:[#allocation10 + $0x394] sm:$0xf0] }
 0x222   : > { %v7366_v12 = vor.u32 %v8588_v55, %v7363_v0  ;;  %v8568_v2 = vld [vmem:[#allocation10 + $0x20c] sm:$0xf]  ;;  %v7409_v0 = vld [vmem:[#allocation10 + $0x308] sm:$0xf] }
 0x223   : > { %4070 = vmatpush.bf16.msra.mxu2 %v7282_v33  ;;  %v7286_v42 = vor.u32 %v8568_v2, %v7283_v5  ;;  %v7506_v33 = vor.u32 %v8626_v43, %v7505_v48  ;;  %v7593_v2 = vld [vmem:[#allocation12 + $0x80] sm:$0xf]  ;;  %v8649_v5 = vld [vmem:[#allocation12 + $0x8c] sm:$0xf0] }
 0x224   : > { %4097 = vmatpush.bf16.msrb.mxu0 %v7046_v10  ;;  %v7350_v10 = vor.u32 %v8584_v51, %v7347_v4  ;;  %v8624_v51 = vld [vmem:[#allocation10 + $0x3cc] sm:$0xf]  ;;  %v7507_v4 = vld [vmem:[#allocation10 + $0x3d8] sm:$0xf0]  ;;  %v8641_v48 = vld [vmem:[#allocation12 + $0x4c] sm:$0xf0] }
 0x225   : > { %4111 = vmatpush.bf16.msrb.mxu1 %v7174_v16  ;;  %4028 = vmatpush.bf16.msrb.mxu3 %v7406_v39 }
 0x226   : > { %4071 = vmatmul.bf16.vlgmr.msra.gmra.mxu2 %v9677_v31 }
 0x227   : > { %4119 = vmatpush.bf16.msrb.mxu2 %v7398_v49  ;;  %v8622_v49 = vld [vmem:[#allocation10 + $0x3b4] sm:$0xf0] }
 0x228   : > { %4098 = vmatpush.bf16.msrb.mxu0 %v7030_v62  ;;  %v3060_v47 = vpop.f32.mrf.mxu0 }
 0x229   : > { %4112 = vmatpush.bf16.msrb.mxu1 %v7158_v22  ;;  %v3061_v3 = vadd.f32 %v3060_v47, %v3047_v15  ;;  %v3074_v52 = vpop.f32.mrf.mxu1  ;;  %v8610_v15 = vld [vmem:[#allocation10 + $0x354] sm:$0xf0]  ;;  %v7425_v47 = vld [vmem:[#allocation10 + $0x328] sm:$0xf] }
 0x22b   : > { %4099 = vmatmul.bf16.vlgmr.msrb.gmra.mxu0 %v9663_v40  ;;  %v3007_v40 = vadd.f32 %v3006_v30, %v1337_v50  ;;  %v3075_v8 = vadd.f32 %v3074_v52, %v3061_v3  ;;  %v7473_v50 = vld [vmem:[#allocation10 + $0x388] sm:$0xf]  ;;  %v8628_v3 = vld [vmem:[#allocation10 + $0x3ec] sm:$0xf]  ;;  %v7523_v52 = vld [vmem:[#allocation10 + $0x3f8] sm:$0xf0] }
 0x22c   : > { %4113 = vmatmul.bf16.vlgmr.msrb.gmra.mxu1 %v9666_v37  ;;  %v7382_v37 = vor.u32 %v8592_v27, %v7379_v59  ;;  %v7474_v27 = vor.u32 %v8618_v58, %v7473_v50  ;;  %v7457_v59 = vld [vmem:[#allocation10 + $0x368] sm:$0xf]  ;;  %v8637_v50 = vld [vmem:[#allocation12 + $0x2c] sm:$0xf0]  ;;  %v7737_v58 = vld [vmem:[#allocation12 + $0x1a0] sm:$0xf] }
 0x22d   : > { %v3021_v63 = vadd.f32 %v3020_v46, %v3007_v40  ;;  %v7489_v46 = vld [vmem:[#allocation10 + $0x3a8] sm:$0xf]  ;;  %v8614_v40 = vld [vmem:[#allocation10 + $0x374] sm:$0xf0] }
 0x22e   : > { %4120 = vmatpush.bf16.msrb.mxu2 %v7382_v37  ;;  %v7490_v39 = vor.u32 %v8622_v49, %v7489_v46  ;;  %v7441_v37 = vld [vmem:[#allocation10 + $0x348] sm:$0xf] }
 0x22f   : > { %v3035_v18 = vadd.f32 %v3034_v28, %v3021_v63  ;;  %v7458_v28 = vor.u32 %v8614_v40, %v7457_v59  ;;  %v8602_v63 = vld [vmem:[#allocation10 + $0x314] sm:$0xf0]  ;;  %v8685_v59 = vld [vmem:[#allocation12 + $0x1ac] sm:$0xf0]  ;;  %v7529_v40 = vld [vmem:[#allocation12] sm:$0xf] }
 0x230   : > { %v3088_v7 = vpop.f32.mrf.mxu2  ;;  %v3062_v16 = vpop.f32.mrf.mxu0 }
 0x231   : > { %v3049_v11 = vadd.f32 %v3048_v45, %v3035_v18  ;;  %v3089_v56 = vadd.f32 %v3088_v7, %v3075_v8  ;;  %v3102_v57 = vpop.f32.mrf.mxu3  ;;  %v3076_v24 = vpop.f32.mrf.mxu1  ;;  %v7442_v45 = vor.u32 %v8610_v15, %v7441_v37  ;;  %v7526_v18 = vor.u32 %v8628_v3, %v7523_v52  ;;  %v8620_v7 = vld [vmem:[#allocation10 + $0x3ac] sm:$0xf]  ;;  %v7721_v15 = vld [vmem:[#allocation12 + $0x180] sm:$0xf] }
 0x232   : > { %4121 = vmatpush.bf16.msrb.mxu2 %v7366_v12  ;;  %v7410_v12 = vor.u32 %v8602_v63, %v7409_v0  ;;  %v7510_v8 = vor.u32 %v8624_v51, %v7507_v4  ;;  %v7738_v37 = vor.u32 %v8685_v59, %v7737_v58  ;;  %v7705_v3 = vld [vmem:[#allocation12 + $0x160] sm:$0xf]  ;;  %v8655_v4 = vld [vmem:[#allocation12 + $0xc4] sm:$0xf] }
 0x233   : > { %v3063_v13 = vadd.f32 %v3062_v16, %v3049_v11  ;;  %v3103_v17 = vadd.f32 %v3102_v57, %v3089_v56  ;;  %v8616_v56 = vld [vmem:[#allocation10 + $0x38c] sm:$0xf]  ;;  %v7475_v57 = vld [vmem:[#allocation10 + $0x398] sm:$0xf0]  ;;  %v7897_v52 = vld [vmem:[#allocation12 + $0x2e0] sm:$0xf] }
 0x234   : > { %v7478_v16 = vor.u32 %v8616_v56, %v7475_v57  ;;  %v8635_v58 = vld [vmem:[#allocation12 + $0x24] sm:$0xf] }
 0x235   : > { %v3077_v62 = vadd.f32 %v3076_v24, %v3063_v13  ;;  %v3120_v22 = vadd.f32 %v3112_v19, %v3103_v17  ;;  %v7462_v13 = vor.u32 %v8612_v53, %v7459_v60  ;;  %v7443_v17 = vld [vmem:[#allocation10 + $0x358] sm:$0xf0]  ;;  %v7430_v24 = vor.u32 %v8604_v20, %v7427_v23  ;;  %v7865_v53 = vld [vmem:[#allocation12 + $0x2a0] sm:$0xf]  ;;  %v8717_v60 = vld [vmem:[#allocation12 + $0x2ac] sm:$0xf0] }
 0x236   : > { %4122 = vmatpush.bf16.msrb.mxu2 %v7350_v10  ;;  %v7491_v10 = vld [vmem:[#allocation10 + $0x3b8] sm:$0xf0]  ;;  %v8683_v59 = vld [vmem:[#allocation12 + $0x1a4] sm:$0xf] }
 0x237   : > { %v3128_v21 = vmul.f32 0.2, %v3120_v22  ;;  %v7494_v11 = vor.u32 %v8620_v7, %v7491_v10  ;;  %v7881_v7 = vld [vmem:[#allocation12 + $0x2c0] sm:$0xf]  ;;  %v8721_v10 = vld [vmem:[#allocation12 + $0x2cc] sm:$0xf0] }
 0x238   : > { %v3090_v6 = vpop.f32.mrf.mxu2 }
 0x239   : > { %v3091_v61 = vadd.f32 %v3090_v6, %v3077_v62  ;;  %v3104_v9 = vpop.f32.mrf.mxu3  ;;  %v3136_v30 = vmax.f32 %v3120_v22, %v3128_v21  ;;  %v8600_v62 = vld [vmem:[#allocation10 + $0x30c] sm:$0xf]  ;;  %v7411_v6 = vld [vmem:[#allocation10 + $0x318] sm:$0xf0]  ;;  %v7641_v22 = vld [vmem:[#allocation12 + $0xe0] sm:$0xf] }
 0x23a   : > { %4123 = vmatpush.bf16.msrb.mxu2 %v7334_v14  ;;  %v8608_v14 = vld [vmem:[#allocation10 + $0x34c] sm:$0xf]  ;;  %v8653_v21 = vld [vmem:[#allocation12 + $0xac] sm:$0xf0] }
 0x23b   : > { %v3105_v1 = vadd.f32 %v3104_v9, %v3091_v61  ;;  %v8661_v61 = vld [vmem:[#allocation12 + $0xec] sm:$0xf0] }
 0x23c   : > { %v7642_v26 = vor.u32 %v8661_v61, %v7641_v22  ;;  %v8657_v9 = vld [vmem:[#allocation12 + $0xcc] sm:$0xf0]  ;;  %v7595_v22 = vld [vmem:[#allocation12 + $0x90] sm:$0xf0] }
 0x23d   : > { %v3124_v35 = vadd.f32 %v3112_v19, %v3105_v1  ;;  %v7446_v19 = vor.u32 %v8608_v14, %v7443_v17  ;;  %v7626_v1 = vor.u32 %v8657_v9, %v7625_v29  ;;  %v8651_v14 = vld [vmem:[#allocation12 + $0xa4] sm:$0xf]  ;;  %v7611_v17 = vld [vmem:[#allocation12 + $0xb0] sm:$0xf0]  ;;  %v8665_v29 = vld [vmem:[#allocation12 + $0x10c] sm:$0xf0] }
 0x23e   : > { %4124 = vmatpush.bf16.msrb.mxu2 %v7318_v25  ;;  %v7414_v25 = vor.u32 %v8600_v62, %v7411_v6  ;;  %4945 = vmatpush.bf16.msra.mxu0 %v7642_v26  ;;  %v7614_v23 = vor.u32 %v8651_v14, %v7611_v17  ;;  %v8669_v62 = vld [vmem:[#allocation12 + $0x12c] sm:$0xf0]  ;;  %v7657_v26 = vld [vmem:[#allocation12 + $0x100] sm:$0xf] }
 0x23f   : > { %v3132_v32 = vmul.f32 0.2, %v3124_v35  ;;  %v7849_v9 = vld [vmem:[#allocation12 + $0x280] sm:$0xf]  ;;  %v8753_v17 = vld [vmem:[#allocation12 + $0x3cc] sm:$0xf0] }
 0x240   : > { %v8009_v14 = vld [vmem:[#allocation12 + $0x3c0] sm:$0xf] }
 0x241   : > { %v3140_v54 = vmax.f32 %v3124_v35, %v3132_v32  ;;  %v7594_v32 = vor.u32 %v8649_v5, %v7593_v2 }
 0x242   : > { %4125 = vmatpush.bf16.msrb.mxu2 %v7302_v34  ;;  %4946 = vmatpush.bf16.msra.mxu0 %v7626_v1  ;;  %v7609_v34 = vld [vmem:[#allocation12 + $0xa0] sm:$0xf]  ;;  %v7658_v1 = vor.u32 %v8665_v29, %v7657_v26  ;;  %v8749_v29 = vld [vmem:[#allocation12 + $0x3ac] sm:$0xf0] }
 0x243   : > { %v9688_v44 = vpack.c.bf16 %v3140_v54, %v3136_v30  ;;  %v7610_v35 = vor.u32 %v8653_v21, %v7609_v34  ;;  %v7578_v30 = vor.u32 %v8645_v41, %v7577_v38  ;;  %v8693_v54 = vld [vmem:[#allocation12 + $0x1ec] sm:$0xf0]  ;;  %v8643_v21 = vld [vmem:[#allocation12 + $0x64] sm:$0xf]  ;;  %v7771_v38 = vld [vmem:[#allocation12 + $0x1f0] sm:$0xf0] }
 0x244   : > { %v8713_v34 = vld [vmem:[#allocation12 + $0x28c] sm:$0xf0]  ;;  %v7993_v26 = vld [vmem:[#allocation12 + $0x3a0] sm:$0xf] }
 0x245   : > { %3973 = vmatmul.bf16.vlgmr.msra.gmra.mxu3 %v9688_v44  ;;  %v7850_v2 = vor.u32 %v8713_v34, %v7849_v9  ;;  %v8667_v34 = vld [vmem:[#allocation12 + $0x124] sm:$0xf] }
 0x246   : > { %4126 = vmatpush.bf16.msrb.mxu2 %v7286_v42  ;;  %4077 = vmatpush.bf16.msra.mxu3 %v7522_v36  ;;  %v7769_v42 = vld [vmem:[#allocation12 + $0x1e0] sm:$0xf] }
 0x247   : > { %4947 = vmatpush.bf16.msra.mxu0 %v7610_v35  ;;  %v7561_v36 = vld [vmem:[#allocation12 + $0x40] sm:$0xf]  ;;  %v7770_v43 = vor.u32 %v8693_v54, %v7769_v42  ;;  %v7579_v35 = vld [vmem:[#allocation12 + $0x70] sm:$0xf0] }
 0x248   : > { %v7562_v46 = vor.u32 %v8641_v48, %v7561_v36  ;;  %v7582_v5 = vor.u32 %v8643_v21, %v7579_v35  ;;  %v7833_v42 = vld [vmem:[#allocation12 + $0x260] sm:$0xf]  ;;  %v8639_v36 = vld [vmem:[#allocation12 + $0x44] sm:$0xf]  ;;  %v7563_v48 = vld [vmem:[#allocation12 + $0x50] sm:$0xf0] }
 0x249   : > { %4127 = vmatmul.bf16.vlgmr.msrb.gmra.mxu2 %v9677_v31  ;;  %v8606_v31 = vld [vmem:[#allocation10 + $0x334] sm:$0xf0]  ;;  %4959 = vmatpush.bf16.msra.mxu1 %v7770_v43  ;;  %v8687_v43 = vld [vmem:[#allocation12 + $0x1c4] sm:$0xf]  ;;  %v7675_v21 = vld [vmem:[#allocation12 + $0x130] sm:$0xf0] }
 0x24a   : > { %4078 = vmatpush.bf16.msra.mxu3 %v7506_v33  ;;  %v7426_v55 = vor.u32 %v8606_v31, %v7425_v47  ;;  %v7753_v33 = vld [vmem:[#allocation12 + $0x1c0] sm:$0xf]  ;;  %v8659_v47 = vld [vmem:[#allocation12 + $0xe4] sm:$0xf] }
 0x24b   : > { %4948 = vmatpush.bf16.msra.mxu0 %v7594_v32  ;;  %v8691_v32 = vld [vmem:[#allocation12 + $0x1e4] sm:$0xf] }
 0x24c   : > { %v7774_v41 = vor.u32 %v8691_v32, %v7771_v38  ;;  %v8715_v35 = vld [vmem:[#allocation12 + $0x2a4] sm:$0xf]  ;;  %v7867_v32 = vld [vmem:[#allocation12 + $0x2b0] sm:$0xf0] }
 0x24e   : > { %4079 = vmatpush.bf16.msra.mxu3 %v7490_v39  ;;  %v7545_v39 = vld [vmem:[#allocation12 + $0x20] sm:$0xf] }
 0x24f   : > { %4949 = vmatpush.bf16.msra.mxu0 %v7578_v30  ;;  %v8709_v30 = vld [vmem:[#allocation12 + $0x26c] sm:$0xf0] }
 0x250   : > { %v7834_v54 = vor.u32 %v8709_v30, %v7833_v42  ;;  %v7977_v42 = vld [vmem:[#allocation12 + $0x380] sm:$0xf]  ;;  %v8745_v30 = vld [vmem:[#allocation12 + $0x38c] sm:$0xf0] }
 0x252   : > { %4080 = vmatpush.bf16.msra.mxu3 %v7474_v27  ;;  %v7546_v27 = vor.u32 %v8637_v50, %v7545_v39  ;;  %v8705_v39 = vld [vmem:[#allocation12 + $0x24c] sm:$0xf0] }
 0x253   : > { %4950 = vmatpush.bf16.msra.mxu0 %v7562_v46 }
 0x255   : > { %4029 = vmatmul.bf16.vlgmr.msrb.gmra.mxu3 %v9688_v44 }
 0x256   : > { %4081 = vmatpush.bf16.msra.mxu3 %v7458_v28  ;;  %v8633_v28 = vld [vmem:[#allocation12 + $0xc] sm:$0xf0] }
 0x257   : > { %4951 = vmatpush.bf16.msra.mxu0 %v7546_v27  ;;  %v7530_v31 = vor.u32 %v8633_v28, %v7529_v40  ;;  %v7547_v27 = vld [vmem:[#allocation12 + $0x30] sm:$0xf0] }
 0x258   : > { %v7550_v40 = vor.u32 %v8635_v58, %v7547_v27  ;;  %v7739_v28 = vld [vmem:[#allocation12 + $0x1b0] sm:$0xf0]  ;;  %v7961_v27 = vld [vmem:[#allocation12 + $0x360] sm:$0xf] }
 0x25a   : > { %4082 = vmatpush.bf16.msra.mxu3 %v7442_v45  ;;  %v8681_v45 = vld [vmem:[#allocation12 + $0x18c] sm:$0xf0] }
 0x25b   : > { %v7722_v0 = vor.u32 %v8681_v45, %v7721_v15  ;;  %4952 = vmatpush.bf16.msra.mxu0 %v7530_v31  ;;  %v7801_v15 = vld [vmem:[#allocation12 + $0x220] sm:$0xf]  ;;  %v8701_v45 = vld [vmem:[#allocation12 + $0x22c] sm:$0xf0]  ;;  %v8631_v31 = vld [vmem:[#allocation12 + $0x4] sm:$0xf] }
 0x25e   : > { %4083 = vmatpush.bf16.msra.mxu3 %v7426_v55  ;;  %v7643_v55 = vld [vmem:[#allocation12 + $0xf0] sm:$0xf0] }
 0x25f   : > { %v7646_v63 = vor.u32 %v8659_v47, %v7643_v55  ;;  %v7802_v47 = vor.u32 %v8701_v45, %v7801_v15  ;;  %v7531_v55 = vld [vmem:[#allocation12 + $0x10] sm:$0xf0] }
 0x260   : > { %v7835_v15 = vld [vmem:[#allocation12 + $0x270] sm:$0xf0] }
 0x261   : > { %5001 = vmatpush.bf16.msrb.mxu0 %v7646_v63  ;;  %v7534_v63 = vor.u32 %v8631_v31, %v7531_v55 }
 0x262   : > { %4084 = vmatpush.bf16.msra.mxu3 %v7410_v12  ;;  %v8725_v12 = vld [vmem:[#allocation12 + $0x2ec] sm:$0xf0] }
 0x263   : > { %v7898_v51 = vor.u32 %v8725_v12, %v7897_v52  ;;  %v3932_v52 = vpop.f32.mrf.mxu0 }
 0x265   : > { %4085 = vmatmul.bf16.vlgmr.msra.gmra.mxu3 %v9688_v44  ;;  %4973 = vmatpush.bf16.msra.mxu2 %v7898_v51  ;;  %v8697_v51 = vld [vmem:[#allocation12 + $0x20c] sm:$0xf0] }
 0x266   : > { %4133 = vmatpush.bf16.msrb.mxu3 %v7526_v18  ;;  %v8677_v18 = vld [vmem:[#allocation12 + $0x16c] sm:$0xf0] }
 0x267   : > { %v7706_v56 = vor.u32 %v8677_v18, %v7705_v3  ;;  %v7723_v3 = vld [vmem:[#allocation12 + $0x190] sm:$0xf0]  ;;  %v7785_v18 = vld [vmem:[#allocation12 + $0x200] sm:$0xf] }
 0x26a   : > { %4134 = vmatpush.bf16.msrb.mxu3 %v7510_v8  ;;  %v7627_v8 = vld [vmem:[#allocation12 + $0xd0] sm:$0xf0] }
 0x26b   : > { %v7630_v57 = vor.u32 %v8655_v4, %v7627_v8  ;;  %v8025_v4 = vld [vmem:[#allocation12 + $0x3e0] sm:$0xf]  ;;  %v3934_v9 = vpop.f32.mrf.mxu0 }
 0x26d   : > { %5002 = vmatpush.bf16.msrb.mxu0 %v7630_v57 }
 0x26e   : > { %4135 = vmatpush.bf16.msrb.mxu3 %v7494_v11  ;;  %v7882_v11 = vor.u32 %v8721_v10, %v7881_v7  ;;  %v7786_v7 = vor.u32 %v8697_v51, %v7785_v18  ;;  %v8757_v10 = vld [vmem:[#allocation12 + $0x3ec] sm:$0xf0]  ;;  %v8703_v18 = vld [vmem:[#allocation12 + $0x244] sm:$0xf]  ;;  %v7819_v51 = vld [vmem:[#allocation12 + $0x250] sm:$0xf0] }
 0x26f   : > { %v8026_v57 = vor.u32 %v8757_v10, %v8025_v4 }
 0x270   : > { %4974 = vmatpush.bf16.msra.mxu2 %v7882_v11  ;;  %v8675_v11 = vld [vmem:[#allocation12 + $0x164] sm:$0xf] }
 0x271   : > { %5003 = vmatpush.bf16.msrb.mxu0 %v7614_v23  ;;  %v8671_v23 = vld [vmem:[#allocation12 + $0x144] sm:$0xf] }
 0x272   : > { %4136 = vmatpush.bf16.msrb.mxu3 %v7478_v16  ;;  %v7689_v16 = vld [vmem:[#allocation12 + $0x140] sm:$0xf] }
 0x276   : > { %4137 = vmatpush.bf16.msrb.mxu3 %v7462_v13  ;;  %v8673_v13 = vld [vmem:[#allocation12 + $0x14c] sm:$0xf0] }
 0x277   : > { %v7690_v20 = vor.u32 %v8673_v13, %v7689_v16 }
 0x27a   : > { %4138 = vmatpush.bf16.msrb.mxu3 %v7446_v19  ;;  %v7866_v19 = vor.u32 %v8717_v60, %v7865_v53  ;;  %v8723_v53 = vld [vmem:[#allocation12 + $0x2e4] sm:$0xf]  ;;  %v7899_v60 = vld [vmem:[#allocation12 + $0x2f0] sm:$0xf0] }
 0x27b   : > { %v7902_v13 = vor.u32 %v8723_v53, %v7899_v60  ;;  %v8733_v53 = vld [vmem:[#allocation12 + $0x32c] sm:$0xf0] }
 0x27c   : > { %4975 = vmatpush.bf16.msra.mxu2 %v7866_v19  ;;  %v3946_v19 = vpop.f32.mrf.mxu1 }
 0x27e   : > { %4139 = vmatpush.bf16.msrb.mxu3 %v7430_v24  ;;  %v7673_v24 = vld [vmem:[#allocation12 + $0x120] sm:$0xf] }
 0x27f   : > { %v7674_v6 = vor.u32 %v8669_v62, %v7673_v24  ;;  %v7691_v24 = vld [vmem:[#allocation12 + $0x150] sm:$0xf0]  ;;  %v8719_v62 = vld [vmem:[#allocation12 + $0x2c4] sm:$0xf] }
 0x280   : > { %4976 = vmatpush.bf16.msra.mxu2 %v7850_v2 }
 0x282   : > { %4140 = vmatpush.bf16.msrb.mxu3 %v7414_v25  ;;  %v8647_v25 = vld [vmem:[#allocation12 + $0x84] sm:$0xf] }
 0x283   : > { %v7598_v61 = vor.u32 %v8647_v25, %v7595_v22  ;;  %v7883_v25 = vld [vmem:[#allocation12 + $0x2d0] sm:$0xf0]  ;;  %v9700_v22 = vld [vmem:[%s9763_s6] sm:$0xf] }
 0x284   : > { %4977 = vmatpush.bf16.msra.mxu2 %v7834_v54  ;;  %v3275_v2 = vperm.slane %v9700_v22, 0  ;;  %v7978_v54 = vor.u32 %v8745_v30, %v7977_v42  ;;  %v3276_v10 = vperm.slane %v9700_v22, 1 }
 0x285   : > { %4141 = vmatmul.bf16.vlgmr.msrb.gmra.mxu3 %v9688_v44  ;;  %v8689_v44 = vld [vmem:[#allocation12 + $0x1cc] sm:$0xf0]  ;;  %5004 = vmatpush.bf16.msrb.mxu0 %v7598_v61  ;;  %v7886_v61 = vor.u32 %v8719_v62, %v7883_v25 }
 0x286   : > { %v7754_v49 = vor.u32 %v8689_v44, %v7753_v33  ;;  %v7566_v33 = vor.u32 %v8639_v36, %v7563_v48  ;;  %v7755_v44 = vld [vmem:[#allocation12 + $0x1d0] sm:$0xf0]  ;;  %4987 = vmatpush.bf16.msra.mxu3 %v8026_v57  ;;  %v8663_v36 = vld [vmem:[#allocation12 + $0x104] sm:$0xf]  ;;  %v3935_v45 = vadd.f32 %v3934_v9, %v3275_v2 }
 0x287   : > { %v7758_v46 = vor.u32 %v8687_v43, %v7755_v44  ;;  %v7659_v48 = vld [vmem:[#allocation12 + $0x110] sm:$0xf0]  ;;  %v8711_v43 = vld [vmem:[#allocation12 + $0x284] sm:$0xf] }
 0x288   : > { %4960 = vmatpush.bf16.msra.mxu1 %v7754_v49  ;;  %v7817_v49 = vld [vmem:[#allocation12 + $0x240] sm:$0xf]  ;;  %v7662_v44 = vor.u32 %v8663_v36, %v7659_v48 }
 0x289   : > { %5005 = vmatpush.bf16.msrb.mxu0 %v7582_v5  ;;  %v7818_v50 = vor.u32 %v8705_v39, %v7817_v49  ;;  %v9695_v8 = vpop.f32.mrf.mxu2  ;;  %v7678_v5 = vor.u32 %v8667_v34, %v7675_v21  ;;  %v3948_v49 = vpop.f32.mrf.mxu1  ;;  %v7787_v34 = vld [vmem:[#allocation12 + $0x210] sm:$0xf0]  ;;  %v8755_v21 = vld [vmem:[#allocation12 + $0x3e4] sm:$0xf] }
 0x28a   : > { %v3949_v55 = vadd.f32 %v3948_v49, %v3935_v45  ;;  %v8751_v49 = vld [vmem:[#allocation12 + $0x3c4] sm:$0xf] }
 0x28b   : > { %4978 = vmatpush.bf16.msra.mxu2 %v7818_v50  ;;  %v8747_v45 = vld [vmem:[#allocation12 + $0x3a4] sm:$0xf] }
 0x28c   : > { %4961 = vmatpush.bf16.msra.mxu1 %v7738_v37  ;;  %v7742_v37 = vor.u32 %v8683_v59, %v7739_v28  ;;  %v8741_v59 = vld [vmem:[#allocation12 + $0x36c] sm:$0xf0] }
 0x28d   : > { %5006 = vmatpush.bf16.msrb.mxu0 %v7566_v33  ;;  %v3933_v33 = vadd.f32 %v3932_v52, %v3275_v2  ;;  %v7962_v28 = vor.u32 %v8741_v59, %v7961_v27  ;;  %v7633_v2 = vld [vmem:[#allocation12 + $0xc8] sm:$0xf] }
 0x28f   : > { %4979 = vmatpush.bf16.msra.mxu2 %v7802_v47  ;;  %v3947_v58 = vadd.f32 %v3946_v19, %v3933_v33  ;;  %v7649_v19 = vld [vmem:[#allocation12 + $0xe8] sm:$0xf] }
 0x290   : > { %4962 = vmatpush.bf16.msra.mxu1 %v7722_v0  ;;  %v8679_v0 = vld [vmem:[#allocation12 + $0x184] sm:$0xf]  ;;  %v7617_v33 = vld [vmem:[#allocation12 + $0xa8] sm:$0xf] }
 0x291   : > { %5007 = vmatpush.bf16.msrb.mxu0 %v7550_v40  ;;  %v7726_v12 = vor.u32 %v8679_v0, %v7723_v3  ;;  %v3962_v38 = vpop.f32.mrf.mxu2  ;;  %v3988_v40 = vpop.f32.mrf.mxu0  ;;  %v3961_v47 = vadd.f32 %v9695_v8, %v3947_v58  ;;  %v8737_v3 = vld [vmem:[#allocation12 + $0x34c] sm:$0xf0]  ;;  %v7929_v8 = vld [vmem:[#allocation12 + $0x320] sm:$0xf] }
 0x292   : > { %v3963_v4 = vadd.f32 %v3962_v38, %v3949_v55  ;;  %v7930_v60 = vor.u32 %v8733_v53, %v7929_v8  ;;  %v3989_v62 = vadd.f32 %v3988_v40, %v3276_v10  ;;  %v8027_v38 = vld [vmem:[#allocation12 + $0x3f0] sm:$0xf0] }
 0x293   : > { %4980 = vmatpush.bf16.msra.mxu2 %v7786_v7  ;;  %v7822_v7 = vor.u32 %v8703_v18, %v7819_v51  ;;  %v8030_v30 = vor.u32 %v8755_v21, %v8027_v38  ;;  %v7553_v21 = vld [vmem:[#allocation12 + $0x28] sm:$0xf]  ;;  %v8686_v38 = vld [vmem:[#allocation12 + $0x1b4] sm:$0xf0] }
 0x294   : > { %4963 = vmatpush.bf16.msra.mxu1 %v7706_v56  ;;  %v7707_v56 = vld [vmem:[#allocation12 + $0x170] sm:$0xf0] }
 0x295   : > { %5008 = vmatpush.bf16.msrb.mxu0 %v7534_v63  ;;  %v7710_v16 = vor.u32 %v8675_v11, %v7707_v56  ;;  %v7945_v63 = vld [vmem:[#allocation12 + $0x340] sm:$0xf]  ;;  %v4002_v11 = vpop.f32.mrf.mxu1 }
 0x297   : > { %5029 = vmatpush.bf16.msrb.mxu2 %v7902_v13  ;;  %v8699_v13 = vld [vmem:[#allocation12 + $0x224] sm:$0xf] }
 0x298   : > { %4964 = vmatpush.bf16.msra.mxu1 %v7690_v20  ;;  %v8010_v20 = vor.u32 %v8753_v17, %v8009_v14  ;;  %v7803_v14 = vld [vmem:[#allocation12 + $0x230] sm:$0xf0] }
 0x299   : > { %v4016_v52 = vpop.f32.mrf.mxu2 }
 0x29a   : > { %4988 = vmatpush.bf16.msra.mxu3 %v8010_v20  ;;  %v8662_v20 = vld [vmem:[#allocation12 + $0xf4] sm:$0xf0] }
 0x29b   : > { %5030 = vmatpush.bf16.msrb.mxu2 %v7886_v61  ;;  %v7913_v61 = vld [vmem:[#allocation12 + $0x300] sm:$0xf] }
 0x29c   : > { %4965 = vmatpush.bf16.msra.mxu1 %v7674_v6  ;;  %v7694_v6 = vor.u32 %v8671_v23, %v7691_v24  ;;  %v7806_v23 = vor.u32 %v8699_v13, %v7803_v14  ;;  %v3990_v24 = vpop.f32.mrf.mxu0 }
 0x29d   : > { %v3991_v36 = vadd.f32 %v3990_v24, %v3276_v10  ;;  %v4004_v48 = vpop.f32.mrf.mxu1  ;;  %v8694_v10 = vld [vmem:[#allocation12 + $0x1f4] sm:$0xf0] }
 0x29f   : > { %v4005_v27 = vadd.f32 %v4004_v48, %v3991_v36 }
 0x2a0   : > { %4966 = vmatpush.bf16.msra.mxu1 %v7658_v1  ;;  %v7994_v1 = vor.u32 %v8749_v29, %v7993_v26  ;;  %v8729_v26 = vld [vmem:[#allocation12 + $0x30c] sm:$0xf0]  ;;  %v7650_v29 = vor.u32 %v8662_v20, %v7649_v19  ;;  %v7569_v19 = vld [vmem:[#allocation12 + $0x48] sm:$0xf]  ;;  %v8642_v20 = vld [vmem:[#allocation12 + $0x54] sm:$0xf0] }
 0x2a1   : > { %v7914_v9 = vor.u32 %v8729_v26, %v7913_v61 }
 0x2a2   : > { %4989 = vmatpush.bf16.msra.mxu3 %v7994_v1  ;;  %v8695_v1 = vld [vmem:[#allocation12 + $0x204] sm:$0xf] }
 0x2a4   : > { %5015 = vmatpush.bf16.msrb.mxu1 %v7774_v41  ;;  %v7870_v41 = vor.u32 %v8715_v35, %v7867_v32  ;;  %v7790_v32 = vor.u32 %v8695_v1, %v7787_v34  ;;  %v7570_v1 = vor.u32 %v8642_v20, %v7569_v19  ;;  %v8722_v19 = vld [vmem:[#allocation12 + $0x2d4] sm:$0xf0]  ;;  %v8652_v20 = vld [vmem:[#allocation12 + $0xac] sm:$0xf] }
 0x2a6   : > { %5031 = vmatpush.bf16.msrb.mxu2 %v7870_v41  ;;  %4990 = vmatpush.bf16.msra.mxu3 %v7978_v54  ;;  %v4018_v41 = vpop.f32.mrf.mxu2  ;;  %v4003_v54 = vadd.f32 %v4002_v11, %v3989_v62  ;;  %v8690_v62 = vld [vmem:[#allocation12 + $0x1d4] sm:$0xf0] }
 0x2a8   : > { %5016 = vmatpush.bf16.msrb.mxu1 %v7758_v46  ;;  %v7851_v46 = vld [vmem:[#allocation12 + $0x290] sm:$0xf0] }
 0x2a9   : > { %v7854_v50 = vor.u32 %v8711_v43, %v7851_v46  ;;  %v8654_v46 = vld [vmem:[#allocation12 + $0xb4] sm:$0xf0] }
 0x2aa   : > { %4991 = vmatpush.bf16.msra.mxu3 %v7962_v28  ;;  %v7618_v40 = vor.u32 %v8654_v46, %v7617_v33  ;;  %v7601_v28 = vld [vmem:[#allocation12 + $0x88] sm:$0xf] }
 0x2ab   : > { %5032 = vmatpush.bf16.msrb.mxu2 %v7854_v50  ;;  %v4044_v50 = vpop.f32.mrf.mxu0  ;;  %v7537_v46 = vld [vmem:[#allocation12 + $0x8] sm:$0xf] }
 0x2ac   : > { %5017 = vmatpush.bf16.msrb.mxu1 %v7742_v37  ;;  %v8707_v37 = vld [vmem:[#allocation12 + $0x264] sm:$0xf] }
 0x2ad   : > { %v7838_v31 = vor.u32 %v8707_v37, %v7835_v15  ;;  %v4019_v37 = vadd.f32 %v4018_v41, %v4005_v27  ;;  %v8650_v15 = vld [vmem:[#allocation12 + $0x94] sm:$0xf0]  ;;  %v8735_v41 = vld [vmem:[#allocation12 + $0x344] sm:$0xf] }
 0x2ae   : > { %v4072_v18 = vpop.f32.mrf.mxu2  ;;  %v7602_v51 = vor.u32 %v8650_v15, %v7601_v28  ;;  %v8731_v27 = vld [vmem:[#allocation12 + $0x324] sm:$0xf]  ;;  %v8660_v28 = vld [vmem:[#allocation12 + $0xec] sm:$0xf] }
 0x2af   : > { %5033 = vmatpush.bf16.msrb.mxu2 %v7838_v31 }
 0x2b0   : > { %5018 = vmatpush.bf16.msrb.mxu1 %v7726_v12  ;;  %v7946_v12 = vor.u32 %v8737_v3, %v7945_v63 }
 0x2b2   : > { %4992 = vmatpush.bf16.msra.mxu3 %v7946_v12  ;;  %v4058_v12 = vpop.f32.mrf.mxu1 }
 0x2b3   : > { %5034 = vmatpush.bf16.msrb.mxu2 %v7822_v7  ;;  %v7777_v7 = vld [vmem:[#allocation12 + $0x1e8] sm:$0xf]  ;;  %v4046_v13 = vpop.f32.mrf.mxu0 }
 0x2b4   : > { %5019 = vmatpush.bf16.msrb.mxu1 %v7710_v16 }
 0x2b6   : > { %4993 = vmatpush.bf16.msra.mxu3 %v7930_v60 }
 0x2b7   : > { %5035 = vmatpush.bf16.msrb.mxu2 %v7806_v23  ;;  %v7761_v23 = vld [vmem:[#allocation12 + $0x1c8] sm:$0xf] }
 0x2b8   : > { %5020 = vmatpush.bf16.msrb.mxu1 %v7694_v6  ;;  %v7762_v34 = vor.u32 %v8690_v62, %v7761_v23  ;;  %v7619_v23 = vld [vmem:[#allocation12 + $0xb8] sm:$0xf0] }
 0x2ba   : > { %4994 = vmatpush.bf16.msra.mxu3 %v7914_v9 }
 0x2bb   : > { %5036 = vmatpush.bf16.msrb.mxu2 %v7790_v32  ;;  %v4100_v62 = vpop.f32.mrf.mxu0 }
 0x2bc   : > { %5021 = vmatpush.bf16.msrb.mxu1 %v7678_v5  ;;  %v8658_v5 = vld [vmem:[#allocation12 + $0xd4] sm:$0xf0] }
 0x2bd   : > { %v7634_v43 = vor.u32 %v8658_v5, %v7633_v2  ;;  %v8638_v2 = vld [vmem:[#allocation12 + $0x34] sm:$0xf0]  ;;  %v7745_v5 = vld [vmem:[#allocation12 + $0x1a8] sm:$0xf] }
 0x2be   : > { %5043 = vmatpush.bf16.msrb.mxu3 %v8030_v30  ;;  %v4060_v30 = vpop.f32.mrf.mxu1  ;;  %v7554_v33 = vor.u32 %v8638_v2, %v7553_v21  ;;  %v7603_v21 = vld [vmem:[#allocation12 + $0x98] sm:$0xf0]  ;;  %v3278_v2 = vperm.slane %v9700_v22, 3 }
 0x2c0   : > { %5022 = vmatpush.bf16.msrb.mxu1 %v7662_v44  ;;  %v4017_v44 = vadd.f32 %v4016_v52, %v4003_v54  ;;  %v7585_v52 = vld [vmem:[#allocation12 + $0x68] sm:$0xf]  ;;  %v4074_v54 = vpop.f32.mrf.mxu2 }
 0x2c8   : > { %v3974_v39 = vpop.f32.mrf.mxu3 }
 0x2c9   : > { %v3975_v0 = vadd.f32 %v3974_v39, %v3961_v47  ;;  %v8011_v39 = vld [vmem:[#allocation12 + $0x3d0] sm:$0xf0] }
 0x2ca   : > { %v8014_v58 = vor.u32 %v8751_v49, %v8011_v39  ;;  %v7995_v47 = vld [vmem:[#allocation12 + $0x3b0] sm:$0xf0]  ;;  %v8634_v49 = vld [vmem:[#allocation12 + $0x14] sm:$0xf0]  ;;  %v7729_v39 = vld [vmem:[#allocation12 + $0x188] sm:$0xf] }
 0x2cb   : > { %v4147_v57 = vmul.f32 0.2, %v3975_v0  ;;  %v7998_v55 = vor.u32 %v8747_v45, %v7995_v47 }
 0x2cc   : > { %5044 = vmatpush.bf16.msrb.mxu3 %v8014_v58  ;;  %v8682_v58 = vld [vmem:[#allocation12 + $0x194] sm:$0xf0] }
 0x2cd   : > { %v4155_v6 = vmax.f32 %v3975_v0, %v4147_v57  ;;  %v3277_v0 = vperm.slane %v9700_v22, 2  ;;  %v7979_v57 = vld [vmem:[#allocation12 + $0x390] sm:$0xf0]  ;;  %v4102_v22 = vpop.f32.mrf.mxu0 }
 0x2cf   : > { %v4045_v8 = vadd.f32 %v4044_v50, %v3277_v0  ;;  %v4047_v9 = vadd.f32 %v4046_v13, %v3277_v0  ;;  %v7713_v0 = vld [vmem:[#allocation12 + $0x168] sm:$0xf] }
 0x2d0   : > { %v3976_v56 = vpop.f32.mrf.mxu3  ;;  %5045 = vmatpush.bf16.msrb.mxu3 %v7998_v55  ;;  %v7730_v55 = vor.u32 %v8682_v58, %v7729_v39  ;;  %v7697_v13 = vld [vmem:[#allocation12 + $0x148] sm:$0xf] }
 0x2d1   : > { %v3977_v16 = vadd.f32 %v3976_v56, %v3963_v4  ;;  %v8646_v4 = vld [vmem:[#allocation12 + $0x74] sm:$0xf0]  ;;  %v8743_v56 = vld [vmem:[#allocation12 + $0x384] sm:$0xf]  ;;  %v4061_v48 = vadd.f32 %v4060_v30, %v4047_v9  ;;  %v7873_v9 = vld [vmem:[#allocation12 + $0x2a8] sm:$0xf] }
 0x2d2   : > { %v7586_v14 = vor.u32 %v8646_v4, %v7585_v52  ;;  %v8726_v4 = vld [vmem:[#allocation12 + $0x2f4] sm:$0xf0]  ;;  %v7665_v30 = vld [vmem:[#allocation12 + $0x108] sm:$0xf] }
 0x2d3   : > { %v4151_v17 = vmul.f32 0.2, %v3977_v16  ;;  %v4075_v50 = vadd.f32 %v4074_v54, %v4061_v48  ;;  %v8666_v54 = vld [vmem:[#allocation12 + $0x114] sm:$0xf0] }
 0x2d4   : > { %v8714_v48 = vld [vmem:[#allocation12 + $0x294] sm:$0xf0]  ;;  %v7666_v39 = vor.u32 %v8666_v54, %v7665_v30  ;;  %v7907_v30 = vld [vmem:[#allocation12 + $0x2f8] sm:$0xf0] }
 0x2d5   : > { %v4159_v25 = vmax.f32 %v3977_v16, %v4151_v17  ;;  %v7982_v16 = vor.u32 %v8743_v56, %v7979_v57  ;;  %v7778_v17 = vor.u32 %v8694_v10, %v7777_v7  ;;  %v8656_v7 = vld [vmem:[#allocation12 + $0xcc] sm:$0xf]  ;;  %v7635_v10 = vld [vmem:[#allocation12 + $0xd8] sm:$0xf0] }
 0x2d7   : > { %v9705_v35 = vpack.c.bf16 %v4159_v25, %v4155_v6  ;;  %5046 = vmatpush.bf16.msrb.mxu3 %v7982_v16  ;;  %v8739_v6 = vld [vmem:[#allocation12 + $0x364] sm:$0xf]  ;;  %v7963_v25 = vld [vmem:[#allocation12 + $0x370] sm:$0xf0] }
 0x2d8   : > { %v4030_v42 = vpop.f32.mrf.mxu3  ;;  %v7966_v26 = vor.u32 %v8739_v6, %v7963_v25 }
 0x2d9   : > { %4953 = vmatmul.bf16.vlgmr.msra.gmra.mxu0 %v9705_v35  ;;  %v4031_v59 = vadd.f32 %v4030_v42, %v4017_v44  ;;  %v7947_v42 = vld [vmem:[#allocation12 + $0x350] sm:$0xf0]  ;;  %v7746_v44 = vor.u32 %v8686_v38, %v7745_v5  ;;  %v4128_v38 = vpop.f32.mrf.mxu2 }
 0x2da   : > { %5057 = vmatpush.bf16.msra.mxu0 %v7650_v29  ;;  %v4059_v29 = vadd.f32 %v4058_v12, %v4045_v8  ;;  %v7950_v36 = vor.u32 %v8735_v41, %v7947_v42 }
 0x2db   : > { %v4148_v63 = vmul.f32 0.2, %v4031_v59  ;;  %5047 = vmatpush.bf16.msrb.mxu3 %v7966_v26  ;;  %v7681_v26 = vld [vmem:[#allocation12 + $0x128] sm:$0xf] }
 0x2dc   : > { %v4073_v32 = vadd.f32 %v4072_v18, %v4059_v29  ;;  %v8727_v18 = vld [vmem:[#allocation12 + $0x304] sm:$0xf]  ;;  %v8670_v29 = vld [vmem:[#allocation12 + $0x134] sm:$0xf0] }
 0x2dd   : > { %v4156_v53 = vmax.f32 %v4031_v59, %v4148_v63  ;;  %v7931_v59 = vld [vmem:[#allocation12 + $0x330] sm:$0xf0]  ;;  %v8678_v63 = vld [vmem:[#allocation12 + $0x174] sm:$0xf0]  ;;  %v7682_v5 = vor.u32 %v8670_v29, %v7681_v26 }
 0x2de   : > { %5058 = vmatpush.bf16.msra.mxu0 %v7634_v43  ;;  %v7934_v15 = vor.u32 %v8731_v27, %v7931_v59  ;;  %v7714_v16 = vor.u32 %v8678_v63, %v7713_v0  ;;  %v7841_v27 = vld [vmem:[#allocation12 + $0x268] sm:$0xf] }
 0x2df   : > { %5048 = vmatpush.bf16.msrb.mxu3 %v7950_v36  ;;  %v7857_v36 = vld [vmem:[#allocation12 + $0x288] sm:$0xf] }
 0x2e0   : > { %v4032_v31 = vpop.f32.mrf.mxu3 }
 0x2e1   : > { %v4033_v3 = vadd.f32 %v4032_v31, %v4019_v37  ;;  %v7651_v37 = vld [vmem:[#allocation12 + $0xf8] sm:$0xf0]  ;;  %v7538_v31 = vor.u32 %v8634_v49, %v7537_v46  ;;  %v4101_v49 = vadd.f32 %v4100_v62, %v3278_v2 }
 0x2e2   : > { %5059 = vmatpush.bf16.msra.mxu0 %v7618_v40  ;;  %v7654_v12 = vor.u32 %v8660_v28, %v7651_v37  ;;  %v7779_v46 = vld [vmem:[#allocation12 + $0x1f8] sm:$0xf0]  ;;  %v8640_v28 = vld [vmem:[#allocation12 + $0x4c] sm:$0xf] }
 0x2e3   : > { %v4152_v11 = vmul.f32 0.2, %v4033_v3  ;;  %5049 = vmatpush.bf16.msrb.mxu3 %v7934_v15  ;;  %v7571_v37 = vld [vmem:[#allocation12 + $0x58] sm:$0xf0] }
 0x2e4   : > { %v7574_v63 = vor.u32 %v8640_v28, %v7571_v37  ;;  %v8001_v37 = vld [vmem:[#allocation12 + $0x3a8] sm:$0xf] }
 0x2e5   : > { %v4160_v60 = vmax.f32 %v4033_v3, %v4152_v11  ;;  %v7905_v3 = vld [vmem:[#allocation12 + $0x2e8] sm:$0xf] }
 0x2e6   : > { %5060 = vmatpush.bf16.msra.mxu0 %v7602_v51  ;;  %v7915_v51 = vld [vmem:[#allocation12 + $0x310] sm:$0xf0] }
 0x2e7   : > { %v9709_v24 = vpack.c.bf16 %v4160_v60, %v4156_v53  ;;  %v7918_v11 = vor.u32 %v8727_v18, %v7915_v51  ;;  %v7906_v53 = vor.u32 %v8726_v4, %v7905_v3  ;;  %v7638_v60 = vor.u32 %v8656_v7, %v7635_v10  ;;  %v7825_v3 = vld [vmem:[#allocation12 + $0x248] sm:$0xf]  ;;  %v8706_v18 = vld [vmem:[#allocation12 + $0x254] sm:$0xf0]  ;;  %v8636_v51 = vld [vmem:[#allocation12 + $0x2c] sm:$0xf]  ;;  %v4130_v10 = vpop.f32.mrf.mxu2 }
 0x2e8   : > { %v4086_v61 = vpop.f32.mrf.mxu3  ;;  %v7555_v4 = vld [vmem:[#allocation12 + $0x38] sm:$0xf0] }
 0x2e9   : > { %4967 = vmatmul.bf16.vlgmr.msra.gmra.mxu1 %v9709_v24  ;;  %5009 = vmatmul.bf16.vlgmr.msrb.gmra.mxu0 %v9705_v35  ;;  %v4087_v43 = vadd.f32 %v4086_v61, %v4073_v32  ;;  %v7622_v61 = vor.u32 %v8652_v20, %v7619_v23  ;;  %v4114_v32 = vpop.f32.mrf.mxu1  ;;  %v8632_v20 = vld [vmem:[#allocation12 + $0xc] sm:$0xf]  ;;  %v7539_v23 = vld [vmem:[#allocation12 + $0x18] sm:$0xf0] }
 0x2ea   : > { %5061 = vmatpush.bf16.msra.mxu0 %v7586_v14  ;;  %5071 = vmatpush.bf16.msra.mxu1 %v7778_v17  ;;  %v8674_v14 = vld [vmem:[#allocation12 + $0x154] sm:$0xf0]  ;;  %v7889_v17 = vld [vmem:[#allocation12 + $0x2c8] sm:$0xf] }
 0x2eb   : > { %v4149_v45 = vmul.f32 0.2, %v4087_v43  ;;  %5050 = vmatpush.bf16.msrb.mxu3 %v7918_v11  ;;  %v7698_v6 = vor.u32 %v8674_v14, %v7697_v13  ;;  %v7890_v25 = vor.u32 %v8722_v19, %v7889_v17  ;;  %v8684_v11 = vld [vmem:[#allocation12 + $0x1ac] sm:$0xf]  ;;  %v7809_v13 = vld [vmem:[#allocation12 + $0x228] sm:$0xf] }
 0x2ec   : > { %v8702_v19 = vld [vmem:[#allocation12 + $0x234] sm:$0xf0] }
 0x2ed   : > { %v4157_v56 = vmax.f32 %v4087_v43, %v4149_v45  ;;  %v8644_v43 = vld [vmem:[#allocation12 + $0x6c] sm:$0xf]  ;;  %v7810_v29 = vor.u32 %v8702_v19, %v7809_v13 }
 0x2ee   : > { %5062 = vmatpush.bf16.msra.mxu0 %v7570_v1  ;;  %5072 = vmatpush.bf16.msra.mxu1 %v7762_v34  ;;  %v8718_v1 = vld [vmem:[#allocation12 + $0x2b4] sm:$0xf0]  ;;  %v8648_v34 = vld [vmem:[#allocation12 + $0x8c] sm:$0xf] }
 0x2ef   : > { %v7874_v41 = vor.u32 %v8718_v1, %v7873_v9  ;;  %v7606_v42 = vor.u32 %v8648_v34, %v7603_v21  ;;  %v8688_v45 = vld [vmem:[#allocation12 + $0x1cc] sm:$0xf]  ;;  %v7542_v9 = vor.u32 %v8632_v20, %v7539_v23  ;;  %v7793_v1 = vld [vmem:[#allocation12 + $0x208] sm:$0xf]  ;;  %v8698_v34 = vld [vmem:[#allocation12 + $0x214] sm:$0xf0] }
 0x2f0   : > { %v4088_v40 = vpop.f32.mrf.mxu3  ;;  %v8033_v21 = vld [vmem:[#allocation12 + $0x3e8] sm:$0xf]  ;;  %v8704_v19 = vld [vmem:[#allocation12 + $0x24c] sm:$0xf]  ;;  %v7827_v20 = vld [vmem:[#allocation12 + $0x258] sm:$0xf0] }
 0x2f1   : > { %v4089_v47 = vadd.f32 %v4088_v40, %v4075_v50  ;;  %v7858_v50 = vor.u32 %v8714_v48, %v7857_v36  ;;  %v8710_v40 = vld [vmem:[#allocation12 + $0x274] sm:$0xf0]  ;;  %v4116_v7 = vpop.f32.mrf.mxu1  ;;  %v7794_v48 = vor.u32 %v8698_v34, %v7793_v1  ;;  %v7921_v1 = vld [vmem:[#allocation12 + $0x308] sm:$0xf] }
 0x2f2   : > { %5063 = vmatpush.bf16.msra.mxu0 %v7554_v33  ;;  %5073 = vmatpush.bf16.msra.mxu1 %v7746_v44  ;;  %v7587_v33 = vld [vmem:[#allocation12 + $0x78] sm:$0xf0]  ;;  %v8692_v44 = vld [vmem:[#allocation12 + $0x1ec] sm:$0xf]  ;;  %v7842_v0 = vor.u32 %v8710_v40, %v7841_v27  ;;  %v8730_v34 = vld [vmem:[#allocation12 + $0x314] sm:$0xf0] }
 0x2f3   : > { %v4153_v52 = vmul.f32 0.2, %v4089_v47  ;;  %v7590_v58 = vor.u32 %v8644_v43, %v7587_v33  ;;  %v7782_v59 = vor.u32 %v8692_v44, %v7779_v46  ;;  %v7891_v27 = vld [vmem:[#allocation12 + $0x2d8] sm:$0xf0] }
 0x2f5   : > { %v4161_v57 = vmax.f32 %v4089_v47, %v4153_v52  ;;  %v7763_v47 = vld [vmem:[#allocation12 + $0x1d8] sm:$0xf0] }
 0x2f6   : > { %5064 = vmatpush.bf16.msra.mxu0 %v7538_v31  ;;  %5074 = vmatpush.bf16.msra.mxu1 %v7730_v55  ;;  %v4115_v31 = vadd.f32 %v4114_v32, %v4101_v49  ;;  %v4103_v55 = vadd.f32 %v4102_v22, %v3278_v2  ;;  %v8758_v32 = vld [vmem:[#allocation12 + $0x3f4] sm:$0xf0]  ;;  %v8017_v49 = vld [vmem:[#allocation12 + $0x3c8] sm:$0xf]  ;;  %v8672_v22 = vld [vmem:[#allocation12 + $0x14c] sm:$0xf] }
 0x2f7   : > { %v9713_v8 = vpack.c.bf16 %v4161_v57, %v4157_v56  ;;  %v7747_v56 = vld [vmem:[#allocation12 + $0x1b8] sm:$0xf0]  ;;  %v8034_v43 = vor.u32 %v8758_v32, %v8033_v21  ;;  %v8696_v21 = vld [vmem:[#allocation12 + $0x20c] sm:$0xf] }
 0x2f8   : > { %v4129_v52 = vadd.f32 %v4128_v38, %v4115_v31  ;;  %v4117_v57 = vadd.f32 %v4116_v7, %v4103_v55  ;;  %v7750_v17 = vor.u32 %v8684_v11, %v7747_v56  ;;  %v8676_v38 = vld [vmem:[#allocation12 + $0x16c] sm:$0xf]  ;;  %v7875_v55 = vld [vmem:[#allocation12 + $0x2b8] sm:$0xf0]  ;;  %v7969_v56 = vld [vmem:[#allocation12 + $0x368] sm:$0xf] }
 0x2f9   : > { %4981 = vmatmul.bf16.vlgmr.msra.gmra.mxu2 %v9713_v8  ;;  %5023 = vmatmul.bf16.vlgmr.msrb.gmra.mxu1 %v9709_v24  ;;  %v8716_v31 = vld [vmem:[#allocation12 + $0x2ac] sm:$0xf]  ;;  %v8035_v32 = vld [vmem:[#allocation12 + $0x3f8] sm:$0xf0] }
 0x2fa   : > { %5113 = vmatpush.bf16.msrb.mxu0 %v7654_v12  ;;  %5075 = vmatpush.bf16.msra.mxu1 %v7714_v16  ;;  %v7766_v12 = vor.u32 %v8688_v45, %v7763_v47  ;;  %v4131_v14 = vadd.f32 %v4130_v10, %v4117_v57  ;;  %v8668_v45 = vld [vmem:[#allocation12 + $0x12c] sm:$0xf]  ;;  %v7683_v47 = vld [vmem:[#allocation12 + $0x138] sm:$0xf0]  ;;  %v8742_v57 = vld [vmem:[#allocation12 + $0x374] sm:$0xf0] }
 0x2fb   : > { %5065 = vmatmul.bf16.vlgmr.msra.gmra.mxu0 %v9705_v35  ;;  %5085 = vmatpush.bf16.msra.mxu2 %v7906_v53  ;;  %v7826_v53 = vor.u32 %v8706_v18, %v7825_v3  ;;  %v7985_v3 = vld [vmem:[#allocation12 + $0x388] sm:$0xf]  ;;  %v7667_v18 = vld [vmem:[#allocation12 + $0x118] sm:$0xf0] }
 0x2fe   : > { %5114 = vmatpush.bf16.msrb.mxu0 %v7638_v60  ;;  %5076 = vmatpush.bf16.msra.mxu1 %v7698_v6  ;;  %v7558_v60 = vor.u32 %v8636_v51, %v7555_v4  ;;  %v8680_v6 = vld [vmem:[#allocation12 + $0x18c] sm:$0xf]  ;;  %v7859_v4 = vld [vmem:[#allocation12 + $0x298] sm:$0xf0] }
 0x2ff   : > { %5086 = vmatpush.bf16.msra.mxu2 %v7890_v25  ;;  %v7731_v25 = vld [vmem:[#allocation12 + $0x198] sm:$0xf0]  ;;  %v8712_v51 = vld [vmem:[#allocation12 + $0x28c] sm:$0xf] }
 0x300   : > { %v7862_v11 = vor.u32 %v8712_v51, %v7859_v4  ;;  %v8771_v51 = vld [vmem:[#allocation15 + $0x60] sm:$0xff] }
 0x302   : > { %5115 = vmatpush.bf16.msrb.mxu0 %v7622_v61  ;;  %5077 = vmatpush.bf16.msra.mxu1 %v7682_v5  ;;  %v7734_v5 = vor.u32 %v8680_v6, %v7731_v25  ;;  %v7937_v6 = vld [vmem:[#allocation12 + $0x328] sm:$0xf]  ;;  %v8734_v25 = vld [vmem:[#allocation12 + $0x334] sm:$0xf0] }
 0x303   : > { %5087 = vmatpush.bf16.msra.mxu2 %v7874_v41  ;;  %v7715_v41 = vld [vmem:[#allocation12 + $0x178] sm:$0xf0] }
 0x304   : > { %v7718_v44 = vor.u32 %v8676_v38, %v7715_v41  ;;  %v7922_v38 = vor.u32 %v8730_v34, %v7921_v1 }
 0x306   : > { %5116 = vmatpush.bf16.msrb.mxu0 %v7606_v42  ;;  %5078 = vmatpush.bf16.msra.mxu1 %v7666_v39  ;;  %v8724_v42 = vld [vmem:[#allocation12 + $0x2ec] sm:$0xf]  ;;  %v8754_v39 = vld [vmem:[#allocation12 + $0x3d4] sm:$0xf0] }
 0x307   : > { %5088 = vmatpush.bf16.msra.mxu2 %v7858_v50  ;;  %v7910_v46 = vor.u32 %v8724_v42, %v7907_v30  ;;  %v7699_v50 = vld [vmem:[#allocation12 + $0x158] sm:$0xf0]  ;;  %v8752_v42 = vld [vmem:[#allocation12 + $0x3cc] sm:$0xf] }
 0x308   : > { %v4142_v15 = vpop.f32.mrf.mxu3  ;;  %v7702_v40 = vor.u32 %v8672_v22, %v7699_v50  ;;  %v8019_v30 = vld [vmem:[#allocation12 + $0x3d8] sm:$0xf0] }
 0x309   : > { %5037 = vmatmul.bf16.vlgmr.msrb.gmra.mxu2 %v9713_v8  ;;  %5079 = vmatmul.bf16.vlgmr.msra.gmra.mxu1 %v9709_v24  ;;  %v4143_v16 = vadd.f32 %v4142_v15, %v4129_v52  ;;  %v8750_v15 = vld [vmem:[#allocation12 + $0x3b4] sm:$0xf0]  ;;  %v7971_v22 = vld [vmem:[#allocation12 + $0x378] sm:$0xf0] }
 0x30a   : > { %5117 = vmatpush.bf16.msrb.mxu0 %v7590_v58  ;;  %5127 = vmatpush.bf16.msrb.mxu1 %v7782_v59  ;;  %v8720_v58 = vld [vmem:[#allocation12 + $0x2cc] sm:$0xf]  ;;  %v8018_v59 = vor.u32 %v8754_v39, %v8017_v49  ;;  %v8746_v52 = vld [vmem:[#allocation12 + $0x394] sm:$0xf0] }
 0x30b   : > { %5089 = vmatpush.bf16.msra.mxu2 %v7842_v0  ;;  %v4150_v61 = vmul.f32 0.2, %v4143_v16  ;;  %v7894_v28 = vor.u32 %v8720_v58, %v7891_v27  ;;  %v8002_v0 = vor.u32 %v8750_v15, %v8001_v37  ;;  %v7986_v7 = vor.u32 %v8746_v52, %v7985_v3  ;;  %v8740_v39 = vld [vmem:[#allocation12 + $0x36c] sm:$0xf]  ;;  %v7955_v27 = vld [vmem:[#allocation12 + $0x358] sm:$0xf0] }
 0x30c   : > { %v7974_v50 = vor.u32 %v8740_v39, %v7971_v22  ;;  %v8736_v58 = vld [vmem:[#allocation12 + $0x34c] sm:$0xf]  ;;  %v8761_v3 = vld [vmem:[#allocation15 + $0x10] sm:$0xff] }
 0x30d   : > { %v4158_v54 = vmax.f32 %v4143_v16, %v4150_v61  ;;  %v8708_v16 = vld [vmem:[#allocation12 + $0x26c] sm:$0xf]  ;;  %v8773_v52 = vld [vmem:[#allocation15 + $0x70] sm:$0xff] }
 0x30e   : > { %5118 = vmatpush.bf16.msrb.mxu0 %v7574_v63  ;;  %5128 = vmatpush.bf16.msrb.mxu1 %v7766_v12  ;;  %v7878_v63 = vor.u32 %v8716_v31, %v7875_v55  ;;  %v8664_v12 = vld [vmem:[#allocation12 + $0x10c] sm:$0xf]  ;;  %v8765_v31 = vld [vmem:[#allocation15 + $0x30] sm:$0xff] }
 0x30f   : > { %5090 = vmatpush.bf16.msra.mxu2 %v7826_v53  ;;  %v7670_v10 = vor.u32 %v8664_v12, %v7667_v18  ;;  %v7843_v53 = vld [vmem:[#allocation12 + $0x278] sm:$0xf0]  ;;  %v8700_v61 = vld [vmem:[#allocation12 + $0x22c] sm:$0xf] }
 0x310   : > { %v4144_v62 = vpop.f32.mrf.mxu3  ;;  %v7846_v13 = vor.u32 %v8708_v16, %v7843_v53  ;;  %v8728_v15 = vld [vmem:[#allocation12 + $0x30c] sm:$0xf]  ;;  %v8781_v16 = vld [vmem:[#allocation15 + $0xb0] sm:$0xff]  ;;  %v9731_v53 = vld [vmem:[#allocation13] sm:$0xf] }
 0x311   : > { %v4145_v26 = vadd.f32 %v4144_v62, %v4131_v14  ;;  %v7953_v14 = vld [vmem:[#allocation12 + $0x348] sm:$0xf]  ;;  %v7830_v62 = vor.u32 %v8704_v19, %v7827_v20  ;;  %v8764_v55 = vld [vmem:[#allocation15 + $0x28] sm:$0xff]  ;;  %v4297_v19 = vperm.slane %v9731_v53, 0 }
 0x312   : > { %5119 = vmatpush.bf16.msrb.mxu0 %v7558_v60  ;;  %5129 = vmatpush.bf16.msrb.mxu1 %v7750_v17  ;;  %v7970_v60 = vor.u32 %v8742_v57, %v7969_v56  ;;  %v8738_v17 = vld [vmem:[#allocation12 + $0x354] sm:$0xf0]  ;;  %v8760_v12 = vld [vmem:[#allocation15 + $0x8] sm:$0xff] }
 0x313   : > { %v4154_v2 = vmul.f32 0.2, %v4145_v26  ;;  %5091 = vmatpush.bf16.msra.mxu2 %v7810_v29  ;;  %v7954_v23 = vor.u32 %v8738_v17, %v7953_v14  ;;  %v7938_v29 = vor.u32 %v8734_v25, %v7937_v6  ;;  %v8772_v18 = vld [vmem:[#allocation15 + $0x68] sm:$0xff]  ;;  %v8769_v57 = vld [vmem:[#allocation15 + $0x50] sm:$0xff] }
 0x314   : > { %v8780_v14 = vld [vmem:[#allocation15 + $0xa8] sm:$0xff] }
 0x315   : > { %v4162_v36 = vmax.f32 %v4145_v26, %v4154_v2  ;;  %v7811_v26 = vld [vmem:[#allocation12 + $0x238] sm:$0xf0] }
 0x316   : > { %5120 = vmatpush.bf16.msrb.mxu0 %v7542_v9  ;;  %5130 = vmatpush.bf16.msrb.mxu1 %v7734_v5  ;;  %v7814_v9 = vor.u32 %v8700_v61, %v7811_v26  ;;  %v7795_v2 = vld [vmem:[#allocation12 + $0x218] sm:$0xf0]  ;;  %v8756_v5 = vld [vmem:[#allocation12 + $0x3ec] sm:$0xf] }
 0x317   : > { %v9721_v33 = vpack.c.bf16 %v4162_v36, %v4158_v54  ;;  %5092 = vmatpush.bf16.msra.mxu2 %v7794_v48  ;;  %v8038_v41 = vor.u32 %v8756_v5, %v8035_v32  ;;  %v8022_v54 = vor.u32 %v8752_v42, %v8019_v30  ;;  %v8748_v36 = vld [vmem:[#allocation12 + $0x3ac] sm:$0xf]  ;;  %v8003_v48 = vld [vmem:[#allocation12 + $0x3b8] sm:$0xf0]  ;;  %v8777_v5 = vld [vmem:[#allocation15 + $0x90] sm:$0xff] }
 0x318   : > { %v8778_v26 = vld [vmem:[#allocation15 + $0x98] sm:$0xff]  ;;  %v8776_v30 = vld [vmem:[#allocation15 + $0x88] sm:$0xff] }
 0x319   : > { %4995 = vmatmul.bf16.vlgmr.msra.gmra.mxu3 %v9721_v33  ;;  %5121 = vmatmul.bf16.vlgmr.msrb.gmra.mxu0 %v9705_v35  ;;  %v7686_v35 = vor.u32 %v8668_v45, %v7683_v47  ;;  %v8766_v47 = vld [vmem:[#allocation15 + $0x38] sm:$0xff] }
 0x31a   : > { %5099 = vmatpush.bf16.msra.mxu3 %v8034_v43  ;;  %5131 = vmatpush.bf16.msrb.mxu1 %v7718_v44  ;;  %v8006_v43 = vor.u32 %v8748_v36, %v8003_v48  ;;  %v8744_v44 = vld [vmem:[#allocation12 + $0x38c] sm:$0xf] }
 0x31b   : > { %5141 = vmatpush.bf16.msrb.mxu2 %v7910_v46  ;;  %v7987_v46 = vld [vmem:[#allocation12 + $0x398] sm:$0xf0]  ;;  %5449 = vmatpush.bf16.msra.mxu0 %v8766_v47 }
 0x31c   : > { %5093 = vmatmul.bf16.vlgmr.msra.gmra.mxu2 %v9713_v8  ;;  %v7990_v49 = vor.u32 %v8744_v44, %v7987_v46  ;;  %v8775_v46 = vld [vmem:[#allocation15 + $0x80] sm:$0xff] }
 0x31e   : > { %5100 = vmatpush.bf16.msra.mxu3 %v8018_v59  ;;  %5132 = vmatpush.bf16.msrb.mxu1 %v7702_v40  ;;  %v7958_v59 = vor.u32 %v8736_v58, %v7955_v27  ;;  %v8732_v40 = vld [vmem:[#allocation12 + $0x32c] sm:$0xf] }
 0x31f   : > { %5142 = vmatpush.bf16.msrb.mxu2 %v7894_v28  ;;  %v7939_v28 = vld [vmem:[#allocation12 + $0x338] sm:$0xf0]  ;;  %5450 = vmatpush.bf16.msra.mxu0 %v8765_v31 }
 0x320   : > { %v7942_v37 = vor.u32 %v8732_v40, %v7939_v28  ;;  %v8789_v40 = vld [vmem:[#allocation15 + $0xf0] sm:$0xff] }
 0x322   : > { %5101 = vmatpush.bf16.msra.mxu3 %v8002_v0  ;;  %5133 = vmatpush.bf16.msrb.mxu1 %v7686_v35  ;;  %v8763_v0 = vld [vmem:[#allocation15 + $0x20] sm:$0xff]  ;;  %v8762_v35 = vld [vmem:[#allocation15 + $0x18] sm:$0xff] }
 0x323   : > { %5143 = vmatpush.bf16.msrb.mxu2 %v7878_v63  ;;  %5451 = vmatpush.bf16.msra.mxu0 %v8764_v55  ;;  %v8774_v63 = vld [vmem:[#allocation15 + $0x78] sm:$0xff]  ;;  %v8787_v55 = vld [vmem:[#allocation15 + $0xe0] sm:$0xff] }
 0x326   : > { %5102 = vmatpush.bf16.msra.mxu3 %v7986_v7  ;;  %5134 = vmatpush.bf16.msrb.mxu1 %v7670_v10  ;;  %v8770_v10 = vld [vmem:[#allocation15 + $0x58] sm:$0xff] }
 0x327   : > { %5144 = vmatpush.bf16.msrb.mxu2 %v7862_v11  ;;  %5452 = vmatpush.bf16.msra.mxu0 %v8763_v0  ;;  %v8782_v11 = vld [vmem:[#allocation15 + $0xb8] sm:$0xff] }
 0x329   : > { %5051 = vmatmul.bf16.vlgmr.msrb.gmra.mxu3 %v9721_v33  ;;  %5135 = vmatmul.bf16.vlgmr.msrb.gmra.mxu1 %v9709_v24  ;;  %v7798_v24 = vor.u32 %v8696_v21, %v7795_v2 }
 0x32a   : > { %5103 = vmatpush.bf16.msra.mxu3 %v7970_v60  ;;  %5463 = vmatpush.bf16.msra.mxu1 %v8774_v63 }
 0x32b   : > { %5145 = vmatpush.bf16.msrb.mxu2 %v7846_v13  ;;  %5453 = vmatpush.bf16.msra.mxu0 %v8762_v35  ;;  %v8768_v13 = vld [vmem:[#allocation15 + $0x48] sm:$0xff] }
 0x32e   : > { %5104 = vmatpush.bf16.msra.mxu3 %v7954_v23  ;;  %5464 = vmatpush.bf16.msra.mxu1 %v8773_v52  ;;  %v8767_v23 = vld [vmem:[#allocation15 + $0x40] sm:$0xff] }
 0x32f   : > { %5146 = vmatpush.bf16.msrb.mxu2 %v7830_v62  ;;  %5454 = vmatpush.bf16.msra.mxu0 %v8761_v3  ;;  %v8779_v62 = vld [vmem:[#allocation15 + $0xa0] sm:$0xff] }
 0x332   : > { %5105 = vmatpush.bf16.msra.mxu3 %v7938_v29  ;;  %5465 = vmatpush.bf16.msra.mxu1 %v8772_v18 }
 0x333   : > { %5147 = vmatpush.bf16.msrb.mxu2 %v7814_v9  ;;  %5455 = vmatpush.bf16.msra.mxu0 %v8760_v12  ;;  %v4299_v12 = vperm.slane %v9731_v53, 2 }
 0x336   : > { %5106 = vmatpush.bf16.msra.mxu3 %v7922_v38  ;;  %5466 = vmatpush.bf16.msra.mxu1 %v8771_v51 }
 0x337   : > { %5148 = vmatpush.bf16.msrb.mxu2 %v7798_v24 }
 0x339   : > { %5107 = vmatmul.bf16.vlgmr.msra.gmra.mxu3 %v9721_v33 }
 0x33a   : > { %5155 = vmatpush.bf16.msrb.mxu3 %v8038_v41  ;;  %5149 = vmatmul.bf16.vlgmr.msrb.gmra.mxu2 %v9713_v8  ;;  %v7923_v8 = vld [vmem:[#allocation12 + $0x318] sm:$0xf0] }
 0x33b   : > { %v7926_v45 = vor.u32 %v8728_v15, %v7923_v8  ;;  %5467 = vmatpush.bf16.msra.mxu1 %v8770_v10  ;;  %5477 = vmatpush.bf16.msra.mxu2 %v8782_v11  ;;  %v8788_v15 = vld [vmem:[#allocation15 + $0xe8] sm:$0xff] }
 0x33e   : > { %5156 = vmatpush.bf16.msrb.mxu3 %v8022_v54  ;;  %v4298_v54 = vperm.slane %v9731_v53, 1 }
 0x33f   : > { %5468 = vmatpush.bf16.msra.mxu1 %v8769_v57  ;;  %5478 = vmatpush.bf16.msra.mxu2 %v8781_v16  ;;  %v8785_v16 = vld [vmem:[#allocation15 + $0xd0] sm:$0xff] }
 0x342   : > { %5157 = vmatpush.bf16.msrb.mxu3 %v8006_v43 }
 0x343   : > { %5469 = vmatpush.bf16.msra.mxu1 %v8768_v13  ;;  %5479 = vmatpush.bf16.msra.mxu2 %v8780_v14 }
 0x346   : > { %5158 = vmatpush.bf16.msrb.mxu3 %v7990_v49  ;;  %v8790_v49 = vld [vmem:[#allocation15 + $0xf8] sm:$0xff] }
 0x347   : > { %5470 = vmatpush.bf16.msra.mxu1 %v8767_v23  ;;  %5480 = vmatpush.bf16.msra.mxu2 %v8779_v62  ;;  %v8784_v23 = vld [vmem:[#allocation15 + $0xc8] sm:$0xff] }
 0x34a   : > { %5159 = vmatpush.bf16.msrb.mxu3 %v7974_v50 }
 0x34b   : > { %5481 = vmatpush.bf16.msra.mxu2 %v8778_v26  ;;  %v8783_v26 = vld [vmem:[#allocation15 + $0xc0] sm:$0xff] }
 0x34e   : > { %5160 = vmatpush.bf16.msrb.mxu3 %v7958_v59 }
 0x34f   : > { %5482 = vmatpush.bf16.msra.mxu2 %v8777_v5 }
 0x352   : > { %5161 = vmatpush.bf16.msrb.mxu3 %v7942_v37 }
 0x353   : > { %5483 = vmatpush.bf16.msra.mxu2 %v8776_v30 }
 0x356   : > { %5162 = vmatpush.bf16.msrb.mxu3 %v7926_v45  ;;  %v4954_v4 = vpop.f32.mrf.mxu0 }
 0x357   : > { %v4955_v6 = vadd.f32 %v4954_v4, %v4297_v19  ;;  %5484 = vmatpush.bf16.msra.mxu2 %v8775_v46  ;;  %v8786_v4 = vld [vmem:[#allocation15 + $0xd8] sm:$0xff] }
 0x359   : > { %5163 = vmatmul.bf16.vlgmr.msrb.gmra.mxu3 %v9721_v33  ;;  %v8759_v33 = vld [vmem:[#allocation15] sm:$0xff] }
 0x35a   : > { %5456 = vmatpush.bf16.msra.mxu0 %v8759_v33  ;;  %5491 = vmatpush.bf16.msra.mxu3 %v8790_v49 }
 0x35e   : > { %v4956_v60 = vpop.f32.mrf.mxu0  ;;  %5492 = vmatpush.bf16.msra.mxu3 %v8789_v40  ;;  %v8914_v40 = vld [vmem:[%s9767_s10] ss:$0 sm:$0xff] }
 0x35f   : > { %v4957_v9 = vadd.f32 %v4956_v60, %v4297_v19 }
 0x362   : > { %5493 = vmatpush.bf16.msra.mxu3 %v8788_v15 }
 0x366   : > { %v4968_v7 = vpop.f32.mrf.mxu1  ;;  %v5010_v29 = vpop.f32.mrf.mxu0  ;;  %5494 = vmatpush.bf16.msra.mxu3 %v8787_v55 }
 0x367   : > { %v4969_v61 = vadd.f32 %v4968_v7, %v4955_v6  ;;  %v5011_v22 = vadd.f32 %v5010_v29, %v4298_v54 }
 0x36a   : > { %5495 = vmatpush.bf16.msra.mxu3 %v8786_v4 }
 0x36e   : > { %v4970_v17 = vpop.f32.mrf.mxu1  ;;  %v5012_v48 = vpop.f32.mrf.mxu0  ;;  %5496 = vmatpush.bf16.msra.mxu3 %v8785_v16 }
 0x36f   : > { %v4971_v21 = vadd.f32 %v4970_v17, %v4957_v9  ;;  %v5013_v28 = vadd.f32 %v5012_v48, %v4298_v54 }
 0x372   : > { %5497 = vmatpush.bf16.msra.mxu3 %v8784_v23 }
 0x376   : > { %v5024_v34 = vpop.f32.mrf.mxu1  ;;  %5498 = vmatpush.bf16.msra.mxu3 %v8783_v26 }
 0x377   : > { %v5025_v59 = vadd.f32 %v5024_v34, %v5011_v22 }
 0x378   : > { %v5066_v47 = vpop.f32.mrf.mxu0 }
 0x379   : > { %v5067_v7 = vadd.f32 %v5066_v47, %v4299_v12 }
 0x37c   : > { %v4982_v56 = vpop.f32.mrf.mxu2 }
 0x37d   : > { %v4983_v1 = vadd.f32 %v4982_v56, %v4969_v61 }
 0x37e   : > { %v5026_v39 = vpop.f32.mrf.mxu1 }
 0x37f   : > { %v5027_v8 = vadd.f32 %v5026_v39, %v5013_v28 }
 0x380   : > { %v5068_v11 = vpop.f32.mrf.mxu0 }
 0x381   : > { %v5069_v13 = vadd.f32 %v5068_v11, %v4299_v12 }
 0x384   : > { %v4984_v20 = vpop.f32.mrf.mxu2 }
 0x385   : > { %v4985_v38 = vadd.f32 %v4984_v20, %v4971_v21 }
 0x386   : > { %v5080_v0 = vpop.f32.mrf.mxu1 }
 0x387   : > { %v5081_v57 = vadd.f32 %v5080_v0, %v5067_v7 }
 0x38c   : > { %v5038_v32 = vpop.f32.mrf.mxu2 }
 0x38d   : > { %v5039_v37 = vadd.f32 %v5038_v32, %v5025_v59  ;;  %v4300_v32 = vperm.slane %v9731_v53, 3 }
 0x38e   : > { %v5082_v60 = vpop.f32.mrf.mxu1 }
 0x38f   : > { %v5083_v19 = vadd.f32 %v5082_v60, %v5069_v13 }
 0x394   : > { %v5040_v58 = vpop.f32.mrf.mxu2 }
 0x395   : > { %v5041_v31 = vadd.f32 %v5040_v58, %v5027_v8 }
 0x396   : > { %v5122_v21 = vpop.f32.mrf.mxu0 }
 0x39c   : > { %v4996_v25 = vpop.f32.mrf.mxu3 }
 0x39d   : > { %v4997_v2 = vadd.f32 %v4996_v25, %v4983_v1 }
 0x39f   : > { %v5169_v41 = vmul.f32 0.2, %v4997_v2  ;;  %v5094_v52 = vpop.f32.mrf.mxu2 }
 0x3a0   : > { %v5095_v14 = vadd.f32 %v5094_v52, %v5081_v57 }
 0x3a1   : > { %v5177_v43 = vmax.f32 %v4997_v2, %v5169_v41 }
 0x3a4   : > { %v4998_v24 = vpop.f32.mrf.mxu3 }
 0x3a5   : > { %v4999_v42 = vadd.f32 %v4998_v24, %v4985_v38  ;;  %v5123_v38 = vadd.f32 %v5122_v21, %v4300_v32  ;;  %v5124_v24 = vpop.f32.mrf.mxu0 }
 0x3a6   : > { %v5136_v2 = vpop.f32.mrf.mxu1  ;;  %v5125_v54 = vadd.f32 %v5124_v24, %v4300_v32 }
 0x3a7   : > { %v5173_v36 = vmul.f32 0.2, %v4999_v42  ;;  %v5096_v17 = vpop.f32.mrf.mxu2 }
 0x3a8   : > { %v5097_v62 = vadd.f32 %v5096_v17, %v5083_v19 }
 0x3a9   : > { %v5181_v44 = vmax.f32 %v4999_v42, %v5173_v36  ;;  %v5137_v42 = vadd.f32 %v5136_v2, %v5123_v38 }
 0x3ab   : > { %v5185_v50 = vpack.c.bf16 %v5181_v44, %v5177_v43 }
 0x3ac   : > { %v5052_v27 = vpop.f32.mrf.mxu3 }
 0x3ad   : > { %5457 = vmatmul.bf16.vlgmr.msra.gmra.mxu0 %v5185_v50  ;;  %v5053_v45 = vadd.f32 %v5052_v27, %v5039_v37 }
 0x3ae   : > { %v5138_v30 = vpop.f32.mrf.mxu1 }
 0x3af   : > { %v5170_v63 = vmul.f32 0.2, %v5053_v45  ;;  %v5139_v43 = vadd.f32 %v5138_v30, %v5125_v54 }
 0x3b1   : > { %v5178_v33 = vmax.f32 %v5053_v45, %v5170_v63 }
 0x3b4   : > { %v5054_v35 = vpop.f32.mrf.mxu3 }
 0x3b5   : > { %v5055_v3 = vadd.f32 %v5054_v35, %v5041_v31 }
 0x3b7   : > { %v5174_v18 = vmul.f32 0.2, %v5055_v3 }
 0x3b9   : > { %v5182_v51 = vmax.f32 %v5055_v3, %v5174_v18 }
 0x3bb   : > { %v5186_v10 = vpack.c.bf16 %v5182_v51, %v5178_v33 }
 0x3bc   : > { %v5108_v56 = vpop.f32.mrf.mxu3 }
 0x3bd   : > { %5471 = vmatmul.bf16.vlgmr.msra.gmra.mxu1 %v5186_v10  ;;  %v5109_v20 = vadd.f32 %v5108_v56, %v5095_v14  ;;  %v5150_v5 = vpop.f32.mrf.mxu2 }
 0x3be   : > { %v5151_v36 = vadd.f32 %v5150_v5, %v5137_v42 }
 0x3bf   : > { %v5171_v25 = vmul.f32 0.2, %v5109_v20 }
 0x3c1   : > { %v5179_v9 = vmax.f32 %v5109_v20, %v5171_v25 }
 0x3c4   : > { %v5110_v6 = vpop.f32.mrf.mxu3 }
 0x3c5   : > { %v5111_v61 = vadd.f32 %v5110_v6, %v5097_v62  ;;  %v5152_v48 = vpop.f32.mrf.mxu2 }
 0x3c6   : > { %v5153_v46 = vadd.f32 %v5152_v48, %v5139_v43 }
 0x3c7   : > { %v5175_v29 = vmul.f32 0.2, %v5111_v61 }
 0x3c9   : > { %v5183_v1 = vmax.f32 %v5111_v61, %v5175_v29 }
 0x3cb   : > { %v5187_v34 = vpack.c.bf16 %v5183_v1, %v5179_v9 }
 0x3cd   : > { %5485 = vmatmul.bf16.vlgmr.msra.gmra.mxu2 %v5187_v34 }
 0x3dc   : > { %v5164_v41 = vpop.f32.mrf.mxu3 }
 0x3dd   : > { %v5165_v44 = vadd.f32 %v5164_v41, %v5151_v36 }
 0x3df   : > { %v5172_v39 = vmul.f32 0.2, %v5165_v44 }
 0x3e1   : > { %v5180_v58 = vmax.f32 %v5165_v44, %v5172_v39 }
 0x3e4   : > { %v5166_v49 = vpop.f32.mrf.mxu3 }
 0x3e5   : > { %v5167_v22 = vadd.f32 %v5166_v49, %v5153_v46 }
 0x3e7   : > { %v5176_v50 = vmul.f32 0.2, %v5167_v22 }
 0x3e9   : > { %v5184_v27 = vmax.f32 %v5167_v22, %v5176_v50 }
 0x3eb   : > { %v5188_v59 = vpack.c.bf16 %v5184_v27, %v5180_v58 }
 0x3ed   : > { %5499 = vmatmul.bf16.vlgmr.msra.gmra.mxu3 %v5188_v59 }
 0x42a   : > { %v5458_v53 = vpop.f32.mrf.mxu0 }
 0x42b   : > { %v5459_v15 = vadd.f32 %v8914_v40, %v5458_v53 }
 0x432   : > { %v5460_v47 = vpop.f32.mrf.mxu0 }
 0x433   : > { %v5461_v35 = vadd.f32 %v8914_v40, %v5460_v47 }
 0x43a   : > { %v5472_v28 = vpop.f32.mrf.mxu1 }
 0x43b   : > { %v5473_v8 = vadd.f32 %v5472_v28, %v5459_v15 }
 0x442   : > { %v5474_v0 = vpop.f32.mrf.mxu1 }
 0x443   : > { %v5475_v3 = vadd.f32 %v5474_v0, %v5461_v35 }
 0x450   : > { %v5486_v37 = vpop.f32.mrf.mxu2 }
 0x451   : > { %v5487_v45 = vadd.f32 %v5486_v37, %v5473_v8 }
 0x458   : > { %v5488_v63 = vpop.f32.mrf.mxu2 }
 0x459   : > { %v5489_v52 = vadd.f32 %v5488_v63, %v5475_v3 }
 0x470   : > { %v5500_v31 = vpop.f32.mrf.mxu3 }
 0x471   : > { %v5501_v55 = vadd.f32 %v5500_v31, %v5487_v45 }
 0x473   : > { %5506 = vst.msk [vmem:[%s565_s20] sm:$0xff] %vm5505_vm0, %v5501_v55 }
 0x478   : > { %v5502_v12 = vpop.f32.mrf.mxu3 }
 0x479   : > { %v5503_v18 = vadd.f32 %v5502_v12, %v5489_v52 }
 0x47b   : > { %5507 = vst.msk [vmem:[%s565_s20 + $0x8] sm:$0xff] %vm5505_vm0, %v5503_v18 }
 0x47c PF: > { %p27_p3 = scmp.ge.s32.totalorder %s9402_s21, 4   ;;  %s9789_s17 = smov %s9231_s18 }
 0x47d   : > { %s9790_s18 = smov %s9235_s19  ;;  %s9791_s19 = smov %s9413_s22 }
 0x47e   : > { %s9792_s20 = smov %s9402_s21  ;;  %29 = sbr.rel (!%p27_p3) target bundleno = 17 (0x11), region = 145 }
 0x483   :  { %5530 = vsyncpa [#allocation3], 1 }
 0x484   :  { %5532 = vsyncpa [#allocation3 + $0x1], 1 }
 0x485   :  { %5533 = vsyncpa [#allocation5], 1 }
 0x486   :  { %5535 = vsyncpa [#allocation5 + $0x1], 1 }
 0x487   :  { %5536 = vsyncpa [#allocation8], 1 }
 0x488   :  { %5537 = vsyncpa [#allocation11], 1 }
 0x489   :  { %5538 = vsyncpa [#allocation14], 1 }

</bundles_post_ra>
